<compile_context>
chip_gen: v7x
topology: tpu7x:2x2x1
jax: 0.10.0
libtpu: 0.0.40
codegen_flags: <defaults>
</compile_context>

<pallas_src>
import functools
import math

import numpy as np
import jax
import jax.numpy as jnp
from jax import lax
from jax.experimental import pallas as pl
from jax.experimental.pallas import tpu as pltpu


GT_FEAT_ROWS = 16  # rows of the precomputed GT feature slab (padded to 8-multiple)


# -----------------------------------------------------------------------------
# Pallas kernel: per-sample (n_p, GT_PAD) cost matrix and IoU matrix.
# -----------------------------------------------------------------------------
def _cost_kernel(num_gt_ref, logits_ref, pbox_ref, gt_feat_ref, glabel_ref,
                 cost_ref, iou_ref, *, n_cls, gt_pad,
                 cls_w, reg_w, iou_w, center_radius):
    f32 = jnp.float32
    b = pl.program_id(0)
    n_valid = num_gt_ref[b]                       # scalar int32 (SMEM)

    logits = logits_ref[...]                      # (n_p, n_cls)
    pbox = pbox_ref[...]                          # (n_p, 10)
    gtf = gt_feat_ref[...]                        # (16, gt_pad)  precomputed GT features
    labels = glabel_ref[...]                      # (1,  gt_pad)  int32

    # column validity mask (padded GT columns)
    lane = lax.broadcasted_iota(jnp.int32, (1, gt_pad), 1)
    col_valid = lane < n_valid                    # (1, gt_pad) bool

    # ---------------- focal-loss classification cost ----------------
    prob = pl.reciprocal(1.0 + jnp.exp(-logits), approx=True)
    eps, alpha = 1e-12, 0.25
    neg_cost = -jnp.log(1.0 - prob + eps) * (1.0 - alpha) * (prob * prob)
    pos_cost = -jnp.log(prob + eps) * alpha * ((1.0 - prob) * (1.0 - prob))
    diff = pos_cost - neg_cost                    # (n_p, n_cls)
    cls_iota = lax.broadcasted_iota(jnp.int32, (n_cls, gt_pad), 0)
    onehot = (cls_iota == labels).astype(f32)     # (n_cls, gt_pad) -- gt axis is 128-wide
    cls_cost = jnp.dot(diff, onehot, preferred_element_type=f32) * cls_w

    # GT feature rows (precomputed in the wrapper)
    gx, gy, gz = gtf[0:1, :], gtf[1:2, :], gtf[2:3, :]
    lgw, lgl, lgh = gtf[3:4, :], gtf[4:5, :], gtf[5:6, :]
    sinr, cosr = gtf[6:7, :], gtf[7:8, :]
    gw, gl, gh = gtf[8:9, :], gtf[9:10, :], gtf[10:11, :]
    half_x, half_y = gtf[11:12, :], gtf[12:13, :]
    vol_g = gtf[13:14, :]

    # ---------------- L1 regression cost (pred[:, :8] vs normalize_bbox(gt)) ----
    gt_norm = (gx, gy, gz, lgw, lgl, lgh, sinr, cosr)
    reg_cost = jnp.zeros_like(cls_cost)
    for d in range(8):
        reg_cost = reg_cost + jnp.abs(pbox[:, d:d + 1] - gt_norm[d])
    reg_cost = reg_cost * reg_w

    # ---------------- 3D IoU cost (denormalized pred vs GT) ---------------------
    # TODO(synk): rotated-BEV polygon intersection (BboxOverlaps3D, lidar) has no
    # clean Pallas equivalent; axis-aligned 3D IoU is used instead.
    px, py, pz = pbox[:, 0:1], pbox[:, 1:2], pbox[:, 2:3]
    pw = jnp.exp(pbox[:, 3:4])
    pll = jnp.exp(pbox[:, 4:5])
    ph = jnp.exp(pbox[:, 5:6])
    ox = jnp.maximum(jnp.minimum(px + 0.5 * pw, gx + 0.5 * gw)
                     - jnp.maximum(px - 0.5 * pw, gx - 0.5 * gw), 0.0)
    oy = jnp.maximum(jnp.minimum(py + 0.5 * pll, gy + 0.5 * gl)
                     - jnp.maximum(py - 0.5 * pll, gy - 0.5 * gl), 0.0)
    oz = jnp.maximum(jnp.minimum(pz + 0.5 * ph, gz + 0.5 * gh)
                     - jnp.maximum(pz - 0.5 * ph, gz - 0.5 * gh), 0.0)
    inter = ox * oy * oz
    vol_p = pw * pll * ph
    union = jnp.maximum(vol_p + vol_g - inter, 1e-8)
    ious = inter * pl.reciprocal(union, approx=True)          # (n_p, gt_pad)
    ious = jnp.where(col_valid, ious, 0.0)
    iou_ref[...] = ious
    iou_cost = -ious * iou_w

    # ---------------- in-GT-box / in-center masks --------------------------------
    half_z = 0.5 * gh
    in_box = ((px > gx - half_x) & (px < gx + half_x) &
              (py > gy - half_y) & (py < gy + half_y) &
              (pz > gz - half_z) & (pz < gz + half_z) & col_valid)
    cr = center_radius
    in_ctr = ((px > gx - cr * gw) & (px < gx + cr * gw) &
              (py > gy - cr * gl) & (py < gy + cr * gl) &
              (pz > gz - cr * gh) & (pz < gz + cr * gh) & col_valid)
    # any(in_box) | any(in_ctr) == any(in_box | in_ctr): one convert + one max reduce.
    in_either = jnp.logical_or(in_box, in_ctr)
    valid = jnp.max(in_either.astype(jnp.float32), axis=1, keepdims=True) > 0.0
    in_both = jnp.logical_and(in_box, in_ctr)

    cost = cls_cost + reg_cost + iou_cost
    cost = cost + jnp.where(in_both, 0.0, 100.0)    # ~is_in_boxes_and_center * 100
    cost = cost + jnp.where(valid, 0.0, 10000.0)    # invalid rows + 10000
    cost = jnp.where(col_valid, cost, 1e8)          # padded GT columns: huge cost
    cost_ref[...] = cost


def _build_gt_features(gt_boxes_pad):
    """(bs, GT_PAD, 9) raw GT -> (bs, 16, GT_PAD) precomputed feature slab."""
    gx, gy, gz = gt_boxes_pad[..., 0], gt_boxes_pad[..., 1], gt_boxes_pad[..., 2]
    gw, gl, gh = gt_boxes_pad[..., 3], gt_boxes_pad[..., 4], gt_boxes_pad[..., 5]
    gr = gt_boxes_pad[..., 6]
    sinr, cosr = jnp.sin(gr), jnp.cos(gr)
    half_x = 0.5 * (jnp.abs(gw * cosr) + jnp.abs(gl * sinr))
    half_y = 0.5 * (jnp.abs(gw * sinr) + jnp.abs(gl * cosr))
    vol_g = gw * gl * gh
    zeros = jnp.zeros_like(gx)
    feat = jnp.stack(
        [gx, gy, gz, jnp.log(gw), jnp.log(gl), jnp.log(gh), sinr, cosr,
         gw, gl, gh, half_x, half_y, vol_g, zeros, zeros],
        axis=1)                                               # (bs, 16, GT_PAD)
    return feat.astype(jnp.float32)


# -----------------------------------------------------------------------------
# Dynamic-k matching on the *padded* GT axis with a traced num_gt.
# Compiles once per (n_p, gt_pad, candidate_topk); vmapped over the batch.
# -----------------------------------------------------------------------------
def _dynamic_k_matching_padded(cost, ious, n_gt, *, candidate_topk):
    n_p, gt_pad = cost.shape
    k = min(candidate_topk, n_p)
    col_valid = lax.iota(jnp.int32, gt_pad) < n_gt                 # (gt_pad,)

    # dynamic k per gt = clamp(int(sum of top-k ious), min=1); 0 for padded columns
    topk_ious, _ = lax.top_k(ious.T, k)                            # (gt_pad, k)
    dynamic_ks = jnp.maximum(jnp.sum(topk_ious, axis=1).astype(jnp.int32), 1)
    dynamic_ks = jnp.where(col_valid, dynamic_ks, 0)

    # per-gt k-smallest-cost priors; keep only the first dynamic_ks of them
    _, topk_idx = lax.top_k(-cost.T, k)                            # (gt_pad, k)
    sel = (lax.broadcasted_iota(jnp.int32, (gt_pad, k), 1)
           < dynamic_ks[:, None]).astype(jnp.float32)
    gt_rows = lax.broadcasted_iota(jnp.int32, (gt_pad, k), 0)
    matching = (jnp.zeros((gt_pad, n_p), jnp.float32)
                .at[gt_rows, topk_idx].max(sel)).T                 # (n_p, gt_pad)

    # priors matched to more than one gt -> keep only the cheapest gt
    prior_mask = jnp.sum(matching, axis=1) > 1.0
    row_onehot = jax.nn.one_hot(jnp.argmin(cost, axis=1), gt_pad, dtype=jnp.float32)
    matching = jnp.where(prior_mask[:, None], row_onehot, matching)

    def cond_fn(state):
        m, _, cv, _ = state
        return jnp.any(jnp.logical_and(jnp.sum(m, axis=0) == 0.0, cv))

    def body_fn(state):
        m, c, cv, pmask = state
        matched_q = jnp.sum(m, axis=1) > 0.0
        c = c + matched_q[:, None].astype(c.dtype) * 100000.0
        unmatched_gt = jnp.logical_and(jnp.sum(m, axis=0) == 0.0, cv)  # (gt_pad,)
        col_argmin = jnp.argmin(c, axis=0)                             # (gt_pad,)
        add = jax.nn.one_hot(col_argmin, n_p, dtype=jnp.float32).T
        m = jnp.where(unmatched_gt[None, :], jnp.maximum(m, add), m)
        multi = jnp.sum(jnp.sum(m, axis=1) > 1.0) > 0
        new_rows = jax.nn.one_hot(jnp.argmin(c, axis=1), gt_pad, dtype=jnp.float32)
        m = jnp.where(jnp.logical_and(multi, pmask[:, None]), new_rows, m)
        return m, c, cv, pmask

    matching, _, _, _ = lax.while_loop(cond_fn, body_fn,
                                       (matching, cost, col_valid, prior_mask))

    fg_mask = jnp.sum(matching, axis=1) > 0.0                      # (n_p,)
    matched_gt_all = jnp.argmax(matching, axis=1).astype(jnp.int32)  # valid where fg
    return fg_mask, matched_gt_all


# -----------------------------------------------------------------------------
# One jitted device dispatch for the whole batch: Pallas cost kernel + matching.
# -----------------------------------------------------------------------------
@functools.partial(jax.jit, static_argnames=("cls_w", "reg_w", "iou_w",
                                             "center_radius", "candidate_topk"))
def _assign_batch(num_gt, pred_logits, pred_boxes, gt_boxes_pad, gt_labels_pad,
                  cls_w=2.0, reg_w=0.25, iou_w=2.0, center_radius=1.5,
                  candidate_topk=5):
    bs, n_p, n_cls = pred_logits.shape
    gt_pad = gt_boxes_pad.shape[1]

    gt_feat = _build_gt_features(gt_boxes_pad.astype(jnp.float32))
    labels = gt_labels_pad.astype(jnp.int32).reshape(bs, 1, gt_pad)

    kernel = functools.partial(
        _cost_kernel, n_cls=n_cls, gt_pad=gt_pad,
        cls_w=cls_w, reg_w=reg_w, iou_w=iou_w, center_radius=center_radius)

    grid_spec = pltpu.PrefetchScalarGridSpec(
        num_scalar_prefetch=1,
        grid=(bs,),
        in_specs=[
            pl.BlockSpec((None, n_p, n_cls), lambda b, ng: (b, 0, 0)),
            pl.BlockSpec((None, n_p, 10), lambda b, ng: (b, 0, 0)),
            pl.BlockSpec((None, GT_FEAT_ROWS, gt_pad), lambda b, ng: (b, 0, 0)),
            pl.BlockSpec((None, 1, gt_pad), lambda b, ng: (b, 0, 0)),
        ],
        out_specs=(
            pl.BlockSpec((None, n_p, gt_pad), lambda b, ng: (b, 0, 0)),
            pl.BlockSpec((None, n_p, gt_pad), lambda b, ng: (b, 0, 0)),
        ),
    )

    cost, ious = pl.pallas_call(
        kernel,
        out_shape=(jax.ShapeDtypeStruct((bs, n_p, gt_pad), jnp.float32),
                   jax.ShapeDtypeStruct((bs, n_p, gt_pad), jnp.float32)),
        grid_spec=grid_spec,
        compiler_params=pltpu.CompilerParams(
            dimension_semantics=("parallel",)),
    )(num_gt.astype(jnp.int32),
      pred_logits.astype(jnp.float32),
      pred_boxes.astype(jnp.float32),
      gt_feat, labels)

    matcher = functools.partial(_dynamic_k_matching_padded,
                                candidate_topk=candidate_topk)
    fg_mask, matched_all = jax.vmap(matcher)(cost, ious, num_gt.astype(jnp.int32))
    return fg_mask, matched_all


# -----------------------------------------------------------------------------
# Batch forward — mirrors DDet3DAssigner.forward.
# -----------------------------------------------------------------------------
def ddet3d_assigner_forward(pred_logits, pred_boxes, gt_boxes_list, gt_labels_list,
                            candidate_topk=5, center_radius=1.5,
                            cls_w=2.0, reg_w=0.25, iou_w=2.0):
    bs, n_p, _ = pred_logits.shape
    num_gts = [int(g.shape[0]) for g in gt_boxes_list]
    max_gt = max(num_gts) if num_gts else 0
    gt_pad = 128 * math.ceil(max(max_gt, 1) / 128)   # lane-dense gt axis

    # Pad GT boxes/labels host-side with a benign dummy box (unit dims -> log = 0).
    gt_boxes_np = np.zeros((bs, gt_pad, 9), np.float32)
    gt_boxes_np[:, :, 3:6] = 1.0
    gt_labels_np = np.zeros((bs, gt_pad), np.int32)
    for i, (gb, gl_) in enumerate(zip(gt_boxes_list, gt_labels_list)):
        n = num_gts[i]
        if n > 0:
            gt_boxes_np[i, :n, :] = np.asarray(gb, np.float32)[:, :9]
            gt_labels_np[i, :n] = np.asarray(gl_, np.int32)

    fg_mask_b, matched_b = _assign_batch(
        jnp.asarray(num_gts, jnp.int32), pred_logits, pred_boxes,
        jnp.asarray(gt_boxes_np), jnp.asarray(gt_labels_np),
        cls_w=cls_w, reg_w=reg_w, iou_w=iou_w,
        center_radius=center_radius, candidate_topk=candidate_topk)

    jax.block_until_ready((fg_mask_b, matched_b))
    fg_mask_np = np.asarray(jax.device_get(fg_mask_b))
    matched_np = np.asarray(jax.device_get(matched_b))

    batch_indices = []
    for i in range(bs):
        if num_gts[i] == 0:
            batch_indices.append((np.zeros((n_p,), np.bool_),
                                  np.zeros((0,), np.int64)))
            continue
        fg = fg_mask_np[i]
        matched_gt_inds = matched_np[i][fg].astype(np.int64)  # compressed, like PyTorch
        batch_indices.append((fg, matched_gt_inds))
    return batch_indices


# -----------------------------------------------------------------------------
if __name__ == "__main__":
    key = jax.random.PRNGKey(0)
    bs, n_p, n_cls = 2, 128, 10
    gt_counts = [8, 5]
    max_gt = max(gt_counts)

    k1, k2, k3, k4, k5, k6, k7 = jax.random.split(key, 7)

    pred_logits = jax.random.normal(k1, (bs, n_p, n_cls), jnp.float32)

    # pred boxes: [cx, cy, cz, log w, log l, log h, sin, cos, vx, vy]
    p_ctr = jax.random.uniform(k2, (bs, n_p, 3), minval=-10.0, maxval=10.0)
    p_logdim = jax.random.uniform(k3, (bs, n_p, 3), minval=-0.3, maxval=1.2)
    p_yaw = jax.random.uniform(k4, (bs, n_p, 1), minval=-np.pi, maxval=np.pi)
    p_vel = jax.random.normal(k5, (bs, n_p, 2), jnp.float32) * 0.1
    pred_boxes = jnp.concatenate(
        [p_ctr, p_logdim, jnp.sin(p_yaw), jnp.cos(p_yaw), p_vel], axis=-1)

    # gt boxes: [cx, cy, cz, w, l, h, rot, vx, vy]
    g_ctr = jax.random.uniform(k6, (bs, max_gt, 3), minval=-10.0, maxval=10.0)
    g_dim = jax.random.uniform(k7, (bs, max_gt, 3), minval=1.0, maxval=4.0)
    g_rot = jax.random.uniform(k1, (bs, max_gt, 1), minval=-np.pi, maxval=np.pi)
    g_vel = jnp.zeros((bs, max_gt, 2), jnp.float32)
    gt_boxes = jnp.concatenate([g_ctr, g_dim, g_rot, g_vel], axis=-1)
    gt_labels = jax.random.randint(k2, (bs, max_gt), 0, n_cls, dtype=jnp.int32)

    gt_boxes_list = [gt_boxes[i, :gt_counts[i]] for i in range(bs)]
    gt_labels_list = [gt_labels[i, :gt_counts[i]] for i in range(bs)]

    results = ddet3d_assigner_forward(pred_logits, pred_boxes,
                                      gt_boxes_list, gt_labels_list)

    for (fg_mask, matched_gt_inds), n_gt in zip(results, gt_counts):
        fg_np = np.asarray(fg_mask)
        matched = np.asarray(matched_gt_inds)
        assert fg_np.shape == (n_p,)
        assert matched.ndim == 1
        assert matched.shape[0] == int(fg_np.sum())
        if matched.size:
            assert matched.min() >= 0 and matched.max() < n_gt

    print("KERNEL_OK")
</pallas_src>

<mosaic_0001>
module attributes {stable_mosaic.version = 11 : i64} {
  func.func private @main(%arg0: i32) attributes {dimension_semantics = [#tpu.dimension_semantics<core_parallel>], iteration_bounds = array<i64: 2>, tpu.core_type = #tpu.core_type<sc_scalar_subcore>, window_params = []} {
    return
  }
}

module attributes {stable_mosaic.version = 11 : i64} {
  func.func private @main(%arg0: i32) attributes {dimension_semantics = [#tpu.dimension_semantics<core_parallel>], iteration_bounds = array<i64: 2>, tpu.core_type = #tpu.core_type<sc_scalar_subcore>, window_params = []} {
    return
  }
}

module attributes {stable_mosaic.version = 11 : i64} {
  func.func @_cost_kernel(%arg0: i32, %arg1: memref<2xi32, #tpu.memory_space<smem>>, %arg2: memref<1x128x10xf32, #tpu.memory_space<vmem>>, %arg3: memref<1x128x10xf32, #tpu.memory_space<vmem>>, %arg4: memref<1x16x128xf32, #tpu.memory_space<vmem>>, %arg5: memref<1x1x128xi32, #tpu.memory_space<vmem>>, %arg6: memref<1x128x128xf32, #tpu.memory_space<vmem>>, %arg7: memref<1x128x128xf32, #tpu.memory_space<vmem>>) attributes {dimension_semantics = [#tpu.dimension_semantics<parallel>], iteration_bounds = array<i64: 2>, scalar_prefetch = 1 : i64, scratch_operands = 0 : i64, tpu.core_type = #tpu.core_type<tc>, window_params = [{transform_indices = @transform_0, window_bounds = array<i64: 1, 128, 10>}, {transform_indices = @transform_1, window_bounds = array<i64: 1, 128, 10>}, {transform_indices = @transform_2, window_bounds = array<i64: 1, 16, 128>}, {transform_indices = @transform_3, window_bounds = array<i64: 1, 1, 128>}, {transform_indices = @transform_4, window_bounds = array<i64: 1, 128, 128>}, {transform_indices = @transform_5, window_bounds = array<i64: 1, 128, 128>}]} {
    %0 = arith.index_cast %arg0 : i32 to index
    %1 = memref.load %arg1[%0] : memref<2xi32, #tpu.memory_space<smem>>
    %c0 = arith.constant 0 : index
    %c0_0 = arith.constant 0 : index
    %c0_1 = arith.constant 0 : index
    %2 = vector.load %arg2[%c0, %c0_0, %c0_1] : memref<1x128x10xf32, #tpu.memory_space<vmem>>, vector<1x128x10xf32>
    %3 = vector.shape_cast %2 : vector<1x128x10xf32> to vector<128x10xf32>
    %c0_2 = arith.constant 0 : index
    %c0_3 = arith.constant 0 : index
    %c0_4 = arith.constant 0 : index
    %4 = vector.load %arg3[%c0_2, %c0_3, %c0_4] : memref<1x128x10xf32, #tpu.memory_space<vmem>>, vector<1x128x10xf32>
    %5 = vector.shape_cast %4 : vector<1x128x10xf32> to vector<128x10xf32>
    %c0_5 = arith.constant 0 : index
    %c0_6 = arith.constant 0 : index
    %c0_7 = arith.constant 0 : index
    %6 = vector.load %arg4[%c0_5, %c0_6, %c0_7] : memref<1x16x128xf32, #tpu.memory_space<vmem>>, vector<1x16x128xf32>
    %7 = vector.shape_cast %6 : vector<1x16x128xf32> to vector<16x128xf32>
    %c0_8 = arith.constant 0 : index
    %c0_9 = arith.constant 0 : index
    %c0_10 = arith.constant 0 : index
    %8 = vector.load %arg5[%c0_8, %c0_9, %c0_10] : memref<1x1x128xi32, #tpu.memory_space<vmem>>, vector<1x1x128xi32>
    %9 = vector.shape_cast %8 : vector<1x1x128xi32> to vector<1x128xi32>
    %10 = tpu.iota {dimensions = array<i32: 1>} : vector<1x128xi32>
    %11 = vector.broadcast %1 : i32 to vector<1x128xi32>
    %12 = arith.cmpi slt, %10, %11 : vector<1x128xi32>
    %cst = arith.constant 0.000000e+00 : f32
    %13 = vector.broadcast %cst : f32 to vector<128x10xf32>
    %14 = arith.subf %13, %3 : vector<128x10xf32>
    %15 = math.exp %14 : vector<128x10xf32>
    %cst_11 = arith.constant 1.000000e+00 : f32
    %16 = vector.broadcast %cst_11 : f32 to vector<128x10xf32>
    %17 = arith.addf %16, %15 : vector<128x10xf32>
    %18 = tpu.reciprocal %17 {approx = true} : vector<128x10xf32> -> vector<128x10xf32>
    %cst_12 = arith.constant 1.000000e+00 : f32
    %19 = vector.broadcast %cst_12 : f32 to vector<128x10xf32>
    %20 = arith.subf %19, %18 : vector<128x10xf32>
    %cst_13 = arith.constant 9.99999996E-13 : f32
    %21 = vector.broadcast %cst_13 : f32 to vector<128x10xf32>
    %22 = arith.addf %20, %21 : vector<128x10xf32>
    %23 = math.log %22 : vector<128x10xf32>
    %cst_14 = arith.constant 0.000000e+00 : f32
    %24 = vector.broadcast %cst_14 : f32 to vector<128x10xf32>
    %25 = arith.subf %24, %23 : vector<128x10xf32>
    %cst_15 = arith.constant 7.500000e-01 : f32
    %26 = vector.broadcast %cst_15 : f32 to vector<128x10xf32>
    %27 = arith.mulf %25, %26 : vector<128x10xf32>
    %28 = arith.mulf %18, %18 : vector<128x10xf32>
    %29 = arith.mulf %27, %28 : vector<128x10xf32>
    %cst_16 = arith.constant 9.99999996E-13 : f32
    %30 = vector.broadcast %cst_16 : f32 to vector<128x10xf32>
    %31 = arith.addf %18, %30 : vector<128x10xf32>
    %32 = math.log %31 : vector<128x10xf32>
    %cst_17 = arith.constant 0.000000e+00 : f32
    %33 = vector.broadcast %cst_17 : f32 to vector<128x10xf32>
    %34 = arith.subf %33, %32 : vector<128x10xf32>
    %cst_18 = arith.constant 2.500000e-01 : f32
    %35 = vector.broadcast %cst_18 : f32 to vector<128x10xf32>
    %36 = arith.mulf %34, %35 : vector<128x10xf32>
    %cst_19 = arith.constant 1.000000e+00 : f32
    %37 = vector.broadcast %cst_19 : f32 to vector<128x10xf32>
    %38 = arith.subf %37, %18 : vector<128x10xf32>
    %cst_20 = arith.constant 1.000000e+00 : f32
    %39 = vector.broadcast %cst_20 : f32 to vector<128x10xf32>
    %40 = arith.subf %39, %18 : vector<128x10xf32>
    %41 = arith.mulf %38, %40 : vector<128x10xf32>
    %42 = arith.mulf %36, %41 : vector<128x10xf32>
    %43 = arith.subf %42, %29 : vector<128x10xf32>
    %44 = tpu.iota {dimensions = array<i32: 0>} : vector<10x128xi32>
    %45 = vector.broadcast %9 : vector<1x128xi32> to vector<10x128xi32>
    %46 = arith.cmpi eq, %44, %45 : vector<10x128xi32>
    %47 = arith.extui %46 : vector<10x128xi1> to vector<10x128xi32>
    %48 = arith.sitofp %47 : vector<10x128xi32> to vector<10x128xf32>
    %cst_21 = arith.constant dense<0.000000e+00> : vector<128x128xf32>
    %49 = tpu.matmul %43, %48, %cst_21 {dimension_numbers = #tpu.dot_dimension_numbers<[1], [0], [0], [1], [0, 0, 1, 1], [], []>} : vector<128x10xf32>, vector<10x128xf32>, vector<128x128xf32> -> vector<128x128xf32>
    %cst_22 = arith.constant 2.000000e+00 : f32
    %50 = vector.broadcast %cst_22 : f32 to vector<128x128xf32>
    %51 = arith.mulf %49, %50 : vector<128x128xf32>
    %52 = vector.extract_strided_slice %7 {offsets = [0, 0], sizes = [1, 128], strides = [1, 1]} : vector<16x128xf32> to vector<1x128xf32>
    %53 = vector.extract_strided_slice %7 {offsets = [1, 0], sizes = [1, 128], strides = [1, 1]} : vector<16x128xf32> to vector<1x128xf32>
    %54 = vector.extract_strided_slice %7 {offsets = [2, 0], sizes = [1, 128], strides = [1, 1]} : vector<16x128xf32> to vector<1x128xf32>
    %55 = vector.extract_strided_slice %7 {offsets = [3, 0], sizes = [1, 128], strides = [1, 1]} : vector<16x128xf32> to vector<1x128xf32>
    %56 = vector.extract_strided_slice %7 {offsets = [4, 0], sizes = [1, 128], strides = [1, 1]} : vector<16x128xf32> to vector<1x128xf32>
    %57 = vector.extract_strided_slice %7 {offsets = [5, 0], sizes = [1, 128], strides = [1, 1]} : vector<16x128xf32> to vector<1x128xf32>
    %58 = vector.extract_strided_slice %7 {offsets = [6, 0], sizes = [1, 128], strides = [1, 1]} : vector<16x128xf32> to vector<1x128xf32>
    %59 = vector.extract_strided_slice %7 {offsets = [7, 0], sizes = [1, 128], strides = [1, 1]} : vector<16x128xf32> to vector<1x128xf32>
    %60 = vector.extract_strided_slice %7 {offsets = [8, 0], sizes = [1, 128], strides = [1, 1]} : vector<16x128xf32> to vector<1x128xf32>
    %61 = vector.extract_strided_slice %7 {offsets = [9, 0], sizes = [1, 128], strides = [1, 1]} : vector<16x128xf32> to vector<1x128xf32>
    %62 = vector.extract_strided_slice %7 {offsets = [10, 0], sizes = [1, 128], strides = [1, 1]} : vector<16x128xf32> to vector<1x128xf32>
    %63 = vector.extract_strided_slice %7 {offsets = [11, 0], sizes = [1, 128], strides = [1, 1]} : vector<16x128xf32> to vector<1x128xf32>
    %64 = vector.extract_strided_slice %7 {offsets = [12, 0], sizes = [1, 128], strides = [1, 1]} : vector<16x128xf32> to vector<1x128xf32>
    %65 = vector.extract_strided_slice %7 {offsets = [13, 0], sizes = [1, 128], strides = [1, 1]} : vector<16x128xf32> to vector<1x128xf32>
    %cst_23 = arith.constant 0.000000e+00 : f32
    %66 = vector.broadcast %cst_23 : f32 to vector<128x128xf32>
    %67 = vector.extract_strided_slice %5 {offsets = [0, 0], sizes = [128, 1], strides = [1, 1]} : vector<128x10xf32> to vector<128x1xf32>
    %68 = vector.broadcast %67 : vector<128x1xf32> to vector<128x128xf32>
    %69 = vector.broadcast %52 : vector<1x128xf32> to vector<128x128xf32>
    %70 = arith.subf %68, %69 : vector<128x128xf32>
    %71 = math.absf %70 : vector<128x128xf32>
    %72 = arith.addf %66, %71 : vector<128x128xf32>
    %73 = vector.extract_strided_slice %5 {offsets = [0, 1], sizes = [128, 1], strides = [1, 1]} : vector<128x10xf32> to vector<128x1xf32>
    %74 = vector.broadcast %73 : vector<128x1xf32> to vector<128x128xf32>
    %75 = vector.broadcast %53 : vector<1x128xf32> to vector<128x128xf32>
    %76 = arith.subf %74, %75 : vector<128x128xf32>
    %77 = math.absf %76 : vector<128x128xf32>
    %78 = arith.addf %72, %77 : vector<128x128xf32>
    %79 = vector.extract_strided_slice %5 {offsets = [0, 2], sizes = [128, 1], strides = [1, 1]} : vector<128x10xf32> to vector<128x1xf32>
    %80 = vector.broadcast %79 : vector<128x1xf32> to vector<128x128xf32>
    %81 = vector.broadcast %54 : vector<1x128xf32> to vector<128x128xf32>
    %82 = arith.subf %80, %81 : vector<128x128xf32>
    %83 = math.absf %82 : vector<128x128xf32>
    %84 = arith.addf %78, %83 : vector<128x128xf32>
    %85 = vector.extract_strided_slice %5 {offsets = [0, 3], sizes = [128, 1], strides = [1, 1]} : vector<128x10xf32> to vector<128x1xf32>
    %86 = vector.broadcast %85 : vector<128x1xf32> to vector<128x128xf32>
    %87 = vector.broadcast %55 : vector<1x128xf32> to vector<128x128xf32>
    %88 = arith.subf %86, %87 : vector<128x128xf32>
    %89 = math.absf %88 : vector<128x128xf32>
    %90 = arith.addf %84, %89 : vector<128x128xf32>
    %91 = vector.extract_strided_slice %5 {offsets = [0, 4], sizes = [128, 1], strides = [1, 1]} : vector<128x10xf32> to vector<128x1xf32>
    %92 = vector.broadcast %91 : vector<128x1xf32> to vector<128x128xf32>
    %93 = vector.broadcast %56 : vector<1x128xf32> to vector<128x128xf32>
    %94 = arith.subf %92, %93 : vector<128x128xf32>
    %95 = math.absf %94 : vector<128x128xf32>
    %96 = arith.addf %90, %95 : vector<128x128xf32>
    %97 = vector.extract_strided_slice %5 {offsets = [0, 5], sizes = [128, 1], strides = [1, 1]} : vector<128x10xf32> to vector<128x1xf32>
    %98 = vector.broadcast %97 : vector<128x1xf32> to vector<128x128xf32>
    %99 = vector.broadcast %57 : vector<1x128xf32> to vector<128x128xf32>
    %100 = arith.subf %98, %99 : vector<128x128xf32>
    %101 = math.absf %100 : vector<128x128xf32>
    %102 = arith.addf %96, %101 : vector<128x128xf32>
    %103 = vector.extract_strided_slice %5 {offsets = [0, 6], sizes = [128, 1], strides = [1, 1]} : vector<128x10xf32> to vector<128x1xf32>
    %104 = vector.broadcast %103 : vector<128x1xf32> to vector<128x128xf32>
    %105 = vector.broadcast %58 : vector<1x128xf32> to vector<128x128xf32>
    %106 = arith.subf %104, %105 : vector<128x128xf32>
    %107 = math.absf %106 : vector<128x128xf32>
    %108 = arith.addf %102, %107 : vector<128x128xf32>
    %109 = vector.extract_strided_slice %5 {offsets = [0, 7], sizes = [128, 1], strides = [1, 1]} : vector<128x10xf32> to vector<128x1xf32>
    %110 = vector.broadcast %109 : vector<128x1xf32> to vector<128x128xf32>
    %111 = vector.broadcast %59 : vector<1x128xf32> to vector<128x128xf32>
    %112 = arith.subf %110, %111 : vector<128x128xf32>
    %113 = math.absf %112 : vector<128x128xf32>
    %114 = arith.addf %108, %113 : vector<128x128xf32>
    %cst_24 = arith.constant 2.500000e-01 : f32
    %115 = vector.broadcast %cst_24 : f32 to vector<128x128xf32>
    %116 = arith.mulf %114, %115 : vector<128x128xf32>
    %117 = vector.extract_strided_slice %5 {offsets = [0, 0], sizes = [128, 1], strides = [1, 1]} : vector<128x10xf32> to vector<128x1xf32>
    %118 = vector.extract_strided_slice %5 {offsets = [0, 1], sizes = [128, 1], strides = [1, 1]} : vector<128x10xf32> to vector<128x1xf32>
    %119 = vector.extract_strided_slice %5 {offsets = [0, 2], sizes = [128, 1], strides = [1, 1]} : vector<128x10xf32> to vector<128x1xf32>
    %120 = vector.extract_strided_slice %5 {offsets = [0, 3], sizes = [128, 1], strides = [1, 1]} : vector<128x10xf32> to vector<128x1xf32>
    %121 = math.exp %120 : vector<128x1xf32>
    %122 = vector.extract_strided_slice %5 {offsets = [0, 4], sizes = [128, 1], strides = [1, 1]} : vector<128x10xf32> to vector<128x1xf32>
    %123 = math.exp %122 : vector<128x1xf32>
    %124 = vector.extract_strided_slice %5 {offsets = [0, 5], sizes = [128, 1], strides = [1, 1]} : vector<128x10xf32> to vector<128x1xf32>
    %125 = math.exp %124 : vector<128x1xf32>
    %cst_25 = arith.constant 5.000000e-01 : f32
    %126 = vector.broadcast %cst_25 : f32 to vector<128x1xf32>
    %127 = arith.mulf %126, %121 : vector<128x1xf32>
    %128 = arith.addf %117, %127 : vector<128x1xf32>
    %cst_26 = arith.constant 5.000000e-01 : f32
    %129 = vector.broadcast %cst_26 : f32 to vector<1x128xf32>
    %130 = arith.mulf %129, %60 : vector<1x128xf32>
    %131 = arith.addf %52, %130 : vector<1x128xf32>
    %132 = vector.broadcast %128 : vector<128x1xf32> to vector<128x128xf32>
    %133 = vector.broadcast %131 : vector<1x128xf32> to vector<128x128xf32>
    %134 = arith.minimumf %132, %133 : vector<128x128xf32>
    %cst_27 = arith.constant 5.000000e-01 : f32
    %135 = vector.broadcast %cst_27 : f32 to vector<128x1xf32>
    %136 = arith.mulf %135, %121 : vector<128x1xf32>
    %137 = arith.subf %117, %136 : vector<128x1xf32>
    %cst_28 = arith.constant 5.000000e-01 : f32
    %138 = vector.broadcast %cst_28 : f32 to vector<1x128xf32>
    %139 = arith.mulf %138, %60 : vector<1x128xf32>
    %140 = arith.subf %52, %139 : vector<1x128xf32>
    %141 = vector.broadcast %137 : vector<128x1xf32> to vector<128x128xf32>
    %142 = vector.broadcast %140 : vector<1x128xf32> to vector<128x128xf32>
    %143 = arith.maximumf %141, %142 : vector<128x128xf32>
    %144 = arith.subf %134, %143 : vector<128x128xf32>
    %cst_29 = arith.constant 0.000000e+00 : f32
    %145 = vector.broadcast %cst_29 : f32 to vector<128x128xf32>
    %146 = arith.maximumf %144, %145 : vector<128x128xf32>
    %cst_30 = arith.constant 5.000000e-01 : f32
    %147 = vector.broadcast %cst_30 : f32 to vector<128x1xf32>
    %148 = arith.mulf %147, %123 : vector<128x1xf32>
    %149 = arith.addf %118, %148 : vector<128x1xf32>
    %cst_31 = arith.constant 5.000000e-01 : f32
    %150 = vector.broadcast %cst_31 : f32 to vector<1x128xf32>
    %151 = arith.mulf %150, %61 : vector<1x128xf32>
    %152 = arith.addf %53, %151 : vector<1x128xf32>
    %153 = vector.broadcast %149 : vector<128x1xf32> to vector<128x128xf32>
    %154 = vector.broadcast %152 : vector<1x128xf32> to vector<128x128xf32>
    %155 = arith.minimumf %153, %154 : vector<128x128xf32>
    %cst_32 = arith.constant 5.000000e-01 : f32
    %156 = vector.broadcast %cst_32 : f32 to vector<128x1xf32>
    %157 = arith.mulf %156, %123 : vector<128x1xf32>
    %158 = arith.subf %118, %157 : vector<128x1xf32>
    %cst_33 = arith.constant 5.000000e-01 : f32
    %159 = vector.broadcast %cst_33 : f32 to vector<1x128xf32>
    %160 = arith.mulf %159, %61 : vector<1x128xf32>
    %161 = arith.subf %53, %160 : vector<1x128xf32>
    %162 = vector.broadcast %158 : vector<128x1xf32> to vector<128x128xf32>
    %163 = vector.broadcast %161 : vector<1x128xf32> to vector<128x128xf32>
    %164 = arith.maximumf %162, %163 : vector<128x128xf32>
    %165 = arith.subf %155, %164 : vector<128x128xf32>
    %cst_34 = arith.constant 0.000000e+00 : f32
    %166 = vector.broadcast %cst_34 : f32 to vector<128x128xf32>
    %167 = arith.maximumf %165, %166 : vector<128x128xf32>
    %cst_35 = arith.constant 5.000000e-01 : f32
    %168 = vector.broadcast %cst_35 : f32 to vector<128x1xf32>
    %169 = arith.mulf %168, %125 : vector<128x1xf32>
    %170 = arith.addf %119, %169 : vector<128x1xf32>
    %cst_36 = arith.constant 5.000000e-01 : f32
    %171 = vector.broadcast %cst_36 : f32 to vector<1x128xf32>
    %172 = arith.mulf %171, %62 : vector<1x128xf32>
    %173 = arith.addf %54, %172 : vector<1x128xf32>
    %174 = vector.broadcast %170 : vector<128x1xf32> to vector<128x128xf32>
    %175 = vector.broadcast %173 : vector<1x128xf32> to vector<128x128xf32>
    %176 = arith.minimumf %174, %175 : vector<128x128xf32>
    %cst_37 = arith.constant 5.000000e-01 : f32
    %177 = vector.broadcast %cst_37 : f32 to vector<128x1xf32>
    %178 = arith.mulf %177, %125 : vector<128x1xf32>
    %179 = arith.subf %119, %178 : vector<128x1xf32>
    %cst_38 = arith.constant 5.000000e-01 : f32
    %180 = vector.broadcast %cst_38 : f32 to vector<1x128xf32>
    %181 = arith.mulf %180, %62 : vector<1x128xf32>
    %182 = arith.subf %54, %181 : vector<1x128xf32>
    %183 = vector.broadcast %179 : vector<128x1xf32> to vector<128x128xf32>
    %184 = vector.broadcast %182 : vector<1x128xf32> to vector<128x128xf32>
    %185 = arith.maximumf %183, %184 : vector<128x128xf32>
    %186 = arith.subf %176, %185 : vector<128x128xf32>
    %cst_39 = arith.constant 0.000000e+00 : f32
    %187 = vector.broadcast %cst_39 : f32 to vector<128x128xf32>
    %188 = arith.maximumf %186, %187 : vector<128x128xf32>
    %189 = arith.mulf %146, %167 : vector<128x128xf32>
    %190 = arith.mulf %189, %188 : vector<128x128xf32>
    %191 = arith.mulf %121, %123 : vector<128x1xf32>
    %192 = arith.mulf %191, %125 : vector<128x1xf32>
    %193 = vector.broadcast %192 : vector<128x1xf32> to vector<128x128xf32>
    %194 = vector.broadcast %65 : vector<1x128xf32> to vector<128x128xf32>
    %195 = arith.addf %193, %194 : vector<128x128xf32>
    %196 = arith.subf %195, %190 : vector<128x128xf32>
    %cst_40 = arith.constant 9.99999993E-9 : f32
    %197 = vector.broadcast %cst_40 : f32 to vector<128x128xf32>
    %198 = arith.maximumf %196, %197 : vector<128x128xf32>
    %199 = tpu.reciprocal %198 {approx = true} : vector<128x128xf32> -> vector<128x128xf32>
    %200 = arith.mulf %190, %199 : vector<128x128xf32>
    %cst_41 = arith.constant 0.000000e+00 : f32
    %201 = vector.shape_cast %12 : vector<1x128xi1> to vector<1x128xi1>
    %202 = vector.broadcast %201 : vector<1x128xi1> to vector<128x128xi1>
    %203 = vector.broadcast %cst_41 : f32 to vector<128x128xf32>
    %204 = arith.select %202, %200, %203 : vector<128x128xi1>, vector<128x128xf32>
    %c0_42 = arith.constant 0 : index
    %c0_43 = arith.constant 0 : index
    %c0_44 = arith.constant 0 : index
    %205 = vector.load %arg7[%c0_42, %c0_43, %c0_44] : memref<1x128x128xf32, #tpu.memory_space<vmem>>, vector<1x128x128xf32>
    %206 = vector.shape_cast %205 : vector<1x128x128xf32> to vector<128x128xf32>
    %207 = vector.shape_cast %204 : vector<128x128xf32> to vector<1x128x128xf32>
    tpu.vector_store %arg7[%c0_42, %c0_43, %c0_44], %207 {strides = array<i32>} : memref<1x128x128xf32, #tpu.memory_space<vmem>>, vector<1x128x128xf32>,
    %cst_45 = arith.constant 0.000000e+00 : f32
    %208 = vector.broadcast %cst_45 : f32 to vector<128x128xf32>
    %209 = arith.subf %208, %204 : vector<128x128xf32>
    %cst_46 = arith.constant 2.000000e+00 : f32
    %210 = vector.broadcast %cst_46 : f32 to vector<128x128xf32>
    %211 = arith.mulf %209, %210 : vector<128x128xf32>
    %cst_47 = arith.constant 5.000000e-01 : f32
    %212 = vector.broadcast %cst_47 : f32 to vector<1x128xf32>
    %213 = arith.mulf %212, %62 : vector<1x128xf32>
    %214 = arith.subf %52, %63 : vector<1x128xf32>
    %215 = vector.broadcast %117 : vector<128x1xf32> to vector<128x128xf32>
    %216 = vector.broadcast %214 : vector<1x128xf32> to vector<128x128xf32>
    %217 = arith.cmpf ogt, %215, %216 : vector<128x128xf32>
    %218 = arith.addf %52, %63 : vector<1x128xf32>
    %219 = vector.broadcast %117 : vector<128x1xf32> to vector<128x128xf32>
    %220 = vector.broadcast %218 : vector<1x128xf32> to vector<128x128xf32>
    %221 = arith.cmpf olt, %219, %220 : vector<128x128xf32>
    %222 = arith.andi %217, %221 : vector<128x128xi1>
    %223 = arith.subf %53, %64 : vector<1x128xf32>
    %224 = vector.broadcast %118 : vector<128x1xf32> to vector<128x128xf32>
    %225 = vector.broadcast %223 : vector<1x128xf32> to vector<128x128xf32>
    %226 = arith.cmpf ogt, %224, %225 : vector<128x128xf32>
    %227 = arith.andi %222, %226 : vector<128x128xi1>
    %228 = arith.addf %53, %64 : vector<1x128xf32>
    %229 = vector.broadcast %118 : vector<128x1xf32> to vector<128x128xf32>
    %230 = vector.broadcast %228 : vector<1x128xf32> to vector<128x128xf32>
    %231 = arith.cmpf olt, %229, %230 : vector<128x128xf32>
    %232 = arith.andi %227, %231 : vector<128x128xi1>
    %233 = arith.subf %54, %213 : vector<1x128xf32>
    %234 = vector.broadcast %119 : vector<128x1xf32> to vector<128x128xf32>
    %235 = vector.broadcast %233 : vector<1x128xf32> to vector<128x128xf32>
    %236 = arith.cmpf ogt, %234, %235 : vector<128x128xf32>
    %237 = arith.andi %232, %236 : vector<128x128xi1>
    %238 = arith.addf %54, %213 : vector<1x128xf32>
    %239 = vector.broadcast %119 : vector<128x1xf32> to vector<128x128xf32>
    %240 = vector.broadcast %238 : vector<1x128xf32> to vector<128x128xf32>
    %241 = arith.cmpf olt, %239, %240 : vector<128x128xf32>
    %242 = arith.andi %237, %241 : vector<128x128xi1>
    %243 = vector.broadcast %12 : vector<1x128xi1> to vector<128x128xi1>
    %244 = arith.andi %242, %243 : vector<128x128xi1>
    %cst_48 = arith.constant 1.500000e+00 : f32
    %245 = vector.broadcast %cst_48 : f32 to vector<1x128xf32>
    %246 = arith.mulf %245, %60 : vector<1x128xf32>
    %247 = arith.subf %52, %246 : vector<1x128xf32>
    %248 = vector.broadcast %117 : vector<128x1xf32> to vector<128x128xf32>
    %249 = vector.broadcast %247 : vector<1x128xf32> to vector<128x128xf32>
    %250 = arith.cmpf ogt, %248, %249 : vector<128x128xf32>
    %cst_49 = arith.constant 1.500000e+00 : f32
    %251 = vector.broadcast %cst_49 : f32 to vector<1x128xf32>
    %252 = arith.mulf %251, %60 : vector<1x128xf32>
    %253 = arith.addf %52, %252 : vector<1x128xf32>
    %254 = vector.broadcast %117 : vector<128x1xf32> to vector<128x128xf32>
    %255 = vector.broadcast %253 : vector<1x128xf32> to vector<128x128xf32>
    %256 = arith.cmpf olt, %254, %255 : vector<128x128xf32>
    %257 = arith.andi %250, %256 : vector<128x128xi1>
    %cst_50 = arith.constant 1.500000e+00 : f32
    %258 = vector.broadcast %cst_50 : f32 to vector<1x128xf32>
    %259 = arith.mulf %258, %61 : vector<1x128xf32>
    %260 = arith.subf %53, %259 : vector<1x128xf32>
    %261 = vector.broadcast %118 : vector<128x1xf32> to vector<128x128xf32>
    %262 = vector.broadcast %260 : vector<1x128xf32> to vector<128x128xf32>
    %263 = arith.cmpf ogt, %261, %262 : vector<128x128xf32>
    %264 = arith.andi %257, %263 : vector<128x128xi1>
    %cst_51 = arith.constant 1.500000e+00 : f32
    %265 = vector.broadcast %cst_51 : f32 to vector<1x128xf32>
    %266 = arith.mulf %265, %61 : vector<1x128xf32>
    %267 = arith.addf %53, %266 : vector<1x128xf32>
    %268 = vector.broadcast %118 : vector<128x1xf32> to vector<128x128xf32>
    %269 = vector.broadcast %267 : vector<1x128xf32> to vector<128x128xf32>
    %270 = arith.cmpf olt, %268, %269 : vector<128x128xf32>
    %271 = arith.andi %264, %270 : vector<128x128xi1>
    %cst_52 = arith.constant 1.500000e+00 : f32
    %272 = vector.broadcast %cst_52 : f32 to vector<1x128xf32>
    %273 = arith.mulf %272, %62 : vector<1x128xf32>
    %274 = arith.subf %54, %273 : vector<1x128xf32>
    %275 = vector.broadcast %119 : vector<128x1xf32> to vector<128x128xf32>
    %276 = vector.broadcast %274 : vector<1x128xf32> to vector<128x128xf32>
    %277 = arith.cmpf ogt, %275, %276 : vector<128x128xf32>
    %278 = arith.andi %271, %277 : vector<128x128xi1>
    %cst_53 = arith.constant 1.500000e+00 : f32
    %279 = vector.broadcast %cst_53 : f32 to vector<1x128xf32>
    %280 = arith.mulf %279, %62 : vector<1x128xf32>
    %281 = arith.addf %54, %280 : vector<1x128xf32>
    %282 = vector.broadcast %119 : vector<128x1xf32> to vector<128x128xf32>
    %283 = vector.broadcast %281 : vector<1x128xf32> to vector<128x128xf32>
    %284 = arith.cmpf olt, %282, %283 : vector<128x128xf32>
    %285 = arith.andi %278, %284 : vector<128x128xi1>
    %286 = vector.broadcast %12 : vector<1x128xi1> to vector<128x128xi1>
    %287 = arith.andi %285, %286 : vector<128x128xi1>
    %288 = arith.ori %244, %287 : vector<128x128xi1>
    %289 = arith.extui %288 : vector<128x128xi1> to vector<128x128xi32>
    %290 = arith.sitofp %289 : vector<128x128xi32> to vector<128x128xf32>
    %cst_54 = arith.constant dense<0xFF800000> : vector<128xf32>
    %291 = vector.multi_reduction <maximumf>, %290, %cst_54 [1] : vector<128x128xf32> to vector<128xf32>
    %292 = vector.shape_cast %291 : vector<128xf32> to vector<128x1xf32>
    %cst_55 = arith.constant 0.000000e+00 : f32
    %293 = vector.broadcast %cst_55 : f32 to vector<128x1xf32>
    %294 = arith.cmpf ogt, %292, %293 : vector<128x1xf32>
    %295 = arith.andi %244, %287 : vector<128x128xi1>
    %296 = arith.addf %51, %116 : vector<128x128xf32>
    %297 = arith.addf %296, %211 : vector<128x128xf32>
    %cst_56 = arith.constant 0.000000e+00 : f32
    %cst_57 = arith.constant 1.000000e+02 : f32
    %298 = vector.broadcast %cst_56 : f32 to vector<128x128xf32>
    %299 = vector.broadcast %cst_57 : f32 to vector<128x128xf32>
    %300 = arith.select %295, %298, %299 : vector<128x128xi1>, vector<128x128xf32>
    %301 = arith.addf %297, %300 : vector<128x128xf32>
    %cst_58 = arith.constant 0.000000e+00 : f32
    %cst_59 = arith.constant 1.000000e+04 : f32
    %302 = vector.broadcast %cst_58 : f32 to vector<128x1xf32>
    %303 = vector.broadcast %cst_59 : f32 to vector<128x1xf32>
    %304 = arith.select %294, %302, %303 : vector<128x1xi1>, vector<128x1xf32>
    %305 = vector.broadcast %304 : vector<128x1xf32> to vector<128x128xf32>
    %306 = arith.addf %301, %305 : vector<128x128xf32>
    %cst_60 = arith.constant 1.000000e+08 : f32
    %307 = vector.shape_cast %12 : vector<1x128xi1> to vector<1x128xi1>
    %308 = vector.broadcast %307 : vector<1x128xi1> to vector<128x128xi1>
    %309 = vector.broadcast %cst_60 : f32 to vector<128x128xf32>
    %310 = arith.select %308, %306, %309 : vector<128x128xi1>, vector<128x128xf32>
    %c0_61 = arith.constant 0 : index
    %c0_62 = arith.constant 0 : index
    %c0_63 = arith.constant 0 : index
    %311 = vector.load %arg6[%c0_61, %c0_62, %c0_63] : memref<1x128x128xf32, #tpu.memory_space<vmem>>, vector<1x128x128xf32>
    %312 = vector.shape_cast %311 : vector<1x128x128xf32> to vector<128x128xf32>
    %313 = vector.shape_cast %310 : vector<128x128xf32> to vector<1x128x128xf32>
    tpu.vector_store %arg6[%c0_61, %c0_62, %c0_63], %313 {strides = array<i32>} : memref<1x128x128xf32, #tpu.memory_space<vmem>>, vector<1x128x128xf32>,
    return
  }
  func.func @transform_0(%arg0: i32, %arg1: memref<2xi32, #tpu.memory_space<smem>>) -> (i32, i32, i32) {
    %c0_i32 = arith.constant 0 : i32
    %c0_i32_0 = arith.constant 0 : i32
    %c0_i32_1 = arith.constant 0 : i32
    return %arg0, %c0_i32, %c0_i32_0 : i32, i32, i32
  }
  func.func @transform_1(%arg0: i32, %arg1: memref<2xi32, #tpu.memory_space<smem>>) -> (i32, i32, i32) {
    %c0_i32 = arith.constant 0 : i32
    %c0_i32_0 = arith.constant 0 : i32
    %c0_i32_1 = arith.constant 0 : i32
    return %arg0, %c0_i32, %c0_i32_0 : i32, i32, i32
  }
  func.func @transform_2(%arg0: i32, %arg1: memref<2xi32, #tpu.memory_space<smem>>) -> (i32, i32, i32) {
    %c0_i32 = arith.constant 0 : i32
    %c0_i32_0 = arith.constant 0 : i32
    %c0_i32_1 = arith.constant 0 : i32
    return %arg0, %c0_i32, %c0_i32_0 : i32, i32, i32
  }
  func.func @transform_3(%arg0: i32, %arg1: memref<2xi32, #tpu.memory_space<smem>>) -> (i32, i32, i32) {
    %c0_i32 = arith.constant 0 : i32
    %c0_i32_0 = arith.constant 0 : i32
    %c0_i32_1 = arith.constant 0 : i32
    return %arg0, %c0_i32, %c0_i32_0 : i32, i32, i32
  }
  func.func @transform_4(%arg0: i32, %arg1: memref<2xi32, #tpu.memory_space<smem>>) -> (i32, i32, i32) {
    %c0_i32 = arith.constant 0 : i32
    %c0_i32_0 = arith.constant 0 : i32
    %c0_i32_1 = arith.constant 0 : i32
    return %arg0, %c0_i32, %c0_i32_0 : i32, i32, i32
  }
  func.func @transform_5(%arg0: i32, %arg1: memref<2xi32, #tpu.memory_space<smem>>) -> (i32, i32, i32) {
    %c0_i32 = arith.constant 0 : i32
    %c0_i32_0 = arith.constant 0 : i32
    %c0_i32_1 = arith.constant 0 : i32
    return %arg0, %c0_i32, %c0_i32_0 : i32, i32, i32
  }
}

</mosaic_0001>

<bundles_post_ra>
// kernel: _assign_batch.1
= control target key start
LH: loop header
LB: loop body
LE: loop exit
PB: predicated region body
PF: predicated region fallthrough
CT: control target
= control target key end

     0   :  { %s8550_s0 = inlined_call_operand.vmem [shape: s32[2], index: 0, kind: input, shape index: {}]   ;;  %s8551_s1 = inlined_call_operand.vmem [shape: f32[2,128,10], index: 1, kind: input, shape index: {}]   ;;  %s8552_s2 = inlined_call_operand.vmem [shape: f32[2,128,10], index: 2, kind: input, shape index: {}]   ;;  %s8553_s3 = inlined_call_operand.vmem [shape: f32[2,16,128], index: 3, kind: input, shape index: {}]   ;;  %s8554_s4 = inlined_call_operand.vmem [shape: s32[2,1,128], index: 4, kind: input, shape index: {}]   ;;  %s8555_s5 = inlined_call_operand.vmem [shape: f32[2,128,128], index: 5, kind: output, shape index: {0}]   ;;  %s8556_s6 = inlined_call_operand.vmem [shape: f32[2,128,128], index: 6, kind: output, shape index: {1}]  }
   0x1   :  { %s12_s23 = sshll.u32 %s8550_s0, 4  ;;  %s13_s23 = int_to_ptr.vmem [resolvable:$true] %s12_s23 }
   0x2   :  { %s4214_s24 = scalar_lea.vmem %s13_s23, 16  ;;  %p4219_p1 = scmp.lt.s32.totalorder %s13_s23, %s13_s23 }
   0x3   :  { %p4215_p0 = scmp.ne.s32.totalorder %s13_s23, %s4214_s24  ;;  %p4220_p2 = scmp.lt.s32.totalorder %s4214_s24, %s4214_s24 }
   0x5   :  { %p4221_p3 = por %p4220_p2, %p4219_p1 }
   0x7   :  { %p4222_p4 = pnand %p4221_p3, %p4215_p0 }
   0x9   :  { %4225 = shalt.err (!%p4222_p4)  }
   0xa   :  { %s4236_s25 = smov [#allocation3]  }
   0xb   :  { %15 = dma.vmem_to_smem %s13_s23, 16, %s4236_s25, [#allocation2] }
   0xc   :  { %4230 = dma.done.wait [#allocation2], 16 }
   0xd   :  { %4231 = vsyncadd [#allocation2], 4294967280 }
   0xe   :  { %17 = sfence }
   0xf   :  { %s4290_s26 = smov 0  }
  0x10 LB: > { %s4296_s0 = sadd.s32 4294967295, %s4234_s26   ;;  %p3844_p5 = scmp.ge.s32.totalorder %s4234_s26, 1  ;;  %s4234_s26 = sphi %s4290_s26, %s23_s26  }
  0x11   : > { %p225_p6 = scmp.lt.s32.totalorder %s4234_s26, 3 }
  0x13   : > { %p226_p7 = pnand %p3844_p5, %p225_p6 }
  0x15   : > { %229 = sbr.rel (%p226_p7) target bundleno = 1166 (0x48e), region = 36 }
  0x1c   : > { %p271_p8 = scmp.lt.s32.totalorder %s4296_s0, 1  ;;  %v4237_v0 = vmov 4   ;;  %v8565_v1 = vmov 0   ;;  %v8568_v28 = vlaneseq  ;;  %v4239_v42 = vmov 5   ;;  %s4247_s14 = smov 125  }
  0x1d   : > { %3982 = vset.pattern.permute.xlu0 %v4237_v0  ;;  %3977 = vset.pattern.permute.xlu1 %v8565_v1  ;;  %v8557_v43 = vmov 0.0   ;;  %vm737_vm2 = vcmask 1041408   ;;  %v4241_v45 = vmov 1.0   ;;  %v8563_v49 = vmov 1   ;;  %s4631_s19 = sld [smem:[#allocation3 + %s4296_s0]]  ;;  %s4248_s20 = smov 127  }
  0x1e   : > { %s4304_s27 = scalar_select %p271_p8, %s4296_s0, 1  ;;  %v4382_v37 = vshrl.u32 %v8568_v28, 7  ;;  %vm688_vm4 = vcmask 80896  }
  0x1f   : > { %s4249_s21 = smov 126  }
  0x20   : > { %s4307_s28 = sshll.u32 %s4304_s27, 7  ;;  %8826 = vst [vmem:[#allocation5_spill] sm:$0xff] %v4382_v37  ;;  %s288_s13 = scalar_lea.vmem %s8554_s4, %s4304_s27  ;;  %v677_v40 = vadd.s32 8, %v4382_v37 }
  0x21   : > { %s4313_s7 = scalar_lea.vmem %s8552_s2, %s4307_s28  ;;  %s4333_s10 = scalar_lea.vmem %s8551_s1, %s4307_s28  ;;  %v3855_v41 = vld [vmem:[%s288_s13] ss:$0 sm:$0xff] }
  0x22   : > { %v4316_v2 = vld [vmem:[%s4313_s7 + $0x10] sm:$0xff]  ;;  %v4319_v3 = vld [vmem:[%s4313_s7 + $0x8] sm:$0xff]  ;;  %v4324_v4 = vld [vmem:[%s4313_s7 + $0x18] sm:$0xff]  ;;  %vm683_vm0 = vcmp.eq.s32.totalorder %v677_v40, %v3855_v41  ;;  %vm682_vm1 = vcmp.eq.s32.totalorder %v4382_v37, %v3855_v41  ;;  %s3896_s15 = sshll.u32 %s4304_s27, 4  ;;  %s8121_s24 = scalar_lea.vmem %s8556_s6, %s4307_s28 }
  0x23   : > { %914 = vperm.xlu1 %3977, %v4316_v2   ;;  %1387 = vperm.xlu0 %3982, %v4319_v3   ;;  %v4327_v5 = vld [vmem:[%s4313_s7 + $0x20] sm:$0xff]  ;;  %v4338_v6 = vld [vmem:[%s4313_s7 + $0x28] sm:$0xff]  ;;  %v4341_v7 = vld [vmem:[%s4313_s7 + $0x30] sm:$0xff]  ;;  %v3857_v44 = vsel %vm683_vm0, 1.0, %v8557_v43  ;;  %s4570_s18 = scalar_lea.vmem %s8553_s3, %s3896_s15  ;;  %s8466_s27 = scalar_lea.vmem %s8555_s5, %s4307_s28 }
  0x24   : > { %v300_v8 = vld [vmem:[%s4333_s10] sm:$0xff]  ;;  %v301_v10 = vld [vmem:[%s4333_s10 + $0x8] sm:$0xff]  ;;  %v302_v11 = vld [vmem:[%s4333_s10 + $0x10] sm:$0xff]  ;;  %v3945_v46 = vpack.c.bf16 %v3857_v44, %v4241_v45 }
  0x25   : > { %v339_v9 = vsub.f32 0.0, %v300_v8  ;;  %v303_v12 = vld [vmem:[%s4333_s10 + $0x18] sm:$0xff]  ;;  %v340_v13 = vsub.f32 0.0, %v301_v10  ;;  %v341_v14 = vsub.f32 0.0, %v302_v11  ;;  %v4353_v21 = vld [vmem:[%s4313_s7 + $0x40] sm:$0xff]  ;;  %v4358_v22 = vld [vmem:[%s4313_s7 + $0x48] sm:$0xff] }
  0x26   : > { %v342_v15 = vsub.f32 0.0, %v303_v12  ;;  %v4350_v20 = vld [vmem:[%s4313_s7 + $0x38] sm:$0xff]  ;;  %v4361_v23 = vld [vmem:[%s4313_s7 + $0x50] sm:$0xff]  ;;  %v4369_v25 = vld [vmem:[%s4313_s7 + $0x60] sm:$0xff] }
  0x27   : > { %919 = vperm.xlu1 %3977, %v4324_v4   ;;  %1399 = vperm.xlu0 %3982, %v4327_v5   ;;  %v355_v16 = vmul.f32 1.442695, %v339_v9  ;;  %v357_v17 = vmul.f32 1.442695, %v340_v13  ;;  %v359_v18 = vmul.f32 1.442695, %v341_v14  ;;  %vm4400_vm3 = vmpackc.low %vm737_vm2, %vm682_vm1 }
  0x28   : > { %v361_v19 = vmul.f32 1.442695, %v342_v15  ;;  %v4366_v24 = vld [vmem:[%s4313_s7 + $0x58] sm:$0xff]  ;;  %v4374_v31 = vld [vmem:[%s4313_s7 + $0x68] sm:$0xff]  ;;  %v4377_v32 = vld [vmem:[%s4313_s7 + $0x70] sm:$0xff]  ;;  %3947 = vmatprep.subr.msk.bf16.mxu0 %vm4400_vm3, %v3945_v46  ;;  %3951 = vmatprep.subr.msk.bf16.mxu1 %vm4400_vm3, %v3945_v46 }
  0x29   : > { %3997 = vpow2.f32 %v355_v16  ;;  %v4385_v38 = vld [vmem:[%s4313_s7 + $0x78] sm:$0xff]  ;;  %v4388_v39 = vld [vmem:[%s4313_s7] sm:$0xff]  ;;  %3950 = vmatpush3.bf16.msk.msra.mxu0 %vm4400_vm3, %v3945_v46  ;;  %3952 = vmatpush3.bf16.msk.msra.mxu1 %vm4400_vm3, %v3945_v46 }
  0x2a   : > { %3999 = vpow2.f32 %v357_v17 }
  0x2b   : > { %929 = vperm.xlu1 %3977, %v4338_v6   ;;  %1407 = vperm.xlu0 %3982, %v4341_v7   ;;  %4001 = vpow2.f32 %v359_v18 }
  0x2c   : > { %4003 = vpow2.f32 %v361_v19 }
  0x2f   : > { %939 = vperm.xlu1 %3977, %v4350_v20   ;;  %1415 = vperm.xlu0 %3982, %v4353_v21  }
  0x33   : > { %949 = vperm.xlu1 %3977, %v4358_v22   ;;  %1423 = vperm.xlu0 %3982, %v4361_v23   ;;  %v3998_v26 = vpop.eup %3997 }
  0x34   : > { %v4000_v27 = vpop.eup %3999  ;;  %v387_v29 = vadd.f32 1.0, %v3998_v26 }
  0x35   : > { %v4002_v30 = vpop.eup %4001  ;;  %v388_v33 = vadd.f32 1.0, %v4000_v27 }
  0x36   : > { %v4004_v34 = vpop.eup %4003  ;;  %4005 = vrcp.f32 %v387_v29  ;;  %v389_v35 = vadd.f32 1.0, %v4002_v30 }
  0x37   : > { %959 = vperm.xlu1 %3977, %v4366_v24   ;;  %1431 = vperm.xlu0 %3982, %v4369_v25   ;;  %4007 = vrcp.f32 %v388_v33  ;;  %v390_v36 = vadd.f32 1.0, %v4004_v34 }
  0x38   : > { %4009 = vrcp.f32 %v389_v35 }
  0x39   : > { %4011 = vrcp.f32 %v390_v36 }
  0x3b   : > { %969 = vperm.xlu1 %3977, %v4374_v31   ;;  %1439 = vperm.xlu0 %3982, %v4377_v32  }
  0x3f   : > { %979 = vperm.xlu1 %3977, %v4385_v38   ;;  %3983 = vset.pattern.permute.xlu0 %v4239_v42 }
  0x40   : > { %1499 = vperm.xlu0 %3983, %v4388_v39   ;;  %v4006_v48 = vpop.eup %4005 }
  0x41   : > { %v4008_v50 = vpop.eup %4007  ;;  %v419_v51 = vsub.f32 1.0, %v4006_v48  ;;  %v547_v52 = vadd.f32 1e-12, %v4006_v48  ;;  %v515_v13 = vmul.f32 %v4006_v48, %v4006_v48 }
  0x42   : > { %v4010_v53 = vpop.eup %4009  ;;  %v420_v54 = vsub.f32 1.0, %v4008_v50  ;;  %v548_v55 = vadd.f32 1e-12, %v4008_v50  ;;  %v516_v27 = vmul.f32 %v4008_v50, %v4008_v50 }
  0x43   : > { %3978 = vset.pattern.permute.xlu1 %v8563_v49  ;;  %v4413_v56 = vpop.eup %4011  ;;  %v435_v57 = vadd.f32 1e-12, %v419_v51  ;;  %4013 = vlog2.f32 %v547_v52  ;;  %v421_v58 = vsub.f32 1.0, %v4010_v53  ;;  %v549_v61 = vadd.f32 1e-12, %v4010_v53 }
  0x44   : > { %1039 = vperm.xlu1 %3978, %v4319_v3   ;;  %1511 = vperm.xlu0 %3983, %v4324_v4   ;;  %v436_v59 = vadd.f32 1e-12, %v420_v54  ;;  %4015 = vlog2.f32 %v548_v55  ;;  %v422_v62 = vsub.f32 1.0, %v4413_v56  ;;  %v550_v63 = vadd.f32 1e-12, %v4413_v56 }
  0x45   : > { %4017 = vlog2.f32 %v435_v57  ;;  %v437_v60 = vadd.f32 1e-12, %v421_v58  ;;  %v627_v18 = vmul.f32 %v419_v51, %v419_v51  ;;  %v628_v30 = vmul.f32 %v420_v54, %v420_v54 }
  0x46   : > { %4019 = vlog2.f32 %v436_v59  ;;  %v438_v8 = vadd.f32 1e-12, %v422_v62  ;;  %v517_v40 = vmul.f32 %v4010_v53, %v4010_v53  ;;  %v629_v47 = vmul.f32 %v421_v58, %v421_v58 }
  0x47   : > { %4021 = vlog2.f32 %v437_v60 }
  0x48   : > { %1043 = vperm.xlu1 %3978, %v4316_v2   ;;  %1519 = vperm.xlu0 %3983, %v4338_v6   ;;  %4023 = vlog2.f32 %v549_v61 }
  0x49   : > { %4025 = vlog2.f32 %v550_v63 }
  0x4a   : > { %4027 = vlog2.f32 %v438_v8  ;;  %v630_v8 = vmul.f32 %v422_v62, %v422_v62 }
  0x4c   : > { %1051 = vperm.xlu1 %3978, %v4327_v5   ;;  %1527 = vperm.xlu0 %3983, %v4350_v20  }
  0x4d   : > { %v4014_v9 = vpop.eup %4013 }
  0x4e   : > { %v4016_v10 = vpop.eup %4015  ;;  %v564_v11 = vmul.f32 0.6931472, %v4014_v9 }
  0x4f   : > { %v4018_v12 = vpop.eup %4017  ;;  %v566_v14 = vmul.f32 0.6931472, %v4016_v10 }
  0x50   : > { %1059 = vperm.xlu1 %3978, %v4341_v7   ;;  %1535 = vperm.xlu0 %3983, %v4358_v22   ;;  %v4020_v15 = vpop.eup %4019  ;;  %v452_v16 = vmul.f32 0.6931472, %v4018_v12  ;;  %v595_v17 = vsub.f32 0.0, %v564_v11  ;;  %v518_v11 = vmul.f32 %v4413_v56, %v4413_v56  ;;  %v8567_v56 = vmov 6  }
  0x51   : > { %v4022_v19 = vpop.eup %4021  ;;  %v454_v26 = vmul.f32 0.6931472, %v4020_v15  ;;  %v596_v29 = vsub.f32 0.0, %v566_v14 }
  0x52   : > { %v4024_v33 = vpop.eup %4023  ;;  %v483_v34 = vsub.f32 0.0, %v452_v16  ;;  %v611_v35 = vmul.f32 0.25, %v595_v17  ;;  %v456_v36 = vmul.f32 0.6931472, %v4022_v19 }
  0x53   : > { %v4026_v41 = vpop.eup %4025  ;;  %v484_v44 = vsub.f32 0.0, %v454_v26  ;;  %v612_v45 = vmul.f32 0.25, %v596_v29  ;;  %v568_v46 = vmul.f32 0.6931472, %v4024_v33  ;;  %v8566_v29 = vmov 7  }
  0x54   : > { %1067 = vperm.xlu1 %3978, %v4353_v21   ;;  %1543 = vperm.xlu0 %3983, %v4366_v24   ;;  %v4028_v48 = vpop.eup %4027  ;;  %v499_v51 = vmul.f32 0.75, %v483_v34  ;;  %v643_v52 = vmul.f32 %v627_v18, %v611_v35  ;;  %v485_v55 = vsub.f32 0.0, %v456_v36  ;;  %v570_v57 = vmul.f32 0.6931472, %v4026_v41 }
  0x55   : > { %v500_v50 = vmul.f32 0.75, %v484_v44  ;;  %v644_v54 = vmul.f32 %v628_v30, %v612_v45  ;;  %v597_v59 = vsub.f32 0.0, %v568_v46  ;;  %v458_v60 = vmul.f32 0.6931472, %v4028_v48 }
  0x56   : > { %v531_v61 = vmul.f32 %v515_v13, %v499_v51  ;;  %v501_v53 = vmul.f32 0.75, %v485_v55  ;;  %v598_v63 = vsub.f32 0.0, %v570_v57  ;;  %v8559_v30 = vmov 3  }
  0x57   : > { %v532_v9 = vmul.f32 %v516_v27, %v500_v50  ;;  %v613_v10 = vmul.f32 0.25, %v597_v59  ;;  %v486_v58 = vsub.f32 0.0, %v458_v60  ;;  %v8561_v27 = vmov 2  }
  0x58   : > { %1075 = vperm.xlu1 %3978, %v4361_v23   ;;  %1551 = vperm.xlu0 %3983, %v4374_v31   ;;  %v659_v12 = vsub.f32 %v643_v52, %v531_v61  ;;  %v533_v14 = vmul.f32 %v517_v40, %v501_v53  ;;  %v614_v15 = vmul.f32 0.25, %v598_v63  ;;  %v1864_v44 = vmul.f32 1.442695, %v4319_v3 }
  0x59   : > { %v660_v16 = vsub.f32 %v644_v54, %v532_v9  ;;  %v645_v17 = vmul.f32 %v629_v47, %v613_v10  ;;  %v502_v18 = vmul.f32 0.75, %v486_v58  ;;  %v1868_v47 = vmul.f32 1.442695, %v4324_v4 }
  0x5a   : > { %3921 = vmatprep.mubr.msk.f32.mxu0 %vm688_vm4, %v659_v12  ;;  %v646_v13 = vmul.f32 %v630_v8, %v614_v15  ;;  %4029 = vpow2.f32 %v1864_v44  ;;  %v1872_v51 = vmul.f32 1.442695, %v4338_v6  ;;  %v1876_v57 = vmul.f32 1.442695, %v4350_v20 }
  0x5b   : > { %3922 = vmatmul.mubr.msk.f32.vlgmr.msra.gmra.mrb[0].mxu0 %vm688_vm4, %v660_v16  ;;  %v661_v62 = vsub.f32 %v645_v17, %v533_v14  ;;  %v534_v19 = vmul.f32 %v518_v11, %v502_v18  ;;  %4031 = vpow2.f32 %v1868_v47  ;;  %v1880_v60 = vmul.f32 1.442695, %v4358_v22 }
  0x5c   : > { %1083 = vperm.xlu1 %3978, %v4369_v25   ;;  %1559 = vperm.xlu0 %3983, %v4385_v38   ;;  %4033 = vpow2.f32 %v1872_v51  ;;  %v1884_v8 = vmul.f32 1.442695, %v4366_v24  ;;  %v1888_v11 = vmul.f32 1.442695, %v4374_v31  ;;  %v1892_v17 = vmul.f32 1.442695, %v4385_v38 }
  0x5d   : > { %v662_v26 = vsub.f32 %v646_v13, %v534_v19  ;;  %3924 = vmatprep.mubr.msk.f32.mxu0 %vm688_vm4, %v661_v62  ;;  %4035 = vpow2.f32 %v1876_v57 }
  0x5e   : > { %4037 = vpow2.f32 %v1880_v60 }
  0x5f   : > { %3925 = vmatmul.mubr.msk.f32.gmra.mrb[2].mxu0 %vm688_vm4, %v662_v26  ;;  %4039 = vpow2.f32 %v1884_v8 }
  0x60   : > { %1091 = vperm.xlu1 %3978, %v4377_v32   ;;  %3986 = vset.pattern.permute.xlu0 %v8567_v56  ;;  %4041 = vpow2.f32 %v1888_v11 }
  0x61   : > { %1619 = vperm.xlu0 %3986, %v4319_v3   ;;  %4043 = vpow2.f32 %v1892_v17 }
  0x64   : > { %3979 = vset.pattern.permute.xlu1 %v8561_v27  ;;  %v4515_v50 = vpop.eup %4029 }
  0x65   : > { %1631 = vperm.xlu0 %3986, %v4327_v5   ;;  %1151 = vperm.xlu1 %3979, %v4388_v39   ;;  %8840 = vst [vmem:[#allocation17_spill] sm:$0xff] %v4515_v50  ;;  %v1895_v61 = vmul.f32 0.5, %v4515_v50  ;;  %v4525_v53 = vpop.eup %4031 }
  0x66   : > { %8843 = vst [vmem:[#allocation20_spill] sm:$0xff] %v4525_v53  ;;  %v1897_v10 = vmul.f32 0.5, %v4525_v53  ;;  %v4535_v58 = vpop.eup %4033  ;;  %v5229_v53 = vld [vmem:[%s4313_s7 + $0x40] sm:$0xff] }
  0x67   : > { %8846 = vst [vmem:[#allocation23_spill] sm:$0xff] %v4535_v58  ;;  %v1899_v15 = vmul.f32 0.5, %v4535_v58  ;;  %v4545_v16 = vpop.eup %4035 }
  0x68   : > { %8849 = vst [vmem:[#allocation26_spill] sm:$0xff] %v4545_v16  ;;  %v1901_v62 = vmul.f32 0.5, %v4545_v16  ;;  %v4555_v19 = vpop.eup %4037 }
  0x69   : > { %1639 = vperm.xlu0 %3986, %v4341_v7   ;;  %1159 = vperm.xlu1 %3979, %v4316_v2   ;;  %8851 = vst [vmem:[#allocation28_spill] sm:$0xff] %v4555_v19  ;;  %v1903_v47 = vmul.f32 0.5, %v4555_v19  ;;  %v4565_v51 = vpop.eup %4039 }
  0x6a   : > { %8854 = vst [vmem:[#allocation31_spill] sm:$0xff] %v4565_v51  ;;  %v4579_v8 = vpop.eup %4041 }
  0x6b   : > { %8857 = vst [vmem:[#allocation34_spill] sm:$0xff] %v4579_v8  ;;  %v1907_v17 = vmul.f32 0.5, %v4579_v8  ;;  %v8882_v8 = vmov 0 }
  0x6d   : > { %1647 = vperm.xlu0 %3986, %v4353_v21   ;;  %1163 = vperm.xlu1 %3979, %v4324_v4  }
  0x71   : > { %1655 = vperm.xlu0 %3986, %v4361_v23   ;;  %1171 = vperm.xlu1 %3979, %v4338_v6  }
  0x75   : > { %1663 = vperm.xlu0 %3986, %v4369_v25   ;;  %1179 = vperm.xlu1 %3979, %v4350_v20  }
  0x79   : > { %1671 = vperm.xlu0 %3986, %v4377_v32   ;;  %1187 = vperm.xlu1 %3979, %v4358_v22  }
  0x7d   : > { %3987 = vset.pattern.permute.xlu0 %v8566_v29  ;;  %1195 = vperm.xlu1 %3979, %v4366_v24  }
  0x7e   : > { %1731 = vperm.xlu0 %3987, %v4388_v39  }
  0x81   : > { %1203 = vperm.xlu1 %3979, %v4374_v31  }
  0x82   : > { %1743 = vperm.xlu0 %3987, %v4324_v4  }
  0x85   : > { %1211 = vperm.xlu1 %3979, %v4385_v38  }
  0x86   : > { %1751 = vperm.xlu0 %3987, %v4338_v6  }
  0x89   : > { %3980 = vset.pattern.permute.xlu1 %v8559_v30 }
  0x8a   : > { %1759 = vperm.xlu0 %3987, %v4350_v20   ;;  %1271 = vperm.xlu1 %3980, %v4319_v3  }
  0x8e   : > { %1767 = vperm.xlu0 %3987, %v4358_v22   ;;  %1275 = vperm.xlu1 %3980, %v4316_v2  }
  0x92   : > { %1775 = vperm.xlu0 %3987, %v4366_v24   ;;  %1283 = vperm.xlu1 %3980, %v4327_v5  }
  0x96   : > { %1783 = vperm.xlu0 %3987, %v4374_v31   ;;  %1291 = vperm.xlu1 %3980, %v4341_v7  }
  0x9a   : > { %1791 = vperm.xlu0 %3987, %v4385_v38   ;;  %1299 = vperm.xlu1 %3980, %v4353_v21  }
  0x9e   : > { %3989 = vset.pattern.permute.xlu0 %v8565_v1  ;;  %1307 = vperm.xlu1 %3980, %v4361_v23  }
  0x9f   : > { %904 = vperm.xlu0 %3989, %v4388_v39  }
  0xa2   : > { %v4474_v33 = vpop.permute.xlu1 %914  ;;  %1315 = vperm.xlu1 %3980, %v4369_v25   ;;  %v4477_v34 = vpop.permute.xlu0 %1387 }
  0xa3   : > { %8829 = vst [vmem:[#allocation6_spill] sm:$0xff] %v4477_v34  ;;  %909 = vperm.xlu0 %3989, %v4319_v3  }
  0xa6   : > { %v4480_v35 = vpop.permute.xlu1 %919  ;;  %1323 = vperm.xlu1 %3980, %v4377_v32   ;;  %v4483_v36 = vpop.permute.xlu0 %1399 }
  0xa7   : > { %8830 = vst [vmem:[#allocation7_spill] sm:$0xff] %v4480_v35  ;;  %8831 = vst [vmem:[#allocation8_spill] sm:$0xff] %v4483_v36  ;;  %924 = vperm.xlu0 %3989, %v4327_v5  }
  0xaa   : > { %v4486_v40 = vpop.permute.xlu1 %929  ;;  %3981 = vset.pattern.permute.xlu1 %v4237_v0  ;;  %v4489_v41 = vpop.permute.xlu0 %1407 }
  0xab   : > { %8832 = vst [vmem:[#allocation9_spill] sm:$0xff] %v4486_v40  ;;  %8833 = vst [vmem:[#allocation10_spill] sm:$0xff] %v4489_v41  ;;  %934 = vperm.xlu0 %3989, %v4341_v7   ;;  %1383 = vperm.xlu1 %3981, %v4388_v39  }
  0xae   : > { %v4494_v45 = vpop.permute.xlu1 %939  ;;  %v4496_v46 = vpop.permute.xlu0 %1415 }
  0xaf   : > { %8834 = vst [vmem:[#allocation11_spill] sm:$0xff] %v4494_v45  ;;  %8835 = vst [vmem:[#allocation12_spill] sm:$0xff] %v4496_v46  ;;  %944 = vperm.xlu0 %3989, %v4353_v21   ;;  %1391 = vperm.xlu1 %3981, %v4316_v2   ;;  %v315_v46 = vld [vmem:[%s4333_s10 + $0x78] sm:$0xff] }
  0xb2   : > { %v4501_v0 = vpop.permute.xlu1 %949  ;;  %v4503_v48 = vpop.permute.xlu0 %1423 }
  0xb3   : > { %8836 = vst [vmem:[#allocation13_spill] sm:$0xff] %v4501_v0  ;;  %8837 = vst [vmem:[#allocation14_spill] sm:$0xff] %v4503_v48  ;;  %954 = vperm.xlu0 %3989, %v4361_v23   ;;  %1395 = vperm.xlu1 %3981, %v4324_v4  }
  0xb6   : > { %v4508_v52 = vpop.permute.xlu1 %959  ;;  %v4510_v55 = vpop.permute.xlu0 %1431 }
  0xb7   : > { %8838 = vst [vmem:[#allocation15_spill] sm:$0xff] %v4508_v52  ;;  %8839 = vst [vmem:[#allocation16_spill] sm:$0xff] %v4510_v55  ;;  %964 = vperm.xlu0 %3989, %v4369_v25   ;;  %1403 = vperm.xlu1 %3981, %v4338_v6  }
  0xba   : > { %v4517_v54 = vpop.permute.xlu1 %969  ;;  %v4519_v59 = vpop.permute.xlu0 %1439 }
  0xbb   : > { %8841 = vst [vmem:[#allocation18_spill] sm:$0xff] %v4517_v54  ;;  %8842 = vst [vmem:[#allocation19_spill] sm:$0xff] %v4519_v59  ;;  %974 = vperm.xlu0 %3989, %v4377_v32   ;;  %1411 = vperm.xlu1 %3981, %v4350_v20  }
  0xbe   : > { %v4527_v63 = vpop.permute.xlu1 %979 }
  0xbf   : > { %8844 = vst [vmem:[#allocation21_spill] sm:$0xff] %v4527_v63  ;;  %1419 = vperm.xlu1 %3981, %v4358_v22   ;;  %v4531_v9 = vpop.permute.xlu0 %1499  ;;  %1928 = vrot.lane.b32.xlu0 %v1895_v61, %s4247_s14  ;;  %v1905_v61 = vmul.f32 0.5, %v4565_v51 }
  0xc0   : > { %8845 = vst [vmem:[#allocation22_spill] sm:$0xff] %v4531_v9 }
  0xc3   : > { %v4538_v12 = vpop.permute.xlu1 %1039  ;;  %1427 = vperm.xlu1 %3981, %v4366_v24   ;;  %v4541_v14 = vpop.permute.xlu0 %1511  ;;  %1932 = vrot.lane.b32.xlu0 %v1897_v10, %s4247_s14  ;;  %v333_v10 = vld [vmem:[%s4570_s18 + $0x8] sm:$0xff] }
  0xc4   : > { %8847 = vst [vmem:[#allocation24_spill] sm:$0xff] %v4538_v12  ;;  %8848 = vst [vmem:[#allocation25_spill] sm:$0xff] %v4541_v14  ;;  %v3260_v43 = vmul.f32 1.5, %v333_v10  ;;  %v8897_v12 = vmov 0 }
  0xc7   : > { %v4548_v18 = vpop.permute.xlu1 %1043  ;;  %1435 = vperm.xlu1 %3981, %v4374_v31   ;;  %v4551_v13 = vpop.permute.xlu0 %1519  ;;  %1936 = vrot.lane.b32.xlu0 %v1899_v15, %s4247_s14 }
  0xc8   : > { %8850 = vst [vmem:[#allocation27_spill] sm:$0xff] %v4551_v13 }
  0xcb   : > { %v4558_v26 = vpop.permute.xlu1 %1051  ;;  %1443 = vperm.xlu1 %3981, %v4385_v38   ;;  %v4561_v44 = vpop.permute.xlu0 %1527  ;;  %1940 = vrot.lane.b32.xlu0 %v1901_v62, %s4247_s14  ;;  %v3048_v62 = vrot.slane %v333_v10, 3 }
  0xcc   : > { %8852 = vst [vmem:[#allocation29_spill] sm:$0xff] %v4558_v26  ;;  %8853 = vst [vmem:[#allocation30_spill] sm:$0xff] %v4561_v44 }
  0xcf   : > { %v4572_v57 = vpop.permute.xlu1 %1059  ;;  %3984 = vset.pattern.permute.xlu1 %v4239_v42  ;;  %v4575_v60 = vpop.permute.xlu0 %1535  ;;  %1944 = vrot.lane.b32.xlu0 %v1903_v47, %s4247_s14  ;;  %v4593_v47 = vld [vmem:[%s4570_s18] sm:$0xff] }
  0xd0   : > { %8855 = vst [vmem:[#allocation32_spill] sm:$0xff] %v4572_v57  ;;  %8856 = vst [vmem:[#allocation33_spill] sm:$0xff] %v4575_v60  ;;  %1503 = vperm.xlu1 %3984, %v4319_v3   ;;  %v4589_v42 = vpop.eup %4043  ;;  %v3050_v1 = vsub.f32 %v4593_v47, %v3048_v62  ;;  %v3071_v29 = vadd.f32 %v3048_v62, %v4593_v47  ;;  %v3261_v56 = vsub.f32 %v4593_v47, %v3260_v43 }
  0xd1   : > { %8860 = vst [vmem:[#allocation37_spill] sm:$0xff] %v4589_v42  ;;  %v1909_v49 = vmul.f32 0.5, %v4589_v42  ;;  %v3282_v28 = vadd.f32 %v3260_v43, %v4593_v47 }
  0xd3   : > { %v4583_v11 = vpop.permute.xlu1 %1067  ;;  %v4585_v15 = vpop.permute.xlu0 %1543  ;;  %1948 = vrot.lane.b32.xlu0 %v1905_v61, %s4247_s14  ;;  %v4603_v61 = vsub.s32 0, %v4382_v37 }
  0xd4   : > { %8858 = vst [vmem:[#allocation35_spill] sm:$0xff] %v4583_v11  ;;  %8859 = vst [vmem:[#allocation36_spill] sm:$0xff] %v4585_v15  ;;  %1507 = vperm.xlu1 %3984, %v4316_v2  }
  0xd5   : > { %8863 = vst [vmem:[#allocation40_spill] sm:$0xff] %v4603_v61  ;;  %v4619_v60 = vrot.slane %v3050_v1, %v4603_v61  ;;  %v4622_v62 = vrot.slane %v3071_v29, %v4603_v61  ;;  %v4625_v44 = vrot.slane %v3261_v56, %v4603_v61  ;;  %v4628_v43 = vrot.slane %v3282_v28, %v4603_v61 }
  0xd7   : > { %v4595_v30 = vpop.permute.xlu1 %1075  ;;  %v4597_v27 = vpop.permute.xlu0 %1551  ;;  %1952 = vrot.lane.b32.xlu0 %v1907_v17, %s4247_s14  ;;  %v4615_v17 = vsub.s32 1, %v4382_v37  ;;  %vm3057_vm5 = vcmp.gt.f32.partialorder %v4474_v33, %v4619_v60  ;;  %vm3078_vm6 = vcmp.lt.f32.partialorder %v4474_v33, %v4622_v62  ;;  %vm3268_vm7 = vcmp.gt.f32.partialorder %v4474_v33, %v4625_v44 }
  0xd8   : > { %8861 = vst [vmem:[#allocation38_spill] sm:$0xff] %v4595_v30  ;;  %8862 = vst [vmem:[#allocation39_spill] sm:$0xff] %v4597_v27  ;;  %1515 = vperm.xlu1 %3984, %v4327_v5   ;;  %vm3289_vm8 = vcmp.lt.f32.partialorder %v4474_v33, %v4628_v43 }
  0xd9   : > { %8866 = vst [vmem:[#allocation43_spill] sm:$0xff] %v4615_v17  ;;  %v4639_v14 = vrot.slane %v3050_v1, %v4615_v17  ;;  %v4646_v9 = vrot.slane %v3261_v56, %v4615_v17  ;;  %v4658_v1 = vsub.s32 2, %v4382_v37  ;;  %vm3094_vm10 = vmand %vm3057_vm5, %vm3078_vm6 }
  0xda   : > { %vm3305_vm12 = vmand %vm3268_vm7, %vm3289_vm8 }
  0xdb   : > { %v4609_v15 = vpop.permute.xlu1 %1083  ;;  %v4611_v27 = vpop.permute.xlu0 %1559  ;;  %1956 = vrot.lane.b32.xlu0 %v1909_v49, %s4247_s14  ;;  %8869 = vst [vmem:[#allocation46_spill] sm:$0xff] %v4639_v14  ;;  %8870 = vst [vmem:[#allocation47_spill] sm:$0xff] %v4646_v9  ;;  %vm3114_vm9 = vcmp.gt.f32.partialorder %v4548_v18, %v4639_v14  ;;  %vm3325_vm11 = vcmp.gt.f32.partialorder %v4548_v18, %v4646_v9  ;;  %v4696_v11 = vrot.slane %v3261_v56, %v4658_v1  ;;  %v8886_v56 = vmov 0 }
  0xdc   : > { %8864 = vst [vmem:[#allocation41_spill] sm:$0xff] %v4609_v15  ;;  %8865 = vst [vmem:[#allocation42_spill] sm:$0xff] %v4611_v27  ;;  %1523 = vperm.xlu1 %3984, %v4341_v7   ;;  %v1990_v27 = vmul.f32 0.5, %v333_v10  ;;  %v4653_v10 = vrot.slane %v3071_v29, %v4615_v17  ;;  %v4703_v57 = vrot.slane %v3282_v28, %v4658_v1 }
  0xdd   : > { %vm3130_vm13 = vmand %vm3094_vm10, %vm3114_vm9  ;;  %8881 = vst [vmem:[#allocation57_spill] sm:$0xff] %v4696_v11 }
  0xde   : > { %8871 = vst [vmem:[#allocation48_spill] sm:$0xff] %v4653_v10  ;;  %v4661_v63 = vadd.f32 %v1990_v27, %v4593_v47  ;;  %v4664_v54 = vsub.f32 %v4593_v47, %v1990_v27  ;;  %vm3150_vm14 = vcmp.lt.f32.partialorder %v4548_v18, %v4653_v10  ;;  %v337_v27 = vstv %s4631_s19  ;;  %vm3341_vm15 = vmand %vm3305_vm12, %vm3325_vm11 }
  0xdf   : > { %v4633_v49 = vpop.permute.xlu1 %1091  ;;  %vm3166_vm1 = vmand %vm3130_vm13, %vm3150_vm14  ;;  %8885 = vst [vmem:[#allocation59_spill] sm:$0xff] %v4703_v57 }
  0xe0   : > { %8867 = vst [vmem:[#allocation44_spill] sm:$0xff] %v4633_v49  ;;  %1531 = vperm.xlu1 %3984, %v4353_v21   ;;  %v4636_v13 = vpop.permute.xlu0 %1619  ;;  %8872 = vst [vmem:[#allocation49_spill] sm:$0xff] %v4661_v63  ;;  %v8877_v49 = vlaneseq  ;;  %v4684_v15 = vrot.slane %v4661_v63, %v4658_v1 }
  0xe1   : > { %8868 = vst [vmem:[#allocation45_spill] sm:$0xff] %v4636_v13  ;;  %8873 = vst [vmem:[#allocation50_spill] sm:$0xff] %v4664_v54  ;;  %v4674_v13 = vrot.slane %v3282_v28, %v4615_v17 }
  0xe2   : > { %v336_v42 = vand.u32 127, %v8877_v49  ;;  %8878 = vst [vmem:[#allocation54_spill] sm:$0xff] %v4684_v15 }
  0xe3   : > { %8876 = vst [vmem:[#allocation53_spill] sm:$0xff] %v4674_v13  ;;  %vm3361_vm0 = vcmp.lt.f32.partialorder %v4548_v18, %v4674_v13 }
  0xe4   : > { %1539 = vperm.xlu1 %3984, %v4361_v23   ;;  %v4669_v29 = vpop.permute.xlu1 %1151  ;;  %v4671_v52 = vpop.permute.xlu0 %1631  ;;  %vm4698_vm2 = vcmp.lt.s32.totalorder %v336_v42, %v337_v27  ;;  %vm3377_vm6 = vmand %vm3341_vm15, %vm3361_vm0  ;;  %v8891_v27 = vmov 0 }
  0xe5   : > { %8874 = vst [vmem:[#allocation51_spill] sm:$0xff] %v4669_v29  ;;  %8875 = vst [vmem:[#allocation52_spill] sm:$0xff] %v4671_v52  ;;  %v4688_v52 = vrot.slane %v4664_v54, %v4658_v1  ;;  %v8883_v8 = vsel %vm4698_vm2, 4294967295, %v8882_v8 }
  0xe6   : > { %8884 = vst [vmem:[#allocation58_spill] sm:$0xff] %v8883_v8 }
  0xe7   : > { %8879 = vst [vmem:[#allocation55_spill] sm:$0xff] %v4688_v52 }
  0xe8   : > { %1547 = vperm.xlu1 %3984, %v4369_v25   ;;  %v4691_v49 = vpop.permute.xlu1 %1159  ;;  %v4693_v30 = vpop.permute.xlu0 %1639 }
  0xe9   : > { %8880 = vst [vmem:[#allocation56_spill] sm:$0xff] %v4693_v30  ;;  %vm3182_vm3 = vcmp.gt.f32.partialorder %v4691_v49, %v4688_v52  ;;  %vm3214_vm5 = vcmp.lt.f32.partialorder %v4691_v49, %v4684_v15  ;;  %vm3397_vm8 = vcmp.gt.f32.partialorder %v4691_v49, %v4696_v11  ;;  %vm3433_vm10 = vcmp.lt.f32.partialorder %v4691_v49, %v4703_v57 }
  0xea   : > { %vm3198_vm7 = vmand %vm3166_vm1, %vm3182_vm3  ;;  %v8894_v30 = vmov 6  }
  0xeb   : > { %vm4711_vm9 = vmand %vm3198_vm7, %vm3214_vm5 }
  0xec   : > { %v8887_v56 = vsel %vm4711_vm9, 4294967295, %v8886_v56  ;;  %1555 = vperm.xlu1 %3984, %v4377_v32   ;;  %v4718_v28 = vpop.permute.xlu1 %1163  ;;  %v4720_v42 = vpop.permute.xlu0 %1647  ;;  %vm8678_vm11 = vmand %vm4711_vm9, %vm4698_vm2 }
  0xed   : > { %8888 = vst [vmem:[#allocation60_spill] sm:$0xff] %v8887_v56  ;;  %8889 = vst [vmem:[#allocation61_spill] sm:$0xff] %v4718_v28 }
  0xee   : > { %8890 = vst [vmem:[#allocation62_spill] sm:$0xff] %v4720_v42  ;;  %vm3413_vm12 = vmand %vm3377_vm6, %vm3397_vm8 }
  0xef   : > { %vm4726_vm13 = vmand %vm3413_vm12, %vm3433_vm10 }
  0xf0   : > { %v8892_v27 = vsel %vm4726_vm13, 4294967295, %v8891_v27  ;;  %vm8681_vm14 = vmand %vm4726_vm13, %vm4698_vm2  ;;  %3985 = vset.pattern.permute.xlu1 %v8894_v30  ;;  %v4735_v26 = vpop.permute.xlu1 %1171  ;;  %v4737_v42 = vpop.permute.xlu0 %1655 }
  0xf1   : > { %8893 = vst [vmem:[#allocation63_spill] sm:$0xff] %v8892_v27  ;;  %8895 = vst [vmem:[#allocation64_spill] sm:$0xff] %v4735_v26  ;;  %1615 = vperm.xlu1 %3985, %v4388_v39  }
  0xf2   : > { %8896 = vst [vmem:[#allocation65_spill] sm:$0xff] %v4737_v42  ;;  %vm4750_vm15 = vmand %vm8678_vm11, %vm8681_vm14 }
  0xf3   : > { %v8898_v12 = vsel %vm4750_vm15, 4294967295, %v8897_v12 }
  0xf4   : > { %8899 = vst [vmem:[#allocation66_spill] sm:$0xff] %v8898_v12  ;;  %v4754_v30 = vpop.permute.xlu1 %1179  ;;  %v4756_v63 = vpop.permute.xlu0 %1663 }
  0xf5   : > { %8900 = vst [vmem:[#allocation67_spill] sm:$0xff] %v4754_v30  ;;  %8901 = vst [vmem:[#allocation68_spill] sm:$0xff] %v4756_v63  ;;  %1623 = vperm.xlu1 %3985, %v4316_v2   ;;  %v310_v30 = vld [vmem:[%s4333_s10 + $0x50] sm:$0xff] }
  0xf8   : > { %v4759_v42 = vpop.permute.xlu1 %1187  ;;  %v4761_v27 = vpop.permute.xlu0 %1671 }
  0xf9   : > { %8902 = vst [vmem:[#allocation69_spill] sm:$0xff] %v4759_v42  ;;  %8903 = vst [vmem:[#allocation70_spill] sm:$0xff] %v4761_v27  ;;  %1627 = vperm.xlu1 %3985, %v4324_v4  }
  0xfc   : > { %v4764_v56 = vpop.permute.xlu1 %1195 }
  0xfd   : > { %8904 = vst [vmem:[#allocation71_spill] sm:$0xff] %v4764_v56  ;;  %1635 = vperm.xlu1 %3985, %v4338_v6   ;;  %v4767_v59 = vpop.permute.xlu0 %1731 }
  0xfe   : > { %8905 = vst [vmem:[#allocation72_spill] sm:$0xff] %v4767_v59 }
 0x100   : > { %v4769_v0 = vpop.permute.xlu1 %1203 }
 0x101   : > { %8906 = vst [vmem:[#allocation73_spill] sm:$0xff] %v4769_v0  ;;  %1643 = vperm.xlu1 %3985, %v4350_v20   ;;  %v4772_v12 = vpop.permute.xlu0 %1743 }
 0x102   : > { %8907 = vst [vmem:[#allocation74_spill] sm:$0xff] %v4772_v12 }
 0x104   : > { %v4774_v63 = vpop.permute.xlu1 %1211 }
 0x105   : > { %8908 = vst [vmem:[#allocation75_spill] sm:$0xff] %v4774_v63  ;;  %1651 = vperm.xlu1 %3985, %v4358_v22   ;;  %v4777_v42 = vpop.permute.xlu0 %1751  ;;  %v8915_v22 = vmov 7  }
 0x106   : > { %8909 = vst [vmem:[#allocation76_spill] sm:$0xff] %v4777_v42 }
 0x109   : > { %1659 = vperm.xlu1 %3985, %v4366_v24   ;;  %v4780_v4 = vpop.permute.xlu1 %1271  ;;  %v4782_v56 = vpop.permute.xlu0 %1759 }
 0x10a   : > { %8910 = vst [vmem:[#allocation77_spill] sm:$0xff] %v4780_v4  ;;  %8911 = vst [vmem:[#allocation78_spill] sm:$0xff] %v4782_v56  ;;  %v308_v4 = vld [vmem:[%s4333_s10 + $0x40] sm:$0xff] }
 0x10d   : > { %1667 = vperm.xlu1 %3985, %v4374_v31   ;;  %v4785_v6 = vpop.permute.xlu1 %1275  ;;  %v4787_v59 = vpop.permute.xlu0 %1767 }
 0x10e   : > { %8912 = vst [vmem:[#allocation79_spill] sm:$0xff] %v4787_v59 }
 0x111   : > { %1675 = vperm.xlu1 %3985, %v4385_v38   ;;  %v4790_v20 = vpop.permute.xlu1 %1283  ;;  %v4792_v12 = vpop.permute.xlu0 %1775 }
 0x112   : > { %8913 = vst [vmem:[#allocation80_spill] sm:$0xff] %v4790_v20  ;;  %8914 = vst [vmem:[#allocation81_spill] sm:$0xff] %v4792_v12 }
 0x115   : > { %3988 = vset.pattern.permute.xlu1 %v8915_v22  ;;  %v4795_v42 = vpop.permute.xlu1 %1291  ;;  %v4797_v24 = vpop.permute.xlu0 %1783  ;;  %v1862_v22 = vmul.f32 1.442695, %v4388_v39 }
 0x116   : > { %8916 = vst [vmem:[#allocation82_spill] sm:$0xff] %v4795_v42  ;;  %8917 = vst [vmem:[#allocation83_spill] sm:$0xff] %v4797_v24  ;;  %1735 = vperm.xlu1 %3988, %v4319_v3   ;;  %v307_v42 = vld [vmem:[%s4333_s10 + $0x38] sm:$0xff] }
 0x117   : > { %4045 = vpow2.f32 %v1862_v22 }
 0x119   : > { %v4800_v56 = vpop.permute.xlu1 %1299  ;;  %v4802_v31 = vpop.permute.xlu0 %1791 }
 0x11a   : > { %8918 = vst [vmem:[#allocation84_spill] sm:$0xff] %v4800_v56  ;;  %8919 = vst [vmem:[#allocation85_spill] sm:$0xff] %v4802_v31  ;;  %1739 = vperm.xlu1 %3988, %v4316_v2   ;;  %v1866_v31 = vmul.f32 1.442695, %v4316_v2 }
 0x11c   : > { %4047 = vpow2.f32 %v1866_v31 }
 0x11d   : > { %v4805_v59 = vpop.permute.xlu1 %1307 }
 0x11e   : > { %8920 = vst [vmem:[#allocation86_spill] sm:$0xff] %v4805_v59  ;;  %v4807_v38 = vpop.permute.xlu0 %904  ;;  %1747 = vperm.xlu1 %3988, %v4327_v5   ;;  %v1870_v59 = vmul.f32 1.442695, %v4327_v5  ;;  %v1878_v5 = vmul.f32 1.442695, %v4353_v21 }
 0x11f   : > { %8921 = vst [vmem:[#allocation87_spill] sm:$0xff] %v4807_v38  ;;  %vm3076_vm0 = vcmp.lt.f32.partialorder %v4807_v38, %v4622_v62  ;;  %vm3266_vm1 = vcmp.gt.f32.partialorder %v4807_v38, %v4625_v44  ;;  %vm3287_vm3 = vcmp.lt.f32.partialorder %v4807_v38, %v4628_v43 }
 0x120   : > { %4049 = vpow2.f32 %v1870_v59  ;;  %vm5529_vm8 = vmand %vm3266_vm1, %vm3287_vm3 }
 0x121   : > { %v4810_v12 = vpop.permute.xlu1 %1315  ;;  %v4834_v22 = vpop.eup %4045 }
 0x122   : > { %8922 = vst [vmem:[#allocation88_spill] sm:$0xff] %v4810_v12  ;;  %v4813_v63 = vpop.permute.xlu0 %909  ;;  %1755 = vperm.xlu1 %3988, %v4341_v7   ;;  %v1874_v12 = vmul.f32 1.442695, %v4341_v7  ;;  %8929 = vst [vmem:[#allocation95_spill] sm:$0xff] %v4834_v22  ;;  %v1894_v7 = vmul.f32 0.5, %v4834_v22 }
 0x123   : > { %8923 = vst [vmem:[#allocation89_spill] sm:$0xff] %v4813_v63  ;;  %v8939_v63 = vmov 0  }
 0x124   : > { %4051 = vpow2.f32 %v1874_v12 }
 0x125   : > { %v4816_v24 = vpop.permute.xlu1 %1323  ;;  %4053 = vpow2.f32 %v1878_v5  ;;  %v1886_v5 = vmul.f32 1.442695, %v4369_v25 }
 0x126   : > { %8924 = vst [vmem:[#allocation90_spill] sm:$0xff] %v4816_v24  ;;  %v4819_v0 = vpop.permute.xlu0 %924  ;;  %1763 = vperm.xlu1 %3988, %v4353_v21  }
 0x127   : > { %8925 = vst [vmem:[#allocation91_spill] sm:$0xff] %v4819_v0  ;;  %v1882_v0 = vmul.f32 1.442695, %v4361_v23 }
 0x129   : > { %4055 = vpow2.f32 %v1882_v0 }
 0x12a   : > { %v4823_v56 = vpop.permute.xlu0 %934  ;;  %1771 = vperm.xlu1 %3988, %v4361_v23   ;;  %v4826_v39 = vpop.permute.xlu1 %1383  ;;  %4057 = vpow2.f32 %v1886_v5 }
 0x12b   : > { %8926 = vst [vmem:[#allocation92_spill] sm:$0xff] %v4823_v56  ;;  %8927 = vst [vmem:[#allocation93_spill] sm:$0xff] %v4826_v39  ;;  %v4845_v39 = vpop.eup %4047 }
 0x12c   : > { %8933 = vst [vmem:[#allocation99_spill] sm:$0xff] %v4845_v39 }
 0x12e   : > { %v4829_v24 = vpop.permute.xlu0 %944  ;;  %1779 = vperm.xlu1 %3988, %v4369_v25   ;;  %v4832_v2 = vpop.permute.xlu1 %1391 }
 0x12f   : > { %8928 = vst [vmem:[#allocation94_spill] sm:$0xff] %v4829_v24  ;;  %v4837_v31 = vpop.f32.mrb[0].mxu0 }
 0x130   : > { %8930 = vst [vmem:[#allocation96_spill] sm:$0xff] %v4837_v31  ;;  %v4847_v24 = vpop.f32.mrb[1].mxu0 }
 0x131   : > { %8934 = vst [vmem:[#allocation100_spill] sm:$0xff] %v4847_v24  ;;  %v1890_v24 = vmul.f32 1.442695, %v4377_v32 }
 0x132   : > { %v4839_v56 = vpop.permute.xlu0 %954  ;;  %1787 = vperm.xlu1 %3988, %v4377_v32   ;;  %v4842_v59 = vpop.permute.xlu1 %1395 }
 0x133   : > { %8931 = vst [vmem:[#allocation97_spill] sm:$0xff] %v4839_v56  ;;  %8932 = vst [vmem:[#allocation98_spill] sm:$0xff] %v4842_v59  ;;  %v4850_v12 = vpop.f32.mrb[2].mxu0  ;;  %v1896_v56 = vmul.f32 0.5, %v4845_v39  ;;  %v4858_v59 = vpop.eup %4049  ;;  %4059 = vpow2.f32 %v1890_v24 }
 0x134   : > { %8935 = vst [vmem:[#allocation101_spill] sm:$0xff] %v4850_v12  ;;  %8938 = vst [vmem:[#allocation104_spill] sm:$0xff] %v4858_v59  ;;  %v4860_v22 = vpop.f32.mrb[3].mxu0 }
 0x136   : > { %v4852_v21 = vpop.permute.xlu0 %964  ;;  %v4854_v31 = vpop.permute.xlu1 %1403  ;;  %1926 = vrot.lane.b32.xlu1 %v1894_v7, %s4247_s14 }
 0x137   : > { %8936 = vst [vmem:[#allocation102_spill] sm:$0xff] %v4852_v21  ;;  %8937 = vst [vmem:[#allocation103_spill] sm:$0xff] %v4854_v31  ;;  %3990 = vset.pattern.permute.xlu1 %v8939_v63  ;;  %v1898_v31 = vmul.f32 0.5, %v4858_v59  ;;  %v4870_v7 = vpop.eup %4051 }
 0x138   : > { %8942 = vst [vmem:[#allocation107_spill] sm:$0xff] %v4870_v7  ;;  %v1900_v25 = vmul.f32 0.5, %v4870_v7  ;;  %v4879_v0 = vpop.eup %4053  ;;  %v305_v7 = vld [vmem:[%s4333_s10 + $0x28] sm:$0xff] }
 0x139   : > { %8944 = vst [vmem:[#allocation109_spill] sm:$0xff] %v4879_v0  ;;  %v1902_v32 = vmul.f32 0.5, %v4879_v0  ;;  %v4890_v5 = vpop.eup %4055 }
 0x13a   : > { %v4864_v23 = vpop.permute.xlu0 %974  ;;  %v4866_v12 = vpop.permute.xlu1 %1411  ;;  %1930 = vrot.lane.b32.xlu1 %v1896_v56, %s4247_s14  ;;  %8946 = vst [vmem:[#allocation111_spill] sm:$0xff] %v4890_v5 }
 0x13b   : > { %8940 = vst [vmem:[#allocation105_spill] sm:$0xff] %v4864_v23  ;;  %8941 = vst [vmem:[#allocation106_spill] sm:$0xff] %v4866_v12 }
 0x13e   : > { %v4873_v39 = vpop.permute.xlu0 %1928  ;;  %v4875_v21 = vpop.permute.xlu1 %1419  ;;  %1934 = vrot.lane.b32.xlu1 %v1898_v31, %s4247_s14 }
 0x13f   : > { %8943 = vst [vmem:[#allocation108_spill] sm:$0xff] %v4875_v21  ;;  %v4883_v63 = vadd.f32 %v4873_v39, %v4319_v3  ;;  %v1904_v21 = vmul.f32 0.5, %v4890_v5  ;;  %v4896_v3 = vpop.eup %4057 }
 0x140   : > { %8948 = vst [vmem:[#allocation113_spill] sm:$0xff] %v4896_v3  ;;  %v1906_v24 = vmul.f32 0.5, %v4896_v3  ;;  %v304_v3 = vld [vmem:[%s4333_s10 + $0x20] sm:$0xff] }
 0x141   : > { %1999 = vperm.xlu0 %3989, %v4883_v63  }
 0x142   : > { %v4886_v56 = vpop.permute.xlu1 %1427  ;;  %1938 = vrot.lane.b32.xlu1 %v1900_v25, %s4247_s14  ;;  %v4902_v25 = vpop.eup %4059 }
 0x143   : > { %8945 = vst [vmem:[#allocation110_spill] sm:$0xff] %v4886_v56  ;;  %8950 = vst [vmem:[#allocation115_spill] sm:$0xff] %v4902_v25 }
 0x146   : > { %v4892_v31 = vpop.permute.xlu1 %1435  ;;  %1942 = vrot.lane.b32.xlu1 %v1902_v32, %s4247_s14 }
 0x147   : > { %8947 = vst [vmem:[#allocation112_spill] sm:$0xff] %v4892_v31  ;;  %v1908_v31 = vmul.f32 0.5, %v4902_v25  ;;  %v344_v25 = vsub.f32 0.0, %v305_v7  ;;  %v309_v7 = vld [vmem:[%s4333_s10 + $0x48] sm:$0xff] }
 0x14a   : > { %v4898_v12 = vpop.permute.xlu1 %1443  ;;  %1946 = vrot.lane.b32.xlu1 %v1904_v21, %s4247_s14 }
 0x14b   : > { %8949 = vst [vmem:[#allocation114_spill] sm:$0xff] %v4898_v12 }
 0x14e   : > { %1950 = vrot.lane.b32.xlu1 %v1906_v24, %s4247_s14  ;;  %v343_v24 = vsub.f32 0.0, %v304_v3  ;;  %v347_v3 = vsub.f32 0.0, %v308_v4 }
 0x14f   : > { %v4906_v56 = vpop.permute.xlu1 %1503 }
 0x150   : > { %8951 = vst [vmem:[#allocation116_spill] sm:$0xff] %v4906_v56  ;;  %v363_v59 = vmul.f32 1.442695, %v343_v24  ;;  %v365_v56 = vmul.f32 1.442695, %v344_v25  ;;  %v348_v24 = vsub.f32 0.0, %v309_v7 }
 0x151   : > { %v371_v25 = vmul.f32 1.442695, %v347_v3  ;;  %v311_v7 = vld [vmem:[%s4333_s10 + $0x58] sm:$0xff] }
 0x152   : > { %1954 = vrot.lane.b32.xlu1 %v1908_v31, %s4247_s14  ;;  %v306_v31 = vld [vmem:[%s4333_s10 + $0x30] sm:$0xff]  ;;  %4061 = vpow2.f32 %v363_v59  ;;  %v349_v59 = vsub.f32 0.0, %v310_v30  ;;  %v4940_v30 = vrot.slane %v4593_v47, %v4603_v61 }
 0x153   : > { %v4909_v32 = vpop.permute.xlu1 %1507  ;;  %4063 = vpow2.f32 %v365_v56 }
 0x154   : > { %v375_v56 = vmul.f32 1.442695, %v349_v59  ;;  %8960 = vst [vmem:[#allocation125_spill] sm:$0xff] %v4940_v30  ;;  %v312_v59 = vld [vmem:[%s4333_s10 + $0x60] sm:$0xff] }
 0x157   : > { %v4911_v5 = vpop.permute.xlu1 %1515 }
 0x158   : > { %8952 = vst [vmem:[#allocation117_spill] sm:$0xff] %v4911_v5  ;;  %v345_v5 = vsub.f32 0.0, %v306_v31 }
 0x15b   : > { %v4913_v12 = vpop.permute.xlu1 %1523 }
 0x15c   : > { %8953 = vst [vmem:[#allocation118_spill] sm:$0xff] %v4913_v12  ;;  %v346_v12 = vsub.f32 0.0, %v307_v42  ;;  %v4062_v42 = vpop.eup %4061 }
 0x15e   : > { %v369_v20 = vmul.f32 1.442695, %v346_v12  ;;  %v4064_v12 = vpop.eup %4063 }
 0x15f   : > { %v4915_v21 = vpop.permute.xlu1 %1531  ;;  %v392_v31 = vadd.f32 1.0, %v4064_v12  ;;  %v1448_v12 = vsub.s32 4, %v4382_v37 }
 0x160   : > { %8954 = vst [vmem:[#allocation119_spill] sm:$0xff] %v4915_v21  ;;  %v367_v21 = vmul.f32 1.442695, %v345_v5  ;;  %v391_v5 = vadd.f32 1.0, %v4062_v42 }
 0x162   : > { %4065 = vpow2.f32 %v367_v21  ;;  %v4936_v21 = vrot.slane %v4593_v47, %v4615_v17 }
 0x163   : > { %v4918_v0 = vpop.permute.xlu1 %1539  ;;  %4067 = vpow2.f32 %v369_v20 }
 0x164   : > { %8955 = vst [vmem:[#allocation120_spill] sm:$0xff] %v4918_v0  ;;  %v373_v0 = vmul.f32 1.442695, %v348_v24  ;;  %4069 = vpow2.f32 %v371_v25  ;;  %8959 = vst [vmem:[#allocation124_spill] sm:$0xff] %v4936_v21  ;;  %v1104_v24 = vsub.f32 %v4548_v18, %v4936_v21 }
 0x166   : > { %4071 = vpow2.f32 %v373_v0 }
 0x167   : > { %v4922_v23 = vpop.permute.xlu1 %1547  ;;  %4073 = vpow2.f32 %v375_v56 }
 0x168   : > { %8956 = vst [vmem:[#allocation121_spill] sm:$0xff] %v4922_v23  ;;  %4075 = vrcp.f32 %v391_v5  ;;  %v988_v5 = vsub.f32 %v4474_v33, %v4940_v30 }
 0x169   : > { %4077 = vrcp.f32 %v392_v31 }
 0x16b   : > { %v4926_v27 = vpop.permute.xlu1 %1555 }
 0x16c   : > { %8957 = vst [vmem:[#allocation122_spill] sm:$0xff] %v4926_v27  ;;  %v4066_v20 = vpop.eup %4065  ;;  %v4954_v27 = vrot.slane %v4593_v47, %v4658_v1  ;;  %v4964_v1 = vrot.slane %v4593_v47, %v1448_v12  ;;  %v313_v12 = vld [vmem:[%s4333_s10 + $0x68] sm:$0xff] }
 0x16d   : > { %v4068_v0 = vpop.eup %4067  ;;  %v393_v3 = vadd.f32 1.0, %v4066_v20  ;;  %v1332_v20 = vsub.s32 3, %v4382_v37 }
 0x16e   : > { %v394_v25 = vadd.f32 1.0, %v4068_v0  ;;  %v4070_v56 = vpop.eup %4069  ;;  %8962 = vst [vmem:[#allocation127_spill] sm:$0xff] %v4954_v27  ;;  %v351_v0 = vsub.f32 0.0, %v312_v59  ;;  %v1220_v21 = vsub.f32 %v4691_v49, %v4954_v27  ;;  %8964 = vst [vmem:[#allocation129_spill] sm:$0xff] %v4964_v1 }
 0x16f   : > { %4079 = vrcp.f32 %v393_v3  ;;  %v395_v18 = vadd.f32 1.0, %v4070_v56  ;;  %v1120_v3 = vand.u32 2147483647, %v1104_v24  ;;  %v4967_v24 = vrot.slane %v4593_v47, %v1332_v20 }
 0x170   : > { %v4930_v23 = vpop.permute.xlu1 %1615  ;;  %4081 = vrcp.f32 %v394_v25  ;;  %v4072_v31 = vpop.eup %4071  ;;  %v379_v56 = vmul.f32 1.442695, %v351_v0 }
 0x171   : > { %8958 = vst [vmem:[#allocation123_spill] sm:$0xff] %v4930_v23  ;;  %v350_v23 = vsub.f32 0.0, %v311_v7  ;;  %v396_v17 = vadd.f32 1.0, %v4072_v31  ;;  %4083 = vrcp.f32 %v395_v18  ;;  %v4074_v33 = vpop.eup %4073  ;;  %v1004_v7 = vand.u32 2147483647, %v988_v5  ;;  %8965 = vst [vmem:[#allocation130_spill] sm:$0xff] %v4967_v24 }
 0x172   : > { %v4961_v30 = vpop.eup %4075  ;;  %v397_v59 = vadd.f32 1.0, %v4074_v33  ;;  %v1236_v18 = vand.u32 2147483647, %v1220_v21  ;;  %v1336_v20 = vsub.f32 %v4785_v6, %v4967_v24 }
 0x173   : > { %4085 = vrcp.f32 %v396_v17  ;;  %v377_v25 = vmul.f32 1.442695, %v350_v23  ;;  %v4969_v49 = vpop.eup %4077  ;;  %v1680_v17 = vsub.s32 6, %v4382_v37  ;;  %v1136_v23 = vadd.f32 %v1120_v3, %v1004_v7 }
 0x174   : > { %v4932_v4 = vpop.permute.xlu1 %1623  ;;  %v4978_v5 = vsub.f32 1.0, %v4961_v30  ;;  %v4986_v0 = vsub.f32 1.0, %v4969_v49  ;;  %4087 = vrcp.f32 %v397_v59  ;;  %v551_v7 = vadd.f32 1e-12, %v4961_v30 }
 0x175   : > { %4089 = vpow2.f32 %v377_v25  ;;  %v552_v6 = vadd.f32 1e-12, %v4969_v49  ;;  %v5000_v59 = vrot.slane %v4593_v47, %v1680_v17  ;;  %v1252_v48 = vadd.f32 %v1236_v18, %v1136_v23 }
 0x176   : > { %v439_v3 = vadd.f32 1e-12, %v4978_v5  ;;  %v440_v21 = vadd.f32 1e-12, %v4986_v0  ;;  %4091 = vpow2.f32 %v379_v56  ;;  %v1352_v25 = vand.u32 2147483647, %v1336_v20 }
 0x177   : > { %8968 = vst [vmem:[#allocation133_spill] sm:$0xff] %v5000_v59  ;;  %v1684_v20 = vsub.f32 %v4932_v4, %v5000_v59 }
 0x178   : > { %v4946_v42 = vpop.permute.xlu1 %1627  ;;  %4093 = vlog2.f32 %v439_v3 }
 0x179   : > { %8961 = vst [vmem:[#allocation126_spill] sm:$0xff] %v4946_v42  ;;  %v8624_v42 = vsub.s32 5, %v4382_v37  ;;  %v4993_v27 = vpop.eup %4079  ;;  %4095 = vlog2.f32 %v551_v7 }
 0x17a   : > { %v4997_v24 = vpop.eup %4081  ;;  %4097 = vlog2.f32 %v440_v21  ;;  %v1368_v21 = vadd.f32 %v1352_v25, %v1252_v48  ;;  %v1700_v25 = vand.u32 2147483647, %v1684_v20 }
 0x17b   : > { %v4974_v31 = vrot.slane %v4593_v47, %v8624_v42  ;;  %v1452_v42 = vsub.f32 %v4832_v2, %v4964_v1  ;;  %v5003_v2 = vsub.f32 1.0, %v4993_v27  ;;  %v5008_v61 = vsub.f32 1.0, %v4997_v24  ;;  %v5014_v3 = vpop.eup %4083 }
 0x17c   : > { %v4959_v55 = vpop.permute.xlu1 %1635  ;;  %4099 = vlog2.f32 %v552_v6  ;;  %v555_v48 = vadd.f32 1e-12, %v5014_v3 }
 0x17d   : > { %8963 = vst [vmem:[#allocation128_spill] sm:$0xff] %v4959_v55  ;;  %8966 = vst [vmem:[#allocation131_spill] sm:$0xff] %v4974_v31  ;;  %v314_v55 = vld [vmem:[%s4333_s10 + $0x70] sm:$0xff]  ;;  %v1568_v56 = vsub.f32 %v4909_v32, %v4974_v31  ;;  %v441_v17 = vadd.f32 1e-12, %v5003_v2  ;;  %v5017_v18 = vpop.eup %4085  ;;  %v5022_v32 = vsub.f32 1.0, %v5014_v3 }
 0x17e   : > { %v353_v51 = vsub.f32 0.0, %v314_v55  ;;  %v1468_v26 = vand.u32 2147483647, %v1452_v42  ;;  %v442_v55 = vadd.f32 1e-12, %v5008_v61  ;;  %v5028_v6 = vsub.f32 1.0, %v5017_v18  ;;  %v5032_v4 = vpop.eup %4087 }
 0x17f   : > { %4101 = vlog2.f32 %v441_v17  ;;  %v554_v42 = vadd.f32 1e-12, %v4997_v24  ;;  %v443_v31 = vadd.f32 1e-12, %v5022_v32  ;;  %v1796_v17 = vsub.s32 7, %v4382_v37 }
 0x180   : > { %v4983_v33 = vpop.permute.xlu1 %1643  ;;  %v383_v7 = vmul.f32 1.442695, %v353_v51  ;;  %v1484_v59 = vadd.f32 %v1468_v26, %v1368_v21  ;;  %v4090_v51 = vpop.eup %4089  ;;  %v556_v45 = vadd.f32 1e-12, %v5017_v18  ;;  %v354_v37 = vsub.f32 0.0, %v315_v46 }
 0x181   : > { %8967 = vst [vmem:[#allocation132_spill] sm:$0xff] %v4983_v33  ;;  %v352_v33 = vsub.f32 0.0, %v313_v12  ;;  %v553_v12 = vadd.f32 1e-12, %v4993_v27  ;;  %v5047_v19 = vrot.slane %v4593_v47, %v1796_v17  ;;  %v398_v17 = vadd.f32 1.0, %v4090_v51 }
 0x183   : > { %v381_v23 = vmul.f32 1.442695, %v352_v33  ;;  %4103 = vlog2.f32 %v553_v12  ;;  %v1584_v33 = vand.u32 2147483647, %v1568_v56  ;;  %v444_v12 = vadd.f32 1e-12, %v5028_v6  ;;  %v5040_v56 = vpop.eup %4091 }
 0x184   : > { %v5005_v54 = vpop.permute.xlu1 %1651  ;;  %4105 = vlog2.f32 %v442_v55  ;;  %v4094_v26 = vpop.eup %4093  ;;  %8972 = vst [vmem:[#allocation137_spill] sm:$0xff] %v5047_v19 }
 0x185   : > { %8969 = vst [vmem:[#allocation134_spill] sm:$0xff] %v5005_v54  ;;  %4107 = vpow2.f32 %v381_v23  ;;  %v1600_v21 = vadd.f32 %v1584_v33, %v1484_v59  ;;  %v4096_v20 = vpop.eup %4095  ;;  %v460_v41 = vmul.f32 0.6931472, %v4094_v26  ;;  %v385_v33 = vmul.f32 1.442695, %v354_v37 }
 0x186   : > { %4109 = vpow2.f32 %v383_v7  ;;  %v4098_v7 = vpop.eup %4097  ;;  %v572_v34 = vmul.f32 0.6931472, %v4096_v20 }
 0x187   : > { %4111 = vlog2.f32 %v554_v42  ;;  %v5049_v36 = vadd.f32 %v1700_v25, %v1600_v21  ;;  %v557_v42 = vadd.f32 1e-12, %v5032_v4  ;;  %v487_v59 = vsub.f32 0.0, %v460_v41 }
 0x188   : > { %v5024_v54 = vpop.permute.xlu1 %1659  ;;  %4113 = vlog2.f32 %v443_v31  ;;  %v462_v31 = vmul.f32 0.6931472, %v4098_v7  ;;  %v599_v16 = vsub.f32 0.0, %v572_v34  ;;  %v519_v25 = vmul.f32 %v4961_v30, %v4961_v30 }
 0x189   : > { %8970 = vst [vmem:[#allocation135_spill] sm:$0xff] %v5024_v54  ;;  %v5038_v54 = vsub.f32 1.0, %v5032_v4  ;;  %4115 = vlog2.f32 %v555_v48  ;;  %v503_v26 = vmul.f32 0.75, %v487_v59  ;;  %v520_v41 = vmul.f32 %v4969_v49, %v4969_v49 }
 0x18a   : > { %4117 = vlog2.f32 %v444_v12  ;;  %v631_v12 = vmul.f32 %v4978_v5, %v4978_v5  ;;  %v488_v21 = vsub.f32 0.0, %v462_v31 }
 0x18b   : > { %v445_v23 = vadd.f32 1e-12, %v5038_v54  ;;  %4119 = vlog2.f32 %v556_v45  ;;  %v535_v45 = vmul.f32 %v519_v25, %v503_v26 }
 0x18c   : > { %v5042_v55 = vpop.permute.xlu1 %1667  ;;  %v504_v51 = vmul.f32 0.75, %v488_v21 }
 0x18d   : > { %8971 = vst [vmem:[#allocation136_spill] sm:$0xff] %v5042_v55  ;;  %v4100_v55 = vpop.eup %4099  ;;  %4121 = vlog2.f32 %v445_v23 }
 0x18e   : > { %v4102_v1 = vpop.eup %4101  ;;  %v574_v47 = vmul.f32 0.6931472, %v4100_v55  ;;  %4123 = vlog2.f32 %v557_v42  ;;  %v632_v55 = vmul.f32 %v4986_v0, %v4986_v0  ;;  %v536_v49 = vmul.f32 %v520_v41, %v504_v51 }
 0x18f   : > { %v4104_v48 = vpop.eup %4103  ;;  %v464_v23 = vmul.f32 0.6931472, %v4102_v1  ;;  %v521_v42 = vmul.f32 %v4993_v27, %v4993_v27  ;;  %4125 = vrcp.f32 %v398_v17  ;;  %v633_v1 = vmul.f32 %v5003_v2, %v5003_v2 }
 0x190   : > { %v5052_v46 = vpop.permute.xlu1 %1675  ;;  %v4106_v20 = vpop.eup %4105  ;;  %v600_v37 = vsub.f32 0.0, %v574_v47  ;;  %4127 = vpow2.f32 %v385_v33 }
 0x191   : > { %8973 = vst [vmem:[#allocation138_spill] sm:$0xff] %v5052_v46  ;;  %v615_v46 = vmul.f32 0.25, %v599_v16  ;;  %v5060_v34 = vpop.eup %4107  ;;  %v576_v16 = vmul.f32 0.6931472, %v4104_v48  ;;  %v466_v31 = vmul.f32 0.6931472, %v4106_v20  ;;  %v522_v48 = vmul.f32 %v4997_v24, %v4997_v24 }
 0x192   : > { %v5064_v30 = vpop.eup %4109  ;;  %v616_v59 = vmul.f32 0.25, %v600_v37  ;;  %v489_v47 = vsub.f32 0.0, %v464_v23  ;;  %v634_v37 = vmul.f32 %v5008_v61, %v5008_v61  ;;  %v635_v61 = vmul.f32 %v5022_v32, %v5022_v32 }
 0x193   : > { %v647_v5 = vmul.f32 %v631_v12, %v615_v46  ;;  %v4112_v58 = vpop.eup %4111  ;;  %v601_v0 = vsub.f32 0.0, %v576_v16  ;;  %v490_v46 = vsub.f32 0.0, %v466_v31 }
 0x194   : > { %v4114_v26 = vpop.eup %4113  ;;  %v648_v21 = vmul.f32 %v632_v55, %v616_v59  ;;  %v578_v41 = vmul.f32 0.6931472, %v4112_v58  ;;  %v523_v59 = vmul.f32 %v5014_v3, %v5014_v3 }
 0x195   : > { %v5066_v7 = vpop.permute.xlu1 %1735  ;;  %v663_v25 = vsub.f32 %v647_v5, %v535_v45  ;;  %v4116_v28 = vpop.eup %4115  ;;  %v617_v17 = vmul.f32 0.25, %v601_v0  ;;  %v506_v55 = vmul.f32 0.75, %v490_v46  ;;  %v468_v23 = vmul.f32 0.6931472, %v4114_v26 }
 0x196   : > { %8974 = vst [vmem:[#allocation139_spill] sm:$0xff] %v5066_v7  ;;  %v505_v7 = vmul.f32 0.75, %v489_v47  ;;  %v4118_v12 = vpop.eup %4117  ;;  %v664_v27 = vsub.f32 %v648_v21, %v536_v49  ;;  %v602_v33 = vsub.f32 0.0, %v578_v41  ;;  %v580_v16 = vmul.f32 0.6931472, %v4116_v28 }
 0x197   : > { %3927 = vmatprep.mubr.msk.f32.mxu0 %vm688_vm4, %v663_v25  ;;  %v4120_v45 = vpop.eup %4119  ;;  %v649_v24 = vmul.f32 %v633_v1, %v617_v17  ;;  %v538_v58 = vmul.f32 %v522_v48, %v506_v55  ;;  %v491_v49 = vsub.f32 0.0, %v468_v23  ;;  %v470_v21 = vmul.f32 0.6931472, %v4118_v12 }
 0x198   : > { %v537_v51 = vmul.f32 %v521_v42, %v505_v7  ;;  %v4122_v5 = vpop.eup %4121  ;;  %3928 = vmatmul.mubr.msk.f32.gmra.mrb[4].mxu0 %vm688_vm4, %v664_v27  ;;  %v618_v42 = vmul.f32 0.25, %v602_v33  ;;  %v603_v26 = vsub.f32 0.0, %v580_v16  ;;  %v888_v1 = vmul.f32 2.0, %v4860_v22 }
 0x199   : > { %v1740_v20 = vpop.permute.xlu1 %1739  ;;  %v4124_v47 = vpop.eup %4123  ;;  %v507_v46 = vmul.f32 0.75, %v491_v49  ;;  %v524_v28 = vmul.f32 %v5017_v18, %v5017_v18  ;;  %v492_v32 = vsub.f32 0.0, %v470_v21  ;;  %v636_v12 = vmul.f32 %v5028_v6, %v5028_v6 }
 0x19a   : > { %v1800_v2 = vsub.f32 %v1740_v20, %v5047_v19  ;;  %v665_v7 = vsub.f32 %v649_v24, %v537_v51  ;;  %v650_v3 = vmul.f32 %v634_v37, %v618_v42  ;;  %v619_v48 = vmul.f32 0.25, %v603_v26  ;;  %v4126_v27 = vpop.eup %4125 }
 0x19b   : > { %v582_v20 = vmul.f32 0.6931472, %v4120_v45  ;;  %v539_v41 = vmul.f32 %v523_v59, %v507_v46  ;;  %v508_v51 = vmul.f32 0.75, %v492_v32  ;;  %v4128_v23 = vpop.eup %4127  ;;  %v472_v24 = vmul.f32 0.6931472, %v4122_v5 }
 0x19c   : > { %v1816_v31 = vand.u32 2147483647, %v1800_v2  ;;  %3930 = vmatprep.mubr.msk.f32.mxu0 %vm688_vm4, %v665_v7  ;;  %v651_v22 = vmul.f32 %v635_v61, %v619_v48  ;;  %v584_v16 = vmul.f32 0.6931472, %v4124_v47  ;;  %v525_v6 = vmul.f32 %v5032_v4, %v5032_v4 }
 0x19d   : > { %v5083_v25 = vpop.permute.xlu1 %1747  ;;  %v604_v55 = vsub.f32 0.0, %v582_v20  ;;  %v540_v45 = vmul.f32 %v524_v28, %v508_v51  ;;  %v493_v59 = vsub.f32 0.0, %v472_v24  ;;  %v637_v5 = vmul.f32 %v5038_v54, %v5038_v54 }
 0x19e   : > { %8975 = vst [vmem:[#allocation140_spill] sm:$0xff] %v5083_v25  ;;  %v1832_v0 = vadd.f32 %v1816_v31, %v5049_v36  ;;  %v666_v36 = vsub.f32 %v650_v3, %v538_v58  ;;  %v667_v37 = vsub.f32 %v651_v22, %v539_v41  ;;  %v430_v31 = vsub.f32 1.0, %v4126_v27 }
 0x19f   : > { %v620_v33 = vmul.f32 0.25, %v604_v55  ;;  %v399_v58 = vadd.f32 1.0, %v5040_v56  ;;  %v605_v7 = vsub.f32 0.0, %v584_v16  ;;  %v558_v42 = vadd.f32 1e-12, %v4126_v27 }
 0x1a0   : > { %v1848_v17 = vmul.f32 0.25, %v1832_v0  ;;  %3931 = vmatmul.mubr.msk.f32.gmra.mrb[6].mxu0 %vm688_vm4, %v666_v36  ;;  %3933 = vmatprep.mubr.msk.f32.mxu1 %vm688_vm4, %v667_v37  ;;  %v509_v26 = vmul.f32 0.75, %v493_v59  ;;  %v446_v21 = vadd.f32 1e-12, %v430_v31  ;;  %v400_v47 = vadd.f32 1.0, %v5060_v34  ;;  %v5113_v34 = vpop.permute.xlu0 %1932 }
 0x1a1   : > { %v5092_v2 = vpop.permute.xlu1 %1755  ;;  %v652_v61 = vmul.f32 %v636_v12, %v620_v33  ;;  %4129 = vlog2.f32 %v558_v42  ;;  %v401_v56 = vadd.f32 1.0, %v5064_v30  ;;  %v402_v54 = vadd.f32 1.0, %v4128_v23 }
 0x1a2   : > { %8976 = vst [vmem:[#allocation141_spill] sm:$0xff] %v5092_v2  ;;  %v5094_v18 = vadd.f32 %v1848_v17, %v888_v1  ;;  %v621_v1 = vmul.f32 0.25, %v605_v7  ;;  %v541_v4 = vmul.f32 %v525_v6, %v509_v26  ;;  %4131 = vlog2.f32 %v446_v21  ;;  %v5135_v6 = vld [vmem:[%s4313_s7] sm:$0xff] }
 0x1a3   : > { %v668_v0 = vsub.f32 %v652_v61, %v540_v45  ;;  %4133 = vrcp.f32 %v399_v58  ;;  %v638_v51 = vmul.f32 %v430_v31, %v430_v31  ;;  %v526_v45 = vmul.f32 %v4126_v27, %v4126_v27 }
 0x1a4   : > { %8977 = vst [vmem:[#allocation142_spill] sm:$0xff] %v5094_v18  ;;  %v653_v28 = vmul.f32 %v637_v5, %v621_v1  ;;  %4135 = vrcp.f32 %v400_v47  ;;  %v5124_v23 = vpop.permute.xlu0 %1936  ;;  %v5153_v1 = vld [vmem:[%s4313_s7 + $0x10] sm:$0xff] }
 0x1a5   : > { %v5100_v49 = vpop.permute.xlu1 %1763  ;;  %3934 = vmatmul.mubr.msk.f32.vlgmr.msra.gmra.mrb[0].mxu1 %vm688_vm4, %v668_v0  ;;  %4137 = vrcp.f32 %v401_v56 }
 0x1a6   : > { %8978 = vst [vmem:[#allocation143_spill] sm:$0xff] %v5100_v49  ;;  %v669_v3 = vsub.f32 %v653_v28, %v541_v4  ;;  %4139 = vrcp.f32 %v402_v54 }
 0x1a8   : > { %3936 = vmatprep.mubr.msk.f32.mxu1 %vm688_vm4, %v669_v3  ;;  %v5160_v28 = vpop.permute.xlu0 %1940 }
 0x1a9   : > { %v5107_v46 = vpop.permute.xlu1 %1771 }
 0x1aa   : > { %8979 = vst [vmem:[#allocation144_spill] sm:$0xff] %v5107_v46 }
 0x1ab   : > { %v4130_v32 = vpop.eup %4129 }
 0x1ac   : > { %v4132_v30 = vpop.eup %4131  ;;  %v586_v17 = vmul.f32 0.6931472, %v4130_v32 }
 0x1ad   : > { %v5110_v48 = vpop.permute.xlu1 %1779  ;;  %v5117_v41 = vpop.eup %4133  ;;  %v474_v12 = vmul.f32 0.6931472, %v4132_v30  ;;  %v5167_v30 = vld [vmem:[%s4313_s7 + $0x18] sm:$0xff] }
 0x1ae   : > { %8980 = vst [vmem:[#allocation145_spill] sm:$0xff] %v5110_v48  ;;  %v5119_v36 = vpop.eup %4135  ;;  %v606_v22 = vsub.f32 0.0, %v586_v17  ;;  %v5122_v55 = vsub.f32 1.0, %v5117_v41  ;;  %v559_v33 = vadd.f32 1e-12, %v5117_v41  ;;  %v5171_v17 = vadd.f32 %v5167_v30, %v5113_v34 }
 0x1af   : > { %v494_v37 = vsub.f32 0.0, %v474_v12  ;;  %v5130_v16 = vsub.f32 1.0, %v5119_v36  ;;  %v5132_v59 = vpop.eup %4137  ;;  %v560_v26 = vadd.f32 1e-12, %v5119_v36  ;;  %v527_v25 = vmul.f32 %v5117_v41, %v5117_v41 }
 0x1b0   : > { %v622_v58 = vmul.f32 0.25, %v606_v22  ;;  %v447_v61 = vadd.f32 1e-12, %v5122_v55  ;;  %4141 = vlog2.f32 %v559_v33  ;;  %v5143_v5 = vpop.eup %4139  ;;  %v5150_v0 = vsub.f32 1.0, %v5132_v59  ;;  %v5187_v33 = vld [vmem:[%s4313_s7 + $0x28] sm:$0xff] }
 0x1b1   : > { %v5115_v20 = vpop.permute.xlu1 %1787  ;;  %v510_v7 = vmul.f32 0.75, %v494_v37  ;;  %v448_v27 = vadd.f32 1e-12, %v5130_v16  ;;  %v561_v56 = vadd.f32 1e-12, %v5132_v59  ;;  %v5164_v32 = vsub.f32 1.0, %v5143_v5 }
 0x1b2   : > { %8981 = vst [vmem:[#allocation146_spill] sm:$0xff] %v5115_v20  ;;  %v654_v42 = vmul.f32 %v638_v51, %v622_v58  ;;  %4143 = vlog2.f32 %v447_v61  ;;  %v449_v3 = vadd.f32 1e-12, %v5150_v0  ;;  %v562_v12 = vadd.f32 1e-12, %v5143_v5  ;;  %v5180_v37 = vld [vmem:[%s4313_s7 + $0x20] sm:$0xff] }
 0x1b3   : > { %v542_v47 = vmul.f32 %v526_v45, %v510_v7  ;;  %4145 = vlog2.f32 %v448_v27  ;;  %v450_v51 = vadd.f32 1e-12, %v5164_v32  ;;  %v5191_v58 = vadd.f32 %v5187_v33, %v5124_v23  ;;  %v5195_v7 = vpop.permute.xlu0 %1944 }
 0x1b4   : > { %4147 = vlog2.f32 %v560_v26  ;;  %v5200_v26 = vld [vmem:[%s4313_s7 + $0x30] sm:$0xff]  ;;  %v639_v48 = vmul.f32 %v5122_v55, %v5122_v55  ;;  %v528_v50 = vmul.f32 %v5119_v36, %v5119_v36  ;;  %v640_v41 = vmul.f32 %v5130_v16, %v5130_v16 }
 0x1b5   : > { %v5126_v24 = vpop.permute.xlu1 %1926  ;;  %v670_v54 = vsub.f32 %v654_v42, %v542_v47  ;;  %4149 = vlog2.f32 %v561_v56  ;;  %v641_v36 = vmul.f32 %v5150_v0, %v5150_v0 }
 0x1b6   : > { %v5139_v31 = vadd.f32 %v5135_v6, %v5126_v24  ;;  %4151 = vlog2.f32 %v449_v3 }
 0x1b7   : > { %3937 = vmatmul.mubr.msk.f32.gmra.mrb[2].mxu1 %vm688_vm4, %v670_v54  ;;  %4153 = vlog2.f32 %v562_v12  ;;  %v5237_v11 = vpop.permute.xlu0 %1948 }
 0x1b8   : > { %1994 = vperm.xlu1 %3990, %v5139_v31   ;;  %4155 = vlog2.f32 %v450_v51  ;;  %v5207_v51 = vld [vmem:[%s4313_s7 + $0x38] sm:$0xff] }
 0x1b9   : > { %v5147_v21 = vpop.permute.xlu1 %1930  ;;  %v5211_v18 = vadd.f32 %v5207_v51, %v5160_v28 }
 0x1ba   : > { %v5157_v4 = vadd.f32 %v5153_v1, %v5147_v21  ;;  %v4142_v61 = vpop.eup %4141 }
 0x1bb   : > { %v588_v56 = vmul.f32 0.6931472, %v4142_v61  ;;  %v5218_v61 = vld [vmem:[%s4313_s7 + $0x48] sm:$0xff] }
 0x1bc   : > { %2004 = vperm.xlu1 %3990, %v5157_v4   ;;  %v4144_v42 = vpop.eup %4143 }
 0x1bd   : > { %v5175_v22 = vpop.permute.xlu1 %1934  ;;  %v4146_v54 = vpop.eup %4145  ;;  %v476_v3 = vmul.f32 0.6931472, %v4144_v42  ;;  %v607_v20 = vsub.f32 0.0, %v588_v56  ;;  %v5222_v42 = vadd.f32 %v5218_v61, %v5195_v7 }
 0x1be   : > { %v5184_v45 = vadd.f32 %v5180_v37, %v5175_v22  ;;  %v4148_v12 = vpop.eup %4147  ;;  %v478_v46 = vmul.f32 0.6931472, %v4146_v54 }
 0x1bf   : > { %v495_v2 = vsub.f32 0.0, %v476_v3  ;;  %v590_v19 = vmul.f32 0.6931472, %v4148_v12  ;;  %v4150_v40 = vpop.eup %4149  ;;  %v623_v56 = vmul.f32 0.25, %v607_v20 }
 0x1c0   : > { %2009 = vperm.xlu1 %3990, %v5171_v17   ;;  %2014 = vperm.xlu0 %3989, %v5184_v45   ;;  %v496_v54 = vsub.f32 0.0, %v478_v46  ;;  %v4152_v57 = vpop.eup %4151  ;;  %v592_v12 = vmul.f32 0.6931472, %v4150_v40  ;;  %v5248_v40 = vld [vmem:[%s4313_s7 + $0x50] sm:$0xff] }
 0x1c1   : > { %v5197_v27 = vpop.permute.xlu1 %1938  ;;  %v511_v3 = vmul.f32 0.75, %v495_v2  ;;  %v608_v8 = vsub.f32 0.0, %v590_v19  ;;  %v4154_v13 = vpop.eup %4153  ;;  %v655_v20 = vmul.f32 %v639_v48, %v623_v56  ;;  %v480_v9 = vmul.f32 0.6931472, %v4152_v57 }
 0x1c2   : > { %v5204_v47 = vadd.f32 %v5200_v26, %v5197_v27  ;;  %v512_v46 = vmul.f32 0.75, %v496_v54  ;;  %v4156_v15 = vpop.eup %4155  ;;  %v609_v52 = vsub.f32 0.0, %v592_v12  ;;  %v594_v16 = vmul.f32 0.6931472, %v4154_v13  ;;  %v5271_v12 = vld [vmem:[%s4313_s7 + $0x60] sm:$0xff] }
 0x1c3   : > { %v543_v19 = vmul.f32 %v527_v25, %v511_v3  ;;  %v624_v29 = vmul.f32 0.25, %v608_v8  ;;  %v497_v56 = vsub.f32 0.0, %v480_v9  ;;  %v529_v57 = vmul.f32 %v5132_v59, %v5132_v59  ;;  %v5257_v25 = vld [vmem:[%s4313_s7 + $0x58] sm:$0xff] }
 0x1c4   : > { %2019 = vperm.xlu1 %3990, %v5191_v58   ;;  %2024 = vperm.xlu0 %3989, %v5204_v47   ;;  %v544_v48 = vmul.f32 %v528_v50, %v512_v46  ;;  %v625_v10 = vmul.f32 0.25, %v609_v52  ;;  %v482_v14 = vmul.f32 0.6931472, %v4156_v15  ;;  %v5261_v13 = vadd.f32 %v5257_v25, %v5237_v11 }
 0x1c5   : > { %v5224_v49 = vpop.permute.xlu1 %1942  ;;  %v671_v0 = vsub.f32 %v655_v20, %v543_v19  ;;  %v656_v54 = vmul.f32 %v640_v41, %v624_v29  ;;  %v513_v50 = vmul.f32 0.75, %v497_v56  ;;  %v610_v9 = vsub.f32 0.0, %v594_v16  ;;  %v1953_v29 = vpop.permute.xlu0 %1952  ;;  %v5278_v16 = vld [vmem:[%s4313_s7 + $0x68] sm:$0xff]  ;;  %v5286_v56 = vld [vmem:[%s4313_s7 + $0x70] sm:$0xff] }
 0x1c6   : > { %v5233_v55 = vadd.f32 %v5229_v53, %v5224_v49  ;;  %v642_v8 = vmul.f32 %v5164_v32, %v5164_v32  ;;  %v657_v59 = vmul.f32 %v641_v36, %v625_v10  ;;  %v498_v3 = vsub.f32 0.0, %v482_v14 }
 0x1c7   : > { %3939 = vmatprep.mubr.msk.f32.mxu1 %vm688_vm4, %v671_v0  ;;  %v672_v15 = vsub.f32 %v656_v54, %v544_v48  ;;  %v530_v41 = vmul.f32 %v5143_v5, %v5143_v5  ;;  %v545_v46 = vmul.f32 %v529_v57, %v513_v50  ;;  %v626_v19 = vmul.f32 0.25, %v610_v9  ;;  %v4203_v50 = vld [vmem:[%s4313_s7 + $0x78] sm:$0xff] }
 0x1c8   : > { %2029 = vperm.xlu1 %3990, %v5211_v18   ;;  %2034 = vperm.xlu0 %3989, %v5233_v55   ;;  %v514_v32 = vmul.f32 0.75, %v498_v3  ;;  %v5281_v10 = vadd.f32 %v5278_v16, %v1953_v29  ;;  %v5313_v3 = vsub.f32 %v5153_v1, %v5147_v21  ;;  %v5337_v21 = vsub.f32 %v5207_v51, %v5160_v28 }
 0x1c9   : > { %v5245_v2 = vpop.permute.xlu1 %1946  ;;  %3940 = vmatmul.mubr.msk.f32.gmra.mrb[4].mxu1 %vm688_vm4, %v672_v15  ;;  %v673_v14 = vsub.f32 %v657_v59, %v545_v46  ;;  %v658_v5 = vmul.f32 %v642_v8, %v626_v19  ;;  %v1957_v0 = vpop.permute.xlu0 %1956  ;;  %v5300_v8 = vsub.f32 %v5135_v6, %v5126_v24  ;;  %v5305_v15 = vld [vmem:[%s4313_s7 + $0x8] sm:$0xff]  ;;  %v5323_v24 = vsub.f32 %v5180_v37, %v5175_v22 }
 0x1ca   : > { %v5252_v35 = vadd.f32 %v5248_v40, %v5245_v2  ;;  %v546_v48 = vmul.f32 %v530_v41, %v514_v32  ;;  %v5293_v9 = vadd.f32 %v4203_v50, %v1957_v0  ;;  %v5309_v59 = vsub.f32 %v5305_v15, %v4873_v39 }
 0x1cb   : > { %3942 = vmatprep.mubr.msk.f32.mxu1 %vm688_vm4, %v673_v14  ;;  %v5317_v41 = vsub.f32 %v5167_v30, %v5113_v34  ;;  %v5327_v39 = vsub.f32 %v5187_v33, %v5124_v23  ;;  %v5333_v34 = vsub.f32 %v5200_v26, %v5197_v27  ;;  %v5343_v23 = vsub.f32 %v5229_v53, %v5224_v49 }
 0x1cc   : > { %2039 = vperm.xlu1 %3990, %v5222_v42   ;;  %2044 = vperm.xlu0 %3989, %v5252_v35   ;;  %v674_v54 = vsub.f32 %v658_v5, %v546_v48  ;;  %v5347_v1 = vsub.f32 %v5218_v61, %v5195_v7  ;;  %v5353_v28 = vsub.f32 %v5248_v40, %v5245_v2 }
 0x1cd   : > { %v1951_v52 = vpop.permute.xlu1 %1950  ;;  %v5357_v22 = vsub.f32 %v5257_v25, %v5237_v11  ;;  %v5365_v7 = vsub.f32 %v5278_v16, %v1953_v29  ;;  %v5372_v2 = vsub.f32 %v4203_v50, %v1957_v0  ;;  %v8982_v11 = vmov 1  }
 0x1ce   : > { %v5274_v20 = vadd.f32 %v5271_v12, %v1951_v52  ;;  %3943 = vmatmul.mubr.msk.f32.gmra.mrb[6].mxu1 %vm688_vm4, %v674_v54  ;;  %v5362_v49 = vsub.f32 %v5271_v12, %v1951_v52  ;;  %vm3055_vm4 = vcmp.gt.f32.partialorder %v4807_v38, %v4619_v60  ;;  %v9019_v38 = vld [vmem:[#allocation54_spill] sm:$0xff] }
 0x1cf   : > { %vm3092_vm5 = vmand %vm3055_vm4, %vm3076_vm0 }
 0x1d0   : > { %2049 = vperm.xlu1 %3990, %v5261_v13   ;;  %2054 = vperm.xlu0 %3989, %v5274_v20  }
 0x1d1   : > { %v1955_v36 = vpop.permute.xlu1 %1954 }
 0x1d2   : > { %v5289_v57 = vadd.f32 %v5286_v56, %v1955_v36  ;;  %v5370_v27 = vsub.f32 %v5286_v56, %v1955_v36 }
 0x1d4   : > { %2059 = vperm.xlu1 %3990, %v5281_v10   ;;  %2064 = vperm.xlu0 %3989, %v5289_v57  }
 0x1d8   : > { %2069 = vperm.xlu1 %3990, %v5293_v9   ;;  %2111 = vperm.xlu0 %3989, %v5300_v8  }
 0x1dc   : > { %2116 = vperm.xlu1 %3990, %v5309_v59   ;;  %2121 = vperm.xlu0 %3989, %v5313_v3  }
 0x1e0   : > { %2126 = vperm.xlu1 %3990, %v5317_v41   ;;  %2131 = vperm.xlu0 %3989, %v5323_v24  }
 0x1e4   : > { %2136 = vperm.xlu1 %3990, %v5327_v39   ;;  %2141 = vperm.xlu0 %3989, %v5333_v34  }
 0x1e8   : > { %2146 = vperm.xlu1 %3990, %v5337_v21   ;;  %2151 = vperm.xlu0 %3989, %v5343_v23  }
 0x1ec   : > { %2156 = vperm.xlu1 %3990, %v5347_v1   ;;  %2161 = vperm.xlu0 %3989, %v5353_v28  }
 0x1f0   : > { %2166 = vperm.xlu1 %3990, %v5357_v22   ;;  %2171 = vperm.xlu0 %3989, %v5362_v49  }
 0x1f4   : > { %2176 = vperm.xlu1 %3990, %v5365_v7   ;;  %2181 = vperm.xlu0 %3989, %v5370_v27  }
 0x1f8   : > { %2186 = vperm.xlu1 %3990, %v5372_v2   ;;  %3991 = vset.pattern.permute.xlu0 %v8982_v11 }
 0x1f9   : > { %1035 = vperm.xlu0 %3991, %v5135_v6  }
 0x1fc   : > { %3992 = vset.pattern.permute.xlu1 %v8982_v11  ;;  %v9015_v11 = vld [vmem:[#allocation55_spill] sm:$0xff] }
 0x1fd   : > { %2246 = vperm.xlu1 %3992, %v4883_v63   ;;  %1047 = vperm.xlu0 %3991, %v5167_v30   ;;  %v5413_v30 = vpop.permute.xlu0 %1999 }
 0x1fe   : > { %8983 = vst [vmem:[#allocation147_spill] sm:$0xff] %v5413_v30 }
 0x201   : > { %2250 = vperm.xlu1 %3992, %v5157_v4   ;;  %1055 = vperm.xlu0 %3991, %v5187_v33  }
 0x205   : > { %2258 = vperm.xlu1 %3992, %v5184_v45   ;;  %1063 = vperm.xlu0 %3991, %v5207_v51   ;;  %v8984_v51 = vmov 2  }
 0x209   : > { %2266 = vperm.xlu1 %3992, %v5204_v47   ;;  %1071 = vperm.xlu0 %3991, %v5218_v61  }
 0x20d   : > { %2274 = vperm.xlu1 %3992, %v5233_v55   ;;  %1079 = vperm.xlu0 %3991, %v5257_v25  }
 0x211   : > { %2282 = vperm.xlu1 %3992, %v5252_v35   ;;  %1087 = vperm.xlu0 %3991, %v5278_v16  }
 0x215   : > { %2290 = vperm.xlu1 %3992, %v5274_v20   ;;  %1095 = vperm.xlu0 %3991, %v4203_v50  }
 0x219   : > { %2298 = vperm.xlu1 %3992, %v5289_v57   ;;  %2242 = vperm.xlu0 %3991, %v5139_v31  }
 0x21d   : > { %2326 = vperm.xlu1 %3992, %v5300_v8   ;;  %2254 = vperm.xlu0 %3991, %v5171_v17  }
 0x221   : > { %2334 = vperm.xlu1 %3992, %v5313_v3   ;;  %2262 = vperm.xlu0 %3991, %v5191_v58  }
 0x225   : > { %2342 = vperm.xlu1 %3992, %v5323_v24   ;;  %2270 = vperm.xlu0 %3991, %v5211_v18  }
 0x229   : > { %2350 = vperm.xlu1 %3992, %v5333_v34   ;;  %2278 = vperm.xlu0 %3991, %v5222_v42  }
 0x22d   : > { %2358 = vperm.xlu1 %3992, %v5343_v23   ;;  %2286 = vperm.xlu0 %3991, %v5261_v13  }
 0x231   : > { %2366 = vperm.xlu1 %3992, %v5353_v28   ;;  %2294 = vperm.xlu0 %3991, %v5281_v10  }
 0x235   : > { %2374 = vperm.xlu1 %3992, %v5362_v49   ;;  %2302 = vperm.xlu0 %3991, %v5293_v9  }
 0x237   : > { %v5409_v6 = vpop.permute.xlu1 %1994 }
 0x239   : > { %2382 = vperm.xlu1 %3992, %v5370_v27   ;;  %2330 = vperm.xlu0 %3991, %v5309_v59  }
 0x23b   : > { %v5415_v33 = vpop.permute.xlu1 %2004 }
 0x23d   : > { %3994 = vset.pattern.permute.xlu1 %v8984_v51  ;;  %2338 = vperm.xlu0 %3991, %v5317_v41  }
 0x23e   : > { %2442 = vperm.xlu1 %3994, %v5139_v31  }
 0x23f   : > { %v5420_v61 = vpop.permute.xlu0 %2014  ;;  %v5422_v25 = vpop.permute.xlu1 %2009 }
 0x240   : > { %8985 = vst [vmem:[#allocation148_spill] sm:$0xff] %v5422_v25  ;;  %v9079_v25 = vld [vmem:[#allocation50_spill] sm:$0xff] }
 0x241   : > { %2346 = vperm.xlu0 %3991, %v5327_v39  }
 0x242   : > { %2450 = vperm.xlu1 %3994, %v5157_v4  }
 0x243   : > { %v5426_v29 = vpop.permute.xlu0 %2024  ;;  %v5428_v52 = vpop.permute.xlu1 %2019 }
 0x244   : > { %8986 = vst [vmem:[#allocation149_spill] sm:$0xff] %v5428_v52 }
 0x245   : > { %2354 = vperm.xlu0 %3991, %v5337_v21  }
 0x246   : > { %2454 = vperm.xlu1 %3994, %v5171_v17  }
 0x247   : > { %v5432_v46 = vpop.permute.xlu0 %2034  ;;  %v5434_v19 = vpop.permute.xlu1 %2029 }
 0x248   : > { %8987 = vst [vmem:[#allocation150_spill] sm:$0xff] %v5434_v19  ;;  %v9066_v19 = vld [vmem:[#allocation8_spill] sm:$0xff] }
 0x249   : > { %2362 = vperm.xlu0 %3991, %v5347_v1  }
 0x24a   : > { %2462 = vperm.xlu1 %3994, %v5191_v58  }
 0x24b   : > { %v5438_v31 = vpop.permute.xlu0 %2044  ;;  %v5440_v32 = vpop.permute.xlu1 %2039 }
 0x24c   : > { %8988 = vst [vmem:[#allocation151_spill] sm:$0xff] %v5438_v31  ;;  %8989 = vst [vmem:[#allocation152_spill] sm:$0xff] %v5440_v32  ;;  %v9065_v32 = vld [vmem:[#allocation6_spill] sm:$0xff] }
 0x24d   : > { %2370 = vperm.xlu0 %3991, %v5357_v22  }
 0x24e   : > { %2470 = vperm.xlu1 %3994, %v5211_v18  }
 0x24f   : > { %v5444_v4 = vpop.permute.xlu0 %2054  ;;  %v5446_v16 = vpop.permute.xlu1 %2049 }
 0x250   : > { %8990 = vst [vmem:[#allocation153_spill] sm:$0xff] %v5444_v4  ;;  %8991 = vst [vmem:[#allocation154_spill] sm:$0xff] %v5446_v16  ;;  %v9099_v4 = vld [vmem:[#allocation24_spill] sm:$0xff] }
 0x251   : > { %2378 = vperm.xlu0 %3991, %v5365_v7  }
 0x252   : > { %2478 = vperm.xlu1 %3994, %v5222_v42  }
 0x253   : > { %v5450_v17 = vpop.permute.xlu0 %2064  ;;  %v5452_v14 = vpop.permute.xlu1 %2059 }
 0x254   : > { %8992 = vst [vmem:[#allocation155_spill] sm:$0xff] %v5450_v17  ;;  %8993 = vst [vmem:[#allocation156_spill] sm:$0xff] %v5452_v14 }
 0x255   : > { %2386 = vperm.xlu0 %3991, %v5372_v2  }
 0x256   : > { %2486 = vperm.xlu1 %3994, %v5261_v13  }
 0x257   : > { %v5456_v58 = vpop.permute.xlu0 %2111  ;;  %v5458_v5 = vpop.permute.xlu1 %2069 }
 0x258   : > { %8994 = vst [vmem:[#allocation157_spill] sm:$0xff] %v5458_v5  ;;  %v9042_v5 = vmov 0 }
 0x259   : > { %3993 = vset.pattern.permute.xlu0 %v8984_v51  ;;  %v9016_v51 = vld [vmem:[#allocation51_spill] sm:$0xff] }
 0x25a   : > { %2494 = vperm.xlu1 %3994, %v5281_v10   ;;  %1155 = vperm.xlu0 %3993, %v5305_v15   ;;  %vm3180_vm11 = vcmp.gt.f32.partialorder %v9016_v51, %v9015_v11  ;;  %vm3212_vm3 = vcmp.lt.f32.partialorder %v9016_v51, %v9019_v38 }
 0x25b   : > { %v5463_v18 = vpop.permute.xlu0 %2121  ;;  %v5465_v42 = vpop.permute.xlu1 %2116 }
 0x25c   : > { %8995 = vst [vmem:[#allocation158_spill] sm:$0xff] %v5465_v42 }
 0x25e   : > { %2502 = vperm.xlu1 %3994, %v5293_v9   ;;  %1167 = vperm.xlu0 %3993, %v5180_v37  }
 0x25f   : > { %v5469_v36 = vpop.permute.xlu0 %2131  ;;  %v5471_v13 = vpop.permute.xlu1 %2126 }
 0x260   : > { %8996 = vst [vmem:[#allocation159_spill] sm:$0xff] %v5471_v13 }
 0x262   : > { %2530 = vperm.xlu1 %3994, %v5309_v59   ;;  %1175 = vperm.xlu0 %3993, %v5200_v26  }
 0x263   : > { %v5475_v48 = vpop.permute.xlu0 %2141  ;;  %v5477_v10 = vpop.permute.xlu1 %2136 }
 0x264   : > { %8997 = vst [vmem:[#allocation160_spill] sm:$0xff] %v5477_v10 }
 0x266   : > { %2538 = vperm.xlu1 %3994, %v5317_v41   ;;  %1183 = vperm.xlu0 %3993, %v5229_v53  }
 0x267   : > { %v5481_v0 = vpop.permute.xlu0 %2151  ;;  %v5483_v54 = vpop.permute.xlu1 %2146 }
 0x268   : > { %8998 = vst [vmem:[#allocation161_spill] sm:$0xff] %v5483_v54 }
 0x26a   : > { %2546 = vperm.xlu1 %3994, %v5327_v39   ;;  %1191 = vperm.xlu0 %3993, %v5248_v40  }
 0x26b   : > { %v5487_v37 = vpop.permute.xlu0 %2161  ;;  %v5489_v50 = vpop.permute.xlu1 %2156 }
 0x26c   : > { %8999 = vst [vmem:[#allocation162_spill] sm:$0xff] %v5489_v50  ;;  %v5493_v26 = vpop.f32.mrb[4].mxu0  ;;  %v9064_v50 = vld [vmem:[#allocation129_spill] sm:$0xff] }
 0x26d   : > { %9000 = vst [vmem:[#allocation163_spill] sm:$0xff] %v5493_v26  ;;  %v5499_v15 = vpop.f32.mrb[5].mxu0  ;;  %v1451_v54 = vsub.f32 %v9065_v32, %v9064_v50  ;;  %v1454_v10 = vsub.f32 %v9066_v19, %v9064_v50  ;;  %v9072_v32 = vld [vmem:[#allocation10_spill] sm:$0xff]  ;;  %v9073_v19 = vld [vmem:[#allocation28_spill] sm:$0xff] }
 0x26e   : > { %2554 = vperm.xlu1 %3994, %v5337_v21   ;;  %1199 = vperm.xlu0 %3993, %v5271_v12   ;;  %9003 = vst [vmem:[#allocation166_spill] sm:$0xff] %v5499_v15  ;;  %v9010_v21 = vld [vmem:[#allocation46_spill] sm:$0xff]  ;;  %v9025_v15 = vld [vmem:[#allocation53_spill] sm:$0xff]  ;;  %v1456_v13 = vsub.f32 %v9072_v32, %v9064_v50  ;;  %v9078_v32 = vld [vmem:[#allocation40_spill] sm:$0xff] }
 0x26f   : > { %v5495_v9 = vpop.permute.xlu0 %2171  ;;  %v5497_v53 = vpop.permute.xlu1 %2166  ;;  %v5733_v17 = vrot.slane %v9079_v25, %v9078_v32 }
 0x270   : > { %9001 = vst [vmem:[#allocation164_spill] sm:$0xff] %v5495_v9  ;;  %9002 = vst [vmem:[#allocation165_spill] sm:$0xff] %v5497_v53  ;;  %v9054_v53 = vld [vmem:[#allocation23_spill] sm:$0xff] }
 0x272   : > { %2562 = vperm.xlu1 %3994, %v5347_v1   ;;  %1207 = vperm.xlu0 %3993, %v5286_v56   ;;  %v9011_v1 = vld [vmem:[#allocation48_spill] sm:$0xff] }
 0x273   : > { %v5503_v40 = vpop.permute.xlu0 %2181  ;;  %v5505_v59 = vpop.permute.xlu1 %2176 }
 0x274   : > { %9004 = vst [vmem:[#allocation167_spill] sm:$0xff] %v5503_v40  ;;  %9005 = vst [vmem:[#allocation168_spill] sm:$0xff] %v5505_v59  ;;  %v5513_v12 = vpop.f32.mrb[6].mxu0  ;;  %v9045_v59 = vld [vmem:[#allocation20_spill] sm:$0xff]  ;;  %v9083_v40 = vmov 0 }
 0x275   : > { %9006 = vst [vmem:[#allocation169_spill] sm:$0xff] %v5513_v12  ;;  %v5521_v41 = vpop.f32.mrb[7].mxu0 }
 0x276   : > { %2570 = vperm.xlu1 %3994, %v5357_v22   ;;  %2446 = vperm.xlu0 %3993, %v4883_v63   ;;  %9008 = vst [vmem:[#allocation171_spill] sm:$0xff] %v5521_v41  ;;  %v9014_v22 = vld [vmem:[#allocation7_spill] sm:$0xff]  ;;  %v9022_v41 = vmov 0  ;;  %v9034_v63 = vmov 0 }
 0x277   : > { %v5519_v56 = vpop.permute.xlu1 %2186  ;;  %vm3058_vm12 = vcmp.gt.f32.partialorder %v9014_v22, %v4619_v60  ;;  %vm3079_vm4 = vcmp.lt.f32.partialorder %v9014_v22, %v4622_v62  ;;  %vm3269_vm14 = vcmp.gt.f32.partialorder %v9014_v22, %v4625_v44 }
 0x278   : > { %9007 = vst [vmem:[#allocation170_spill] sm:$0xff] %v5519_v56  ;;  %v5523_v39 = vpop.permute.xlu0 %1035  ;;  %v9031_v56 = vld [vmem:[#allocation57_spill] sm:$0xff] }
 0x279   : > { %9009 = vst [vmem:[#allocation172_spill] sm:$0xff] %v5523_v39  ;;  %vm3112_vm6 = vcmp.gt.f32.partialorder %v5523_v39, %v9010_v21  ;;  %vm3148_vm7 = vcmp.lt.f32.partialorder %v5523_v39, %v9011_v1 }
 0x27a   : > { %2578 = vperm.xlu1 %3994, %v5365_v7   ;;  %2458 = vperm.xlu0 %3993, %v5184_v45   ;;  %vm3128_vm10 = vmand %vm3092_vm5, %vm3112_vm6  ;;  %v9020_v45 = vld [vmem:[#allocation47_spill] sm:$0xff]  ;;  %v5549_v7 = vpop.f32.mrb[0].mxu1 }
 0x27b   : > { %vm3164_vm0 = vmand %vm3128_vm10, %vm3148_vm7  ;;  %vm3323_vm5 = vcmp.gt.f32.partialorder %v5523_v39, %v9020_v45  ;;  %9021 = vst [vmem:[#allocation55_spill] sm:$0xff] %v5549_v7  ;;  %vm3359_vm7 = vcmp.lt.f32.partialorder %v5523_v39, %v9025_v15 }
 0x27c   : > { %v5541_v12 = vpop.permute.xlu0 %1047  ;;  %v5543_v26 = vpop.permute.xlu1 %2246  ;;  %vm3196_vm1 = vmand %vm3164_vm0, %vm3180_vm11  ;;  %vm3290_vm11 = vcmp.lt.f32.partialorder %v9014_v22, %v4628_v43  ;;  %v9057_v22 = vmov 0 }
 0x27d   : > { %9017 = vst [vmem:[#allocation46_spill] sm:$0xff] %v5541_v12  ;;  %9018 = vst [vmem:[#allocation48_spill] sm:$0xff] %v5543_v26  ;;  %v5563_v26 = vpop.f32.mrb[1].mxu1 }
 0x27e   : > { %vm5551_vm6 = vmand %vm3196_vm1, %vm3212_vm3  ;;  %2466 = vperm.xlu0 %3993, %v5204_v47   ;;  %2586 = vperm.xlu1 %3994, %v5372_v2   ;;  %9028 = vst [vmem:[#allocation47_spill] sm:$0xff] %v5563_v26  ;;  %v9032_v47 = vld [vmem:[#allocation59_spill] sm:$0xff]  ;;  %v9033_v2 = vld [vmem:[#allocation17_spill] sm:$0xff]  ;;  %v9037_v26 = vmov 3  }
 0x27f   : > { %v9023_v41 = vsel %vm5551_vm6, 4294967295, %v9022_v41  ;;  %vm5557_vm10 = vmand %vm3058_vm12, %vm3079_vm4  ;;  %vm3395_vm4 = vcmp.gt.f32.partialorder %v9016_v51, %v9031_v56  ;;  %vm3431_vm3 = vcmp.lt.f32.partialorder %v9016_v51, %v9032_v47 }
 0x280   : > { %9024 = vst [vmem:[#allocation54_spill] sm:$0xff] %v9023_v41  ;;  %vm3339_vm0 = vmand %vm5529_vm8, %vm3323_vm5  ;;  %v5571_v7 = vpop.permute.xlu0 %1055  ;;  %v5573_v39 = vpop.permute.xlu1 %2250  ;;  %v9047_v41 = vld [vmem:[#allocation61_spill] sm:$0xff] }
 0x281   : > { %9030 = vst [vmem:[#allocation53_spill] sm:$0xff] %v5571_v7  ;;  %vm3375_vm12 = vmand %vm3339_vm0, %vm3359_vm7  ;;  %vm3115_vm7 = vcmp.gt.f32.partialorder %v5541_v12, %v9010_v21  ;;  %vm3151_vm0 = vcmp.lt.f32.partialorder %v5541_v12, %v9011_v1 }
 0x282   : > { %vm3411_vm1 = vmand %vm3375_vm12, %vm3395_vm4  ;;  %2474 = vperm.xlu0 %3993, %v5233_v55   ;;  %2691 = vrot.lane.b32.xlu1 %v9033_v2, %s4248_s20 }
 0x283   : > { %vm5586_vm8 = vmand %vm3411_vm1, %vm3431_vm3  ;;  %3996 = vset.pattern.permute.xlu1 %v9037_v26 }
 0x284   : > { %v9035_v63 = vsel %vm5586_vm8, 4294967295, %v9034_v63  ;;  %vm8687_vm5 = vmand %vm5586_vm8, %vm4698_vm2  ;;  %v5597_v51 = vpop.permute.xlu0 %1063  ;;  %v5599_v55 = vpop.permute.xlu1 %2258 }
 0x285   : > { %9036 = vst [vmem:[#allocation57_spill] sm:$0xff] %v9035_v63  ;;  %9038 = vst [vmem:[#allocation59_spill] sm:$0xff] %v5597_v51  ;;  %v9046_v63 = vld [vmem:[#allocation9_spill] sm:$0xff] }
 0x286   : > { %vm5603_vm12 = vmand %vm3269_vm14, %vm3290_vm11  ;;  %2482 = vperm.xlu0 %3993, %v5252_v35   ;;  %2695 = vrot.lane.b32.xlu1 %v9045_v59, %s4248_s20  ;;  %vm3060_vm11 = vcmp.gt.f32.partialorder %v9046_v63, %v4619_v60  ;;  %vm3081_vm3 = vcmp.lt.f32.partialorder %v9046_v63, %v4622_v62  ;;  %v9049_v35 = vmov 0 }
 0x287   : > { %vm9041_vm4 = vmand %vm5551_vm6, %vm4698_vm2  ;;  %vm3271_vm6 = vcmp.gt.f32.partialorder %v9046_v63, %v4625_v44 }
 0x288   : > { %vm5617_vm1 = vmand %vm9041_vm4, %vm8687_vm5  ;;  %vm3183_vm4 = vcmp.gt.f32.partialorder %v9047_v41, %v9015_v11  ;;  %v5632_v14 = vpop.permute.xlu0 %1071 }
 0x289   : > { %v9043_v5 = vsel %vm5617_vm1, 4294967295, %v9042_v5  ;;  %vm3131_vm14 = vmand %vm5557_vm10, %vm3115_vm7  ;;  %9048 = vst [vmem:[#allocation174_spill] sm:$0xff] %v5632_v14  ;;  %vm3215_vm1 = vcmp.lt.f32.partialorder %v9047_v41, %v9019_v38  ;;  %vm3326_vm10 = vcmp.gt.f32.partialorder %v5541_v12, %v9020_v45 }
 0x28a   : > { %9044 = vst [vmem:[#allocation173_spill] sm:$0xff] %v9043_v5  ;;  %vm3167_vm15 = vmand %vm3131_vm14, %vm3151_vm0  ;;  %v5634_v5 = vpop.permute.xlu1 %2266  ;;  %vm3362_vm0 = vcmp.lt.f32.partialorder %v5541_v12, %v9025_v15  ;;  %2490 = vperm.xlu0 %3993, %v5274_v20   ;;  %2699 = vrot.lane.b32.xlu1 %v9054_v53, %s4248_s20  ;;  %v9056_v20 = vld [vmem:[#allocation26_spill] sm:$0xff]  ;;  %v5698_v52 = vpop.f32.mrb[2].mxu1 }
 0x28b   : > { %vm3199_vm5 = vmand %vm3167_vm15, %vm3183_vm4  ;;  %vm3434_vm4 = vcmp.lt.f32.partialorder %v9047_v41, %v9032_v47  ;;  %vm3292_vm15 = vcmp.lt.f32.partialorder %v9046_v63, %v4628_v43  ;;  %9067 = vst [vmem:[#allocation6_spill] sm:$0xff] %v5698_v52 }
 0x28c   : > { %vm5640_vm7 = vmand %vm3199_vm5, %vm3215_vm1  ;;  %v5659_v16 = vpop.permute.xlu0 %1079 }
 0x28d   : > { %v9050_v35 = vsel %vm5640_vm7, 4294967295, %v9049_v35  ;;  %vm5646_vm14 = vmand %vm3060_vm11, %vm3081_vm3  ;;  %9055 = vst [vmem:[#allocation176_spill] sm:$0xff] %v5659_v16  ;;  %vm3398_vm11 = vcmp.gt.f32.partialorder %v9047_v41, %v9031_v56  ;;  %v5757_v16 = vand.u32 2147483647, %v1456_v13  ;;  %v9093_v13 = vld [vmem:[#allocation16_spill] sm:$0xff] }
 0x28e   : > { %9051 = vst [vmem:[#allocation175_spill] sm:$0xff] %v9050_v35  ;;  %vm3342_vm5 = vmand %vm5603_vm12, %vm3326_vm10  ;;  %v5661_v12 = vpop.permute.xlu1 %2274  ;;  %2498 = vperm.xlu0 %3993, %v5289_v57   ;;  %2703 = vrot.lane.b32.xlu1 %v9056_v20, %s4248_s20  ;;  %v9075_v35 = vld [vmem:[#allocation11_spill] sm:$0xff]  ;;  %v9098_v57 = vld [vmem:[#allocation124_spill] sm:$0xff] }
 0x28f   : > { %vm3378_vm1 = vmand %vm3342_vm5, %vm3362_vm0  ;;  %vm3117_vm0 = vcmp.gt.f32.partialorder %v5571_v7, %v9010_v21  ;;  %vm3153_vm5 = vcmp.lt.f32.partialorder %v5571_v7, %v9011_v1  ;;  %9089 = vst [vmem:[#allocation182_spill] sm:$0xff] %v5757_v16 }
 0x290   : > { %vm3414_vm3 = vmand %vm3378_vm1, %vm3398_vm11  ;;  %v5684_v41 = vpop.permute.xlu0 %1087 }
 0x291   : > { %vm5674_vm12 = vmand %vm3414_vm3, %vm3434_vm4  ;;  %9060 = vst [vmem:[#allocation178_spill] sm:$0xff] %v5684_v41  ;;  %v9069_v41 = vmov 0  ;;  %vm3062_vm3 = vcmp.gt.f32.partialorder %v9075_v35, %v4619_v60  ;;  %vm3083_vm4 = vcmp.lt.f32.partialorder %v9075_v35, %v4622_v62 }
 0x292   : > { %v9058_v22 = vsel %vm5674_vm12, 4294967295, %v9057_v22  ;;  %vm8696_vm10 = vmand %vm5674_vm12, %vm4698_vm2  ;;  %v5686_v63 = vpop.permute.xlu1 %2282  ;;  %2526 = vperm.xlu0 %3993, %v5300_v8   ;;  %2707 = vrot.lane.b32.xlu1 %v9073_v19, %s4248_s20  ;;  %v9077_v8 = vld [vmem:[#allocation64_spill] sm:$0xff]  ;;  %v9090_v19 = vld [vmem:[#allocation14_spill] sm:$0xff] }
 0x293   : > { %9059 = vst [vmem:[#allocation177_spill] sm:$0xff] %v9058_v22  ;;  %9061 = vst [vmem:[#allocation179_spill] sm:$0xff] %v5686_v63  ;;  %v5719_v22 = vpop.f32.mrb[3].mxu1  ;;  %v1460_v26 = vsub.f32 %v9090_v19, %v9064_v50  ;;  %v9095_v19 = vld [vmem:[#allocation19_spill] sm:$0xff] }
 0x294   : > { %vm5690_vm1 = vmand %vm3271_vm6, %vm3292_vm15  ;;  %9074 = vst [vmem:[#allocation10_spill] sm:$0xff] %v5719_v22  ;;  %v5735_v22 = vpop.permute.xlu0 %1095  ;;  %v1464_v16 = vsub.f32 %v9095_v19, %v9064_v50  ;;  %v1103_v19 = vsub.f32 %v9099_v4, %v9098_v57  ;;  %v9101_v63 = vld [vmem:[#allocation43_spill] sm:$0xff] }
 0x295   : > { %vm9068_vm6 = vmand %vm5640_vm7, %vm4698_vm2  ;;  %v5801_v9 = vrot.slane %v9079_v25, %v9101_v63  ;;  %v9105_v25 = vmov 0 }
 0x296   : > { %vm5710_vm15 = vmand %vm9068_vm6, %vm8696_vm10  ;;  %vm3185_vm10 = vcmp.gt.f32.partialorder %v9077_v8, %v9015_v11  ;;  %v5737_v30 = vpop.permute.xlu1 %2290  ;;  %2534 = vperm.xlu0 %3993, %v5313_v3   ;;  %v9094_v3 = vld [vmem:[#allocation13_spill] sm:$0xff] }
 0x297   : > { %v9070_v41 = vsel %vm5710_vm15, 4294967295, %v9069_v41  ;;  %vm3133_vm11 = vmand %vm5646_vm14, %vm3117_vm0  ;;  %9081 = vst [vmem:[#allocation40_spill] sm:$0xff] %v5737_v30  ;;  %vm3217_vm0 = vcmp.lt.f32.partialorder %v9077_v8, %v9019_v38  ;;  %vm3328_vm15 = vcmp.gt.f32.partialorder %v5571_v7, %v9020_v45  ;;  %v5755_v30 = vand.u32 2147483647, %v1454_v10 }
 0x298   : > { %9071 = vst [vmem:[#allocation8_spill] sm:$0xff] %v9070_v41  ;;  %v9076_v41 = vld [vmem:[#allocation12_spill] sm:$0xff]  ;;  %vm3169_vm6 = vmand %vm3133_vm11, %vm3153_vm5  ;;  %vm3364_vm11 = vcmp.lt.f32.partialorder %v5571_v7, %v9025_v15 }
 0x299   : > { %v1458_v52 = vsub.f32 %v9076_v41, %v9064_v50  ;;  %9080 = vst [vmem:[#allocation12_spill] sm:$0xff] %v5735_v22  ;;  %vm3201_vm14 = vmand %vm3169_vm6, %vm3185_vm10  ;;  %v5743_v41 = vand.u32 2147483647, %v1451_v54  ;;  %v9091_v54 = vld [vmem:[#allocation31_spill] sm:$0xff]  ;;  %vm3294_vm6 = vcmp.lt.f32.partialorder %v9075_v35, %v4628_v43  ;;  %v9103_v7 = vld [vmem:[#allocation32_spill] sm:$0xff] }
 0x29a   : > { %vm5745_vm5 = vmand %vm3201_vm14, %vm3217_vm0  ;;  %9088 = vst [vmem:[#allocation181_spill] sm:$0xff] %v5755_v30  ;;  %2711 = vrot.lane.b32.xlu1 %v9091_v54, %s4248_s20  ;;  %v9096_v30 = vld [vmem:[#allocation49_spill] sm:$0xff]  ;;  %vm3436_vm14 = vcmp.lt.f32.partialorder %v9077_v8, %v9032_v47  ;;  %2542 = vperm.xlu0 %3993, %v5323_v24   ;;  %v5834_v24 = vand.u32 2147483647, %v1464_v16 }
 0x29b   : > { %9082 = vst [vmem:[#allocation50_spill] sm:$0xff] %v5743_v41  ;;  %v9084_v40 = vsel %vm5745_vm5, 4294967295, %v9083_v40  ;;  %vm5751_vm7 = vmand %vm3062_vm3, %vm3083_vm4  ;;  %vm3273_vm3 = vcmp.gt.f32.partialorder %v9075_v35, %v4625_v44  ;;  %v5770_v10 = vand.u32 2147483647, %v1458_v52  ;;  %v1462_v41 = vsub.f32 %v9093_v13, %v9064_v50  ;;  %v2243_v13 = vpop.permute.xlu0 %2242  ;;  %v9100_v50 = vld [vmem:[#allocation29_spill] sm:$0xff] }
 0x29c   : > { %9085 = vst [vmem:[#allocation180_spill] sm:$0xff] %v9084_v40  ;;  %vm8706_vm10 = vmand %vm5745_vm5, %vm4698_vm2  ;;  %v5784_v54 = vrot.slane %v9096_v30, %v9078_v32  ;;  %v2193_v52 = vmax.f32 %v5456_v58, %v5733_v17  ;;  %v1106_v32 = vsub.f32 %v9100_v50, %v9098_v57  ;;  %v5805_v58 = vand.u32 2147483647, %v1460_v26  ;;  %v9104_v50 = vld [vmem:[#allocation34_spill] sm:$0xff] }
 0x29d   : > { %9092 = vst [vmem:[#allocation14_spill] sm:$0xff] %v5770_v10  ;;  %vm3344_vm4 = vmand %vm5690_vm1, %vm3328_vm15  ;;  %v5788_v10 = vpop.permute.xlu1 %2298  ;;  %vm3400_vm15 = vcmp.gt.f32.partialorder %v9077_v8, %v9031_v56  ;;  %v5820_v26 = vand.u32 2147483647, %v1462_v41  ;;  %v9109_v8 = vld [vmem:[#allocation35_spill] sm:$0xff]  ;;  %v2195_v41 = vmax.f32 %v5463_v18, %v5733_v17 }
 0x29e   : > { %9097 = vst [vmem:[#allocation16_spill] sm:$0xff] %v5788_v10  ;;  %vm3380_vm1 = vmand %vm3344_vm4, %vm3364_vm11  ;;  %v1108_v10 = vsub.f32 %v9103_v7, %v9098_v57  ;;  %v2076_v31 = vmin.f32 %v5409_v6, %v5784_v54  ;;  %2715 = vrot.lane.b32.xlu1 %v9104_v50, %s4248_s20  ;;  %v5826_v6 = vrot.slane %v9096_v30, %v9101_v63  ;;  %v5854_v16 = vand.u32 2147483647, %v1106_v32  ;;  %v9119_v32 = vld [vmem:[#allocation41_spill] sm:$0xff] }
 0x29f   : > { %vm3416_vm0 = vmand %vm3380_vm1, %vm3400_vm15  ;;  %9102 = vst [vmem:[#allocation19_spill] sm:$0xff] %v5805_v58  ;;  %v1110_v58 = vsub.f32 %v9109_v8, %v9098_v57  ;;  %vm3119_vm1 = vcmp.gt.f32.partialorder %v5597_v51, %v9010_v21  ;;  %vm3155_vm15 = vcmp.lt.f32.partialorder %v5597_v51, %v9011_v1  ;;  %v1114_v40 = vsub.f32 %v9119_v32, %v9098_v57 }
 0x2a0   : > { %vm5814_vm11 = vmand %vm3416_vm0, %vm3436_vm14  ;;  %9108 = vst [vmem:[#allocation24_spill] sm:$0xff] %v5820_v26  ;;  %v2209_v7 = vsub.f32 %v2076_v31, %v2193_v52  ;;  %v5838_v26 = vpop.permute.xlu0 %2254  ;;  %v5852_v31 = vand.u32 2147483647, %v1103_v19  ;;  %v2309_v18 = vmin.f32 %v2243_v13, %v5826_v6  ;;  %v9114_v52 = vmov 0  ;;  %v9118_v13 = vld [vmem:[#allocation38_spill] sm:$0xff]  ;;  %2550 = vperm.xlu0 %3993, %v5333_v34  }
 0x2a1   : > { %v9106_v25 = vsel %vm5814_vm11, 4294967295, %v9105_v25  ;;  %vm8708_vm14 = vmand %vm5814_vm11, %vm4698_vm2  ;;  %9110 = vst [vmem:[#allocation43_spill] sm:$0xff] %v5834_v24  ;;  %v2327_v8 = vpop.permute.xlu1 %2326  ;;  %v1112_v19 = vsub.f32 %v9118_v13, %v9098_v57  ;;  %v2197_v32 = vmax.f32 %v5469_v36, %v5733_v17 }
 0x2a2   : > { %9107 = vst [vmem:[#allocation49_spill] sm:$0xff] %v9106_v25  ;;  %vm5848_vm0 = vmand %vm3273_vm3, %vm3294_vm6  ;;  %v2393_v30 = vmax.f32 %v2327_v8, %v5801_v9  ;;  %v5876_v8 = vand.u32 2147483647, %v1108_v10  ;;  %v2078_v25 = vmin.f32 %v5415_v33, %v5784_v54  ;;  %v5892_v10 = vand.u32 2147483647, %v1110_v58  ;;  %v9122_v33 = vld [vmem:[#allocation67_spill] sm:$0xff] }
 0x2a3   : > { %9113 = vst [vmem:[#allocation183_spill] sm:$0xff] %v5854_v16  ;;  %vm5868_vm3 = vmand %vm8706_vm10, %vm8708_vm14  ;;  %vm3187_vm6 = vcmp.gt.f32.partialorder %v9122_v33, %v9015_v11  ;;  %vm3219_vm4 = vcmp.lt.f32.partialorder %v9122_v33, %v9019_v38  ;;  %v2225_v34 = vmax.f32 %v2209_v7, 0.0  ;;  %v5928_v7 = vand.u32 2147483647, %v1114_v40  ;;  %v5937_v16 = vpop.f32.mrb[4].mxu1  ;;  %v9136_v40 = vld [vmem:[#allocation15_spill] sm:$0xff] }
 0x2a4   : > { %v9115_v52 = vsel %vm5868_vm3, 4294967295, %v9114_v52  ;;  %9117 = vst [vmem:[#allocation185_spill] sm:$0xff] %v5876_v8  ;;  %vm3135_vm10 = vmand %vm5751_vm7, %vm3119_vm1  ;;  %v2409_v35 = vsub.f32 %v2309_v18, %v2393_v30  ;;  %v2211_v24 = vsub.f32 %v2078_v25, %v2195_v41  ;;  %v5903_v22 = vpop.permute.xlu0 %2262  ;;  %vm3330_vm1 = vcmp.gt.f32.partialorder %v5597_v51, %v9020_v45  ;;  %v9133_v41 = vld [vmem:[#allocation133_spill] sm:$0xff]  ;;  %2558 = vperm.xlu0 %3993, %v5343_v23  }
 0x2a5   : > { %9116 = vst [vmem:[#allocation184_spill] sm:$0xff] %v9115_v52  ;;  %v9120_v52 = vld [vmem:[#allocation37_spill] sm:$0xff]  ;;  %9121 = vst [vmem:[#allocation186_spill] sm:$0xff] %v5892_v10  ;;  %v2335_v58 = vpop.permute.xlu1 %2334  ;;  %v2311_v18 = vmin.f32 %v5573_v39, %v5826_v6  ;;  %v9123_v10 = vmov 0  ;;  %vm9126_vm3 = vcmp.lt.f32.partialorder %v9094_v3, %v4622_v62  ;;  %v5926_v39 = vand.u32 2147483647, %v1112_v19 }
 0x2a6   : > { %2719 = vrot.lane.b32.xlu1 %v9120_v52, %s4248_s20  ;;  %vm3171_vm14 = vmand %vm3135_vm10, %vm3155_vm15  ;;  %v2425_v30 = vmax.f32 %v2409_v35, 0.0  ;;  %v2395_v13 = vmax.f32 %v2335_v58, %v5801_v9  ;;  %vm3366_vm15 = vcmp.lt.f32.partialorder %v5597_v51, %v9025_v15  ;;  %9131 = vst [vmem:[#allocation189_spill] sm:$0xff] %v5928_v7  ;;  %v9132_v35 = vld [vmem:[#allocation44_spill] sm:$0xff]  ;;  %v9134_v58 = vld [vmem:[#allocation45_spill] sm:$0xff]  ;;  %v2199_v7 = vmax.f32 %v5475_v48, %v5733_v17 }
 0x2a7   : > { %vm3203_vm7 = vmand %vm3171_vm14, %vm3187_vm6  ;;  %vm9127_vm14 = vcmp.gt.f32.partialorder %v9094_v3, %v4619_v60  ;;  %9130 = vst [vmem:[#allocation188_spill] sm:$0xff] %v5926_v39  ;;  %v1116_v25 = vsub.f32 %v9132_v35, %v9098_v57  ;;  %v1683_v8 = vsub.f32 %v9134_v58, %v9133_v41  ;;  %v9137_v19 = vld [vmem:[#allocation52_spill] sm:$0xff]  ;;  %v2080_v58 = vmin.f32 %v5420_v61, %v5784_v54 }
 0x2a8   : > { %vm5910_vm10 = vmand %vm3203_vm7, %vm3219_vm4  ;;  %9135 = vst [vmem:[#allocation45_spill] sm:$0xff] %v5937_v16  ;;  %v1686_v23 = vsub.f32 %v9137_v19, %v9133_v41  ;;  %v5951_v57 = vmul.f32 %v2425_v30, %v2225_v34  ;;  %v2411_v16 = vsub.f32 %v2311_v18, %v2395_v13  ;;  %v2227_v35 = vmax.f32 %v2211_v24, 0.0  ;;  %v5962_v39 = vpop.permute.xlu0 %2270  ;;  %v9140_v18 = vld [vmem:[#allocation56_spill] sm:$0xff]  ;;  %2566 = vperm.xlu0 %3993, %v5353_v28   ;;  %v9146_v28 = vld [vmem:[#allocation62_spill] sm:$0xff] }
 0x2a9   : > { %v9124_v10 = vsel %vm5910_vm10, 4294967295, %v9123_v10  ;;  %vm5922_vm6 = vmand %vm9127_vm14, %vm9126_vm3  ;;  %v2343_v19 = vpop.permute.xlu1 %2342  ;;  %vm3402_vm7 = vcmp.gt.f32.partialorder %v9122_v33, %v9031_v56  ;;  %vm3438_vm4 = vcmp.lt.f32.partialorder %v9122_v33, %v9032_v47  ;;  %v2213_v61 = vsub.f32 %v2080_v58, %v2197_v32 }
 0x2aa   : > { %9125 = vst [vmem:[#allocation187_spill] sm:$0xff] %v9124_v10  ;;  %2755 = vrot.lane.b32.xlu1 %v9033_v2, %s4249_s21  ;;  %9138 = vst [vmem:[#allocation52_spill] sm:$0xff] %v5951_v57  ;;  %v5953_v2 = vpop.f32.mrb[5].mxu1  ;;  %v2313_v24 = vmin.f32 %v5599_v55, %v5826_v6  ;;  %v2427_v63 = vmax.f32 %v2411_v16, 0.0  ;;  %v2397_v48 = vmax.f32 %v2343_v19, %v5801_v9  ;;  %v5974_v13 = vand.u32 2147483647, %v1116_v25 }
 0x2ab   : > { %vm3346_vm14 = vmand %vm5848_vm0, %vm3330_vm1  ;;  %v5976_v34 = vand.u32 2147483647, %v1683_v8  ;;  %v1688_v30 = vsub.f32 %v9140_v18, %v9133_v41  ;;  %v2082_v51 = vmin.f32 %v5426_v29, %v5784_v54  ;;  %v9141_v55 = vmov 0 }
 0x2ac   : > { %vm3382_vm3 = vmand %vm3346_vm14, %vm3366_vm15  ;;  %v5989_v16 = vand.u32 2147483647, %v1686_v23  ;;  %v5991_v32 = vmul.f32 %v2427_v63, %v2227_v35  ;;  %v2413_v8 = vsub.f32 %v2313_v24, %v2397_v48  ;;  %v1690_v29 = vsub.f32 %v9146_v28, %v9133_v41  ;;  %v6003_v23 = vpop.permute.xlu0 %2278  ;;  %v6020_v63 = vpop.f32.mrb[6].mxu1  ;;  %v9157_v48 = vld [vmem:[#allocation65_spill] sm:$0xff]  ;;  %2574 = vperm.xlu0 %3993, %v5362_v49  }
 0x2ad   : > { %vm3418_vm0 = vmand %vm3382_vm3, %vm3402_vm7  ;;  %9139 = vst [vmem:[#allocation190_spill] sm:$0xff] %v5976_v34  ;;  %v2215_v25 = vsub.f32 %v2082_v51, %v2199_v7  ;;  %v2201_v58 = vmax.f32 %v5481_v0, %v5733_v17  ;;  %v2351_v35 = vpop.permute.xlu1 %2350  ;;  %vm9147_vm7 = vcmp.lt.f32.partialorder %v9094_v3, %v4628_v43  ;;  %vm9148_vm14 = vcmp.gt.f32.partialorder %v9094_v3, %v4625_v44  ;;  %v9163_v49 = vld [vmem:[#allocation69_spill] sm:$0xff]  ;;  %v4207_v34 = vld [vmem:[%s4313_s7 + $0x28] sm:$0xff] }
 0x2ae   : > { %2759 = vrot.lane.b32.xlu1 %v9045_v59, %s4249_s21  ;;  %vm5985_vm1 = vmand %vm3418_vm0, %vm3438_vm4  ;;  %9144 = vst [vmem:[#allocation191_spill] sm:$0xff] %v5989_v16  ;;  %v2229_v51 = vmax.f32 %v2213_v61, 0.0  ;;  %v2315_v0 = vmin.f32 %v5634_v5, %v5826_v6  ;;  %v2429_v7 = vmax.f32 %v2413_v8, 0.0  ;;  %v2399_v24 = vmax.f32 %v2351_v35, %v5801_v9  ;;  %v9158_v8 = vld [vmem:[#allocation68_spill] sm:$0xff] }
 0x2af   : > { %v9142_v55 = vsel %vm5985_vm1, 4294967295, %v9141_v55  ;;  %9145 = vst [vmem:[#allocation192_spill] sm:$0xff] %v5991_v32  ;;  %vm8713_vm15 = vmand %vm5985_vm1, %vm4698_vm2  ;;  %v9153_v61 = vmov 0  ;;  %v6040_v5 = vand.u32 2147483647, %v1688_v30  ;;  %v1692_v18 = vsub.f32 %v9157_v48, %v9133_v41  ;;  %v4206_v32 = vld [vmem:[%s4313_s7 + $0x18] sm:$0xff] }
 0x2b0   : > { %9143 = vst [vmem:[#allocation56_spill] sm:$0xff] %v9142_v55  ;;  %vm6013_vm0 = vmand %vm9148_vm14, %vm9147_vm7  ;;  %v1694_v28 = vsub.f32 %v9158_v8, %v9133_v41  ;;  %v2084_v35 = vmin.f32 %v5432_v46, %v5784_v54  ;;  %v6058_v30 = vmul.f32 %v2429_v7, %v2229_v51  ;;  %v2415_v48 = vsub.f32 %v2315_v0, %v2399_v24  ;;  %v6069_v36 = vpop.permute.xlu0 %2286 }
 0x2b1   : > { %9151 = vst [vmem:[#allocation62_spill] sm:$0xff] %v6020_v63  ;;  %vm9152_vm7 = vmand %vm5910_vm10, %vm4698_vm2  ;;  %vm9162_vm4 = vcmp.lt.f32.partialorder %v5632_v14, %v9011_v1  ;;  %vm3221_vm10 = vcmp.lt.f32.partialorder %v9163_v49, %v9019_v38  ;;  %v2231_v46 = vmax.f32 %v2215_v25, 0.0  ;;  %v2203_v10 = vmax.f32 %v5487_v37, %v5733_v17  ;;  %v2359_v51 = vpop.permute.xlu1 %2358  ;;  %2582 = vperm.xlu0 %3993, %v5370_v27   ;;  %v9180_v63 = vld [vmem:[#allocation164_spill] sm:$0xff] }
 0x2b2   : > { %vm6032_vm14 = vmand %vm9152_vm7, %vm8713_vm15  ;;  %9156 = vst [vmem:[#allocation194_spill] sm:$0xff] %v6040_v5  ;;  %2763 = vrot.lane.b32.xlu1 %v9054_v53, %s4249_s21  ;;  %vm9160_vm7 = vcmp.gt.f32.partialorder %v5632_v14, %v9010_v21  ;;  %v2217_v8 = vsub.f32 %v2084_v35, %v2201_v58  ;;  %v2317_v0 = vmin.f32 %v5661_v12, %v5826_v6  ;;  %v2431_v7 = vmax.f32 %v2415_v48, 0.0  ;;  %v9174_v35 = vld [vmem:[#allocation70_spill] sm:$0xff] }
 0x2b3   : > { %v9154_v61 = vsel %vm6032_vm14, 4294967295, %v9153_v61  ;;  %vm3137_vm15 = vmand %vm5922_vm6, %vm9160_vm7  ;;  %9161 = vst [vmem:[#allocation68_spill] sm:$0xff] %v6058_v30  ;;  %vm3189_vm14 = vcmp.gt.f32.partialorder %v9163_v49, %v9015_v11  ;;  %vm3332_vm7 = vcmp.gt.f32.partialorder %v5632_v14, %v9020_v45  ;;  %v2401_v24 = vmax.f32 %v2359_v51, %v5801_v9 }
 0x2b4   : > { %9155 = vst [vmem:[#allocation193_spill] sm:$0xff] %v9154_v61  ;;  %v6051_v61 = vpop.f32.mrb[7].mxu1  ;;  %vm3173_vm3 = vmand %vm3137_vm15, %vm9162_vm4  ;;  %v9164_v55 = vmov 0  ;;  %vm3368_vm4 = vcmp.lt.f32.partialorder %v5632_v14, %v9025_v15  ;;  %vm9167_vm1 = vcmp.lt.f32.partialorder %v9136_v40, %v4622_v62  ;;  %v6092_v12 = vand.u32 2147483647, %v1690_v29  ;;  %v9175_v29 = vld [vmem:[#allocation18_spill] sm:$0xff]  ;;  %v6124_v33 = vpop.permute.xlu0 %2294 }
 0x2b5   : > { %9159 = vst [vmem:[#allocation65_spill] sm:$0xff] %v6051_v61  ;;  %vm3205_vm6 = vmand %vm3173_vm3, %vm3189_vm14  ;;  %vm9168_vm3 = vcmp.gt.f32.partialorder %v9136_v40, %v4619_v60  ;;  %v6094_v25 = vand.u32 2147483647, %v1692_v18  ;;  %v6096_v58 = vand.u32 2147483647, %v1694_v28  ;;  %v1696_v48 = vsub.f32 %v9174_v35, %v9133_v41  ;;  %v9176_v18 = vld [vmem:[#allocation130_spill] sm:$0xff]  ;;  %v2367_v30 = vpop.permute.xlu1 %2366 }
 0x2b6   : > { %vm6076_vm15 = vmand %vm3205_vm6, %vm3221_vm10  ;;  %9171 = vst [vmem:[#allocation196_spill] sm:$0xff] %v6092_v12  ;;  %2767 = vrot.lane.b32.xlu1 %v9056_v20, %s4249_s21  ;;  %v9177_v28 = vld [vmem:[#allocation77_spill] sm:$0xff]  ;;  %v9178_v35 = vld [vmem:[#allocation151_spill] sm:$0xff]  ;;  %v6115_v53 = vmul.f32 %v2431_v7, %v2231_v46  ;;  %v2417_v20 = vsub.f32 %v2317_v0, %v2401_v24  ;;  %v2233_v59 = vmax.f32 %v2217_v8, 0.0  ;;  %v2205_v41 = vmax.f32 %v9180_v63, %v5733_v17 }
 0x2b7   : > { %v9165_v55 = vsel %vm6076_vm15, 4294967295, %v9164_v55  ;;  %vm6088_vm14 = vmand %vm9168_vm3, %vm9167_vm1  ;;  %9172 = vst [vmem:[#allocation197_spill] sm:$0xff] %v6094_v25  ;;  %v1335_v51 = vsub.f32 %v9177_v28, %v9176_v18  ;;  %v2086_v27 = vmin.f32 %v9178_v35, %v5784_v54  ;;  %vm3404_vm6 = vcmp.gt.f32.partialorder %v9163_v49, %v9031_v56  ;;  %v9181_v46 = vld [vmem:[#allocation179_spill] sm:$0xff]  ;;  %v9183_v24 = vld [vmem:[#allocation153_spill] sm:$0xff] }
 0x2b8   : > { %9166 = vst [vmem:[#allocation195_spill] sm:$0xff] %v9165_v55  ;;  %9173 = vst [vmem:[#allocation198_spill] sm:$0xff] %v6096_v58  ;;  %vm3440_vm10 = vcmp.lt.f32.partialorder %v9163_v49, %v9032_v47  ;;  %v2319_v8 = vmin.f32 %v9181_v46, %v5826_v6  ;;  %v2433_v0 = vmax.f32 %v2417_v20, 0.0  ;;  %v2403_v63 = vmax.f32 %v2367_v30, %v5801_v9  ;;  %v9185_v14 = vld [vmem:[#allocation28_spill] sm:$0xff]  ;;  %v9207_v55 = vld [vmem:[#allocation31_spill] sm:$0xff] }
 0x2b9   : > { %9179 = vst [vmem:[#allocation70_spill] sm:$0xff] %v6115_v53  ;;  %vm3348_vm3 = vmand %vm6013_vm0, %vm3332_vm7  ;;  %v2219_v19 = vsub.f32 %v2086_v27, %v2203_v10  ;;  %v6136_v7 = vand.u32 2147483647, %v1696_v48  ;;  %v2088_v28 = vmin.f32 %v9183_v24, %v5784_v54  ;;  %v9184_v35 = vmov 3   ;;  %v9189_v10 = vld [vmem:[#allocation71_spill] sm:$0xff]  ;;  %v4205_v27 = vld [vmem:[%s4313_s7] sm:$0xff]  ;;  %v6170_v24 = vpop.permute.xlu0 %2302 }
 0x2ba   : > { %vm3384_vm1 = vmand %vm3348_vm3, %vm3368_vm4  ;;  %3995 = vset.pattern.permute.xlu0 %v9184_v35  ;;  %2771 = vrot.lane.b32.xlu1 %v9185_v14, %s4249_s21  ;;  %v9186_v49 = vmov 0  ;;  %v6151_v20 = vand.u32 2147483647, %v1335_v51  ;;  %v6153_v30 = vmul.f32 %v2433_v0, %v2233_v59  ;;  %v2419_v48 = vsub.f32 %v2319_v8, %v2403_v63  ;;  %v9192_v46 = vld [vmem:[#allocation176_spill] sm:$0xff]  ;;  %v9194_v0 = vld [vmem:[#allocation167_spill] sm:$0xff]  ;;  %v2375_v35 = vpop.permute.xlu1 %2374 }
 0x2bb   : > { %vm3420_vm0 = vmand %vm3384_vm1, %vm3404_vm6  ;;  %9182 = vst [vmem:[#allocation77_spill] sm:$0xff] %v6136_v7  ;;  %1267 = vperm.xlu0 %3995, %v4205_v27   ;;  %v9193_v59 = vld [vmem:[#allocation80_spill] sm:$0xff]  ;;  %v2221_v8 = vsub.f32 %v2088_v28, %v2205_v41  ;;  %v2207_v63 = vmax.f32 %v9194_v0, %v5733_v17  ;;  %vm9195_vm4 = vcmp.lt.f32.partialorder %v9136_v40, %v4628_v43  ;;  %v2235_v41 = vmax.f32 %v2219_v19, 0.0  ;;  %v9204_v19 = vld [vmem:[#allocation82_spill] sm:$0xff] }
 0x2bc   : > { %vm6143_vm7 = vmand %vm3420_vm0, %vm3440_vm10  ;;  %9190 = vst [vmem:[#allocation164_spill] sm:$0xff] %v6151_v20  ;;  %v1338_v51 = vsub.f32 %v9193_v59, %v9176_v18  ;;  %vm9196_vm3 = vcmp.gt.f32.partialorder %v9136_v40, %v4625_v44  ;;  %v9199_v28 = vld [vmem:[#allocation40_spill] sm:$0xff]  ;;  %v2435_v0 = vmax.f32 %v2419_v48, 0.0  ;;  %v2405_v14 = vmax.f32 %v2375_v35, %v5801_v9  ;;  %v9208_v40 = vld [vmem:[#allocation89_spill] sm:$0xff] }
 0x2bd   : > { %v9187_v49 = vsel %vm6143_vm7, 4294967295, %v9186_v49  ;;  %9191 = vst [vmem:[#allocation179_spill] sm:$0xff] %v6153_v30  ;;  %vm8728_vm10 = vmand %vm6143_vm7, %vm4698_vm2  ;;  %v2321_v59 = vmin.f32 %v9199_v28, %v5826_v6  ;;  %v9201_v30 = vmov 0  ;;  %v1340_v48 = vsub.f32 %v9204_v19, %v9176_v18  ;;  %v9205_v35 = vld [vmem:[#allocation84_spill] sm:$0xff]  ;;  %v6232_v61 = vpop.permute.xlu0 %2330  ;;  %v9298_v27 = vld [vmem:[#allocation154_spill] sm:$0xff] }
 0x2be   : > { %9188 = vst [vmem:[#allocation151_spill] sm:$0xff] %v9187_v49  ;;  %vm6180_vm0 = vmand %vm9196_vm3, %vm9195_vm4  ;;  %v1342_v28 = vsub.f32 %v9205_v35, %v9176_v18  ;;  %v9206_v49 = vld [vmem:[#allocation155_spill] sm:$0xff]  ;;  %2775 = vrot.lane.b32.xlu1 %v9207_v55, %s4249_s21  ;;  %v9210_v19 = vld [vmem:[#allocation148_spill] sm:$0xff]  ;;  %v6222_v3 = vmul.f32 %v2435_v0, %v2235_v41  ;;  %v2237_v37 = vmax.f32 %v2221_v8, 0.0  ;;  %vm9221_vm1 = vcmp.gt.f32.partialorder %v9175_v29, %v4619_v60 }
 0x2bf   : > { %vm9200_vm4 = vmand %vm6076_vm15, %vm4698_vm2  ;;  %v2090_v53 = vmin.f32 %v9206_v49, %v5784_v54  ;;  %v2421_v35 = vsub.f32 %v2321_v59, %v2405_v14  ;;  %1279 = vperm.xlu0 %3995, %v4206_v32   ;;  %v9213_v49 = vld [vmem:[#allocation159_spill] sm:$0xff]  ;;  %v9215_v14 = vld [vmem:[#allocation16_spill] sm:$0xff]  ;;  %v6263_v0 = vand.u32 2147483647, %v1340_v48  ;;  %vm9244_vm5 = vcmp.lt.f32.partialorder %v9189_v10, %v9032_v47 }
 0x2c0   : > { %vm6199_vm3 = vmand %vm9200_vm4, %vm8728_vm10  ;;  %vm9209_vm10 = vcmp.gt.f32.partialorder %v9192_v46, %v9010_v21  ;;  %9211 = vst [vmem:[#allocation80_spill] sm:$0xff] %v6222_v3  ;;  %vm9212_vm4 = vcmp.lt.f32.partialorder %v9192_v46, %v9011_v1  ;;  %v2196_v55 = vmax.f32 %v9213_v49, %v5733_v17  ;;  %v2323_v32 = vmin.f32 %v9215_v14, %v5826_v6  ;;  %v9227_v3 = vld [vmem:[#allocation21_spill] sm:$0xff]  ;;  %v9271_v8 = vld [vmem:[#allocation162_spill] sm:$0xff] }
 0x2c1   : > { %v9202_v30 = vsel %vm6199_vm3, 4294967295, %v9201_v30  ;;  %vm3139_vm6 = vmand %vm6088_vm14, %vm9209_vm10  ;;  %v2223_v57 = vsub.f32 %v2090_v53, %v2207_v63  ;;  %vm9214_vm14 = vcmp.gt.f32.partialorder %v9189_v10, %v9015_v11  ;;  %v2437_v41 = vmax.f32 %v2421_v35, 0.0  ;;  %9224 = vst [vmem:[#allocation40_spill] sm:$0xff] %v6263_v0  ;;  %v9225_v35 = vld [vmem:[#allocation86_spill] sm:$0xff] }
 0x2c2   : > { %9203 = vst [vmem:[#allocation153_spill] sm:$0xff] %v9202_v30  ;;  %v2079_v30 = vmin.f32 %v9210_v19, %v5784_v54  ;;  %vm3175_vm3 = vmand %vm3139_vm6, %vm9212_vm4  ;;  %v2383_v19 = vpop.permute.xlu1 %2382  ;;  %vm9216_vm6 = vcmp.lt.f32.partialorder %v9189_v10, %v9019_v38  ;;  %v9217_v53 = vmov 0  ;;  %v6261_v63 = vand.u32 2147483647, %v1338_v51  ;;  %2779 = vrot.lane.b32.xlu1 %v9104_v50, %s4249_s21  ;;  %v9231_v50 = vld [vmem:[#allocation73_spill] sm:$0xff] }
 0x2c3   : > { %vm3207_vm10 = vmand %vm3175_vm3, %vm9214_vm14  ;;  %v2407_v59 = vmax.f32 %v2383_v19, %v5801_v9  ;;  %vm9220_vm14 = vcmp.lt.f32.partialorder %v9175_v29, %v4622_v62  ;;  %v1344_v49 = vsub.f32 %v9225_v35, %v9176_v18  ;;  %v9226_v19 = vld [vmem:[#allocation125_spill] sm:$0xff]  ;;  %v6279_v51 = vand.u32 2147483647, %v1342_v28  ;;  %1287 = vperm.xlu0 %3995, %v4207_v34   ;;  %v2339_v34 = vpop.permute.xlu0 %2338 }
 0x2c4   : > { %vm6245_vm4 = vmand %vm3207_vm10, %vm9216_vm6  ;;  %v987_v14 = vsub.f32 %v9208_v40, %v9226_v19  ;;  %v6281_v48 = vmul.f32 %v2437_v41, %v2237_v37  ;;  %vm9230_vm3 = vcmp.gt.f32.partialorder %v9192_v46, %v9020_v45  ;;  %v9232_v28 = vld [vmem:[#allocation149_spill] sm:$0xff]  ;;  %v2212_v37 = vsub.f32 %v2079_v30, %v2196_v55 }
 0x2c5   : > { %v9218_v53 = vsel %vm6245_vm4, 4294967295, %v9217_v53  ;;  %vm6257_vm15 = vmand %vm9221_vm1, %vm9220_vm14  ;;  %9228 = vst [vmem:[#allocation82_spill] sm:$0xff] %v6279_v51  ;;  %v2423_v35 = vsub.f32 %v2323_v32, %v2407_v59  ;;  %v2081_v7 = vmin.f32 %v9232_v28, %v5784_v54  ;;  %v9233_v32 = vld [vmem:[#allocation160_spill] sm:$0xff]  ;;  %vm9234_vm6 = vcmp.lt.f32.partialorder %v9208_v40, %v4622_v62  ;;  %v9338_v51 = vld [vmem:[#allocation157_spill] sm:$0xff] }
 0x2c6   : > { %9219 = vst [vmem:[#allocation167_spill] sm:$0xff] %v9218_v53  ;;  %9229 = vst [vmem:[#allocation84_spill] sm:$0xff] %v6281_v48  ;;  %v2198_v41 = vmax.f32 %v9233_v32, %v5733_v17  ;;  %vm9235_vm14 = vcmp.gt.f32.partialorder %v9208_v40, %v4619_v60  ;;  %v2239_v55 = vmax.f32 %v2223_v57, 0.0  ;;  %v2312_v30 = vmin.f32 %v5838_v26, %v5826_v6  ;;  %v6317_v32 = vpop.permute.xlu1 %2442  ;;  %v9243_v57 = vld [vmem:[#allocation91_spill] sm:$0xff] }
 0x2c7   : > { %vm3350_vm1 = vmand %vm6180_vm0, %vm9230_vm3  ;;  %vm9238_vm3 = vcmp.lt.f32.partialorder %v9192_v46, %v9025_v15  ;;  %v2439_v59 = vmax.f32 %v2423_v35, 0.0  ;;  %v2396_v28 = vmax.f32 %v2339_v34, %v5801_v9  ;;  %9239 = vst [vmem:[#allocation155_spill] sm:$0xff] %v6317_v32  ;;  %v6322_v48 = vand.u32 2147483647, %v1344_v49  ;;  %v9242_v46 = vld [vmem:[#allocation88_spill] sm:$0xff]  ;;  %2783 = vrot.lane.b32.xlu1 %v9120_v52, %s4249_s21  ;;  %v9253_v34 = vld [vmem:[#allocation178_spill] sm:$0xff]  ;;  %v2347_v52 = vpop.permute.xlu0 %2346 }
 0x2c8   : > { %vm6303_vm7 = vmand %vm9235_vm14, %vm9234_vm6  ;;  %vm9240_vm6 = vcmp.gt.f32.partialorder %v9189_v10, %v9031_v56  ;;  %v1346_v58 = vsub.f32 %v9242_v46, %v9176_v18  ;;  %v1003_v25 = vand.u32 2147483647, %v987_v14  ;;  %v9245_v26 = vmov 0  ;;  %v4208_v35 = vld [vmem:[%s4313_s7 + $0x38] sm:$0xff] }
 0x2c9   : > { %vm3386_vm10 = vmand %vm3350_vm1, %vm9238_vm3  ;;  %9241 = vst [vmem:[#allocation89_spill] sm:$0xff] %v6322_v48  ;;  %v6349_v49 = vmul.f32 %v2439_v59, %v2239_v55  ;;  %v2412_v14 = vsub.f32 %v2312_v30, %v2396_v28  ;;  %1295 = vperm.xlu0 %3995, %v4208_v35   ;;  %v9254_v55 = vld [vmem:[#allocation150_spill] sm:$0xff]  ;;  %v2214_v59 = vsub.f32 %v2081_v7, %v2198_v41  ;;  %v9255_v28 = vld [vmem:[#allocation161_spill] sm:$0xff]  ;;  %v2228_v7 = vmax.f32 %v2212_v37, 0.0 }
 0x2ca   : > { %vm3422_vm14 = vmand %vm3386_vm10, %vm9240_vm6  ;;  %vm9248_vm10 = vcmp.lt.f32.partialorder %v9175_v29, %v4628_v43  ;;  %vm9249_vm6 = vcmp.gt.f32.partialorder %v9175_v29, %v4625_v44  ;;  %v2083_v30 = vmin.f32 %v9254_v55, %v5784_v54  ;;  %v2200_v35 = vmax.f32 %v9255_v28, %v5733_v17  ;;  %v6385_v10 = vpop.permute.xlu1 %2450  ;;  %v4209_v29 = vld [vmem:[%s4313_s7 + $0x48] sm:$0xff] }
 0x2cb   : > { %vm6335_vm0 = vmand %vm3422_vm14, %vm9244_vm5  ;;  %9252 = vst [vmem:[#allocation159_spill] sm:$0xff] %v6349_v49  ;;  %vm9256_vm3 = vcmp.lt.f32.partialorder %v9208_v40, %v4628_v43  ;;  %vm9257_vm5 = vcmp.gt.f32.partialorder %v9208_v40, %v4625_v44  ;;  %v2314_v41 = vmin.f32 %v5903_v22, %v5826_v6  ;;  %v2428_v55 = vmax.f32 %v2412_v14, 0.0  ;;  %v9267_v14 = vld [vmem:[#allocation92_spill] sm:$0xff]  ;;  %v2355_v48 = vpop.permute.xlu0 %2354 }
 0x2cc   : > { %v9246_v26 = vsel %vm6335_vm0, 4294967295, %v9245_v26  ;;  %vm6345_vm11 = vmand %vm9249_vm6, %vm9248_vm10  ;;  %v2398_v28 = vmax.f32 %v2347_v52, %v5801_v9  ;;  %9260 = vst [vmem:[#allocation16_spill] sm:$0xff] %v6385_v10  ;;  %v9262_v22 = vmov 0  ;;  %v9265_v52 = vld [vmem:[#allocation90_spill] sm:$0xff]  ;;  %v990_v37 = vsub.f32 %v9243_v57, %v9226_v19 }
 0x2cd   : > { %9247 = vst [vmem:[#allocation148_spill] sm:$0xff] %v9246_v26  ;;  %vm8740_vm14 = vmand %vm6335_vm0, %vm4698_vm2  ;;  %v1348_v40 = vsub.f32 %v9265_v52, %v9176_v18  ;;  %v9268_v52 = vld [vmem:[#allocation152_spill] sm:$0xff]  ;;  %v6422_v26 = vmul.f32 %v2428_v55, %v2228_v7  ;;  %1303 = vperm.xlu0 %3995, %v4209_v29   ;;  %vm9270_vm10 = vcmp.lt.f32.partialorder %v9253_v34, %v9011_v1  ;;  %v2230_v10 = vmax.f32 %v2214_v59, 0.0 }
 0x2ce   : > { %vm6374_vm1 = vmand %vm9257_vm5, %vm9256_vm3  ;;  %v2085_v53 = vmin.f32 %v9268_v52, %v5784_v54  ;;  %v2414_v18 = vsub.f32 %v2314_v41, %v2398_v28  ;;  %v2216_v32 = vsub.f32 %v2083_v30, %v2200_v35  ;;  %v2202_v12 = vmax.f32 %v9271_v8, %v5733_v17  ;;  %v6448_v35 = vpop.permute.xlu1 %2454  ;;  %v9287_v52 = vld [vmem:[#allocation29_spill] sm:$0xff] }
 0x2cf   : > { %vm9261_vm5 = vmand %vm6245_vm4, %vm4698_vm2  ;;  %9269 = vst [vmem:[#allocation149_spill] sm:$0xff] %v6422_v26  ;;  %v2316_v29 = vmin.f32 %v5962_v39, %v5826_v6  ;;  %v2400_v59 = vmax.f32 %v2355_v48, %v5801_v9  ;;  %v9278_v41 = vmov 0  ;;  %v6472_v48 = vadd.f32 %v5852_v31, %v1003_v25  ;;  %v9364_v31 = vld [vmem:[#allocation116_spill] sm:$0xff]  ;;  %v9367_v25 = vld [vmem:[#allocation95_spill] sm:$0xff] }
 0x2d0   : > { %vm6399_vm6 = vmand %vm9261_vm5, %vm8740_vm14  ;;  %vm9266_vm5 = vcmp.gt.f32.partialorder %v9253_v34, %v9010_v21  ;;  %v2430_v30 = vmax.f32 %v2414_v18, 0.0  ;;  %v6469_v18 = vand.u32 2147483647, %v1346_v58  ;;  %v6474_v55 = vand.u32 2147483647, %v1348_v40  ;;  %v4210_v58 = vld [vmem:[%s4313_s7 + $0x58] sm:$0xff] }
 0x2d1   : > { %v9263_v22 = vsel %vm6399_vm6, 4294967295, %v9262_v22  ;;  %vm3141_vm14 = vmand %vm6257_vm15, %vm9266_vm5  ;;  %vm9272_vm15 = vcmp.lt.f32.partialorder %v9243_v57, %v4622_v62  ;;  %vm9273_vm5 = vcmp.gt.f32.partialorder %v9243_v57, %v4619_v60  ;;  %vm9276_vm6 = vcmp.gt.f32.partialorder %v9231_v50, %v9015_v11  ;;  %1311 = vperm.xlu0 %3995, %v4210_v58   ;;  %v9299_v40 = vld [vmem:[#allocation165_spill] sm:$0xff] }
 0x2d2   : > { %9264 = vst [vmem:[#allocation86_spill] sm:$0xff] %v9263_v22  ;;  %v992_v22 = vsub.f32 %v9267_v14, %v9226_v19  ;;  %vm3177_vm3 = vmand %vm3141_vm14, %vm9270_vm10  ;;  %vm9282_vm10 = vcmp.gt.f32.partialorder %v9227_v3, %v4619_v60  ;;  %v1006_v28 = vand.u32 2147483647, %v990_v37  ;;  %v6482_v26 = vmul.f32 %v2430_v30, %v2230_v10  ;;  %v9297_v10 = vld [vmem:[#allocation75_spill] sm:$0xff]  ;;  %v6527_v58 = vpop.permute.xlu1 %2462 }
 0x2d3   : > { %vm6436_vm0 = vmand %vm9273_vm5, %vm9272_vm15  ;;  %vm9277_vm15 = vcmp.lt.f32.partialorder %v9231_v50, %v9019_v38  ;;  %9285 = vst [vmem:[#allocation88_spill] sm:$0xff] %v6469_v18  ;;  %v2416_v5 = vsub.f32 %v2316_v29, %v2400_v59  ;;  %vm9296_vm8 = vcmp.gt.f32.partialorder %v9253_v34, %v9020_v45  ;;  %v2204_v37 = vmax.f32 %v9299_v40, %v5733_v17  ;;  %v2363_v29 = vpop.permute.xlu0 %2362  ;;  %v9316_v40 = vld [vmem:[#allocation185_spill] sm:$0xff] }
 0x2d4   : > { %vm3209_vm14 = vmand %vm3177_vm3, %vm9276_vm6  ;;  %vm9281_vm3 = vcmp.lt.f32.partialorder %v9227_v3, %v4622_v62  ;;  %9286 = vst [vmem:[#allocation91_spill] sm:$0xff] %v6474_v55  ;;  %v1008_v8 = vand.u32 2147483647, %v992_v22  ;;  %v2087_v22 = vmin.f32 %v9298_v27, %v5784_v54  ;;  %v2218_v46 = vsub.f32 %v2085_v53, %v2202_v12  ;;  %v9303_v12 = vld [vmem:[#allocation183_spill] sm:$0xff]  ;;  %v9382_v27 = vld [vmem:[#allocation189_spill] sm:$0xff] }
 0x2d5   : > { %vm6453_vm5 = vmand %vm3209_vm14, %vm9277_vm15  ;;  %9288 = vst [vmem:[#allocation150_spill] sm:$0xff] %v6482_v26  ;;  %vm9292_vm14 = vcmp.lt.f32.partialorder %v9243_v57, %v4628_v43  ;;  %vm9293_vm15 = vcmp.gt.f32.partialorder %v9243_v57, %v4625_v44  ;;  %v2232_v57 = vmax.f32 %v2216_v32, 0.0  ;;  %v2318_v30 = vmin.f32 %v6003_v23, %v5826_v6  ;;  %v9304_v23 = vld [vmem:[#allocation94_spill] sm:$0xff]  ;;  %v9318_v26 = vld [vmem:[#allocation12_spill] sm:$0xff] }
 0x2d6   : > { %v9279_v41 = vsel %vm6453_vm5, 4294967295, %v9278_v41  ;;  %vm6465_vm4 = vmand %vm9282_vm10, %vm9281_vm3  ;;  %vm9289_vm10 = vcmp.gt.f32.partialorder %v9099_v4, %v9010_v21  ;;  %v2432_v59 = vmax.f32 %v2416_v5, 0.0  ;;  %v2402_v32 = vmax.f32 %v2363_v29, %v5801_v9  ;;  %9301 = vst [vmem:[#allocation161_spill] sm:$0xff] %v6527_v58  ;;  %v4212_v58 = vld [vmem:[%s4313_s7 + $0x78] sm:$0xff] }
 0x2d7   : > { %9280 = vst [vmem:[#allocation160_spill] sm:$0xff] %v9279_v41  ;;  %vm6490_vm3 = vmand %vm6303_vm7, %vm9289_vm10  ;;  %v6537_v53 = vadd.f32 %v9303_v12, %v1006_v28  ;;  %v994_v5 = vsub.f32 %v9304_v23, %v9226_v19  ;;  %v9309_v28 = vmov 0  ;;  %vm9312_vm9 = vcmp.lt.f32.partialorder %v9227_v3, %v4628_v43 }
 0x2d8   : > { %vm6500_vm6 = vmand %vm9293_vm15, %vm9292_vm14  ;;  %vm9300_vm15 = vcmp.lt.f32.partialorder %v9253_v34, %v9025_v15  ;;  %v6572_v29 = vadd.f32 %v9316_v40, %v1008_v8  ;;  %v6574_v12 = vmul.f32 %v2432_v59, %v2232_v57  ;;  %v2418_v34 = vsub.f32 %v2318_v30, %v2402_v32  ;;  %v9320_v8 = vld [vmem:[#allocation168_spill] sm:$0xff]  ;;  %v2371_v57 = vpop.permute.xlu0 %2370  ;;  %v6606_v59 = vpop.permute.xlu1 %2470 }
 0x2d9   : > { %vm3352_vm7 = vmand %vm6345_vm11, %vm9296_vm8  ;;  %vm9305_vm8 = vcmp.gt.f32.partialorder %v9099_v4, %v9020_v45  ;;  %v2220_v18 = vsub.f32 %v2087_v22, %v2204_v37  ;;  %v2206_v40 = vmax.f32 %v9320_v8, %v5733_v17  ;;  %vm9322_vm10 = vcmp.gt.f32.partialorder %v9267_v14, %v4619_v60  ;;  %9325 = vst [vmem:[#allocation152_spill] sm:$0xff] %v6606_v59  ;;  %v9332_v8 = vld [vmem:[#allocation102_spill] sm:$0xff] }
 0x2da   : > { %vm3388_vm12 = vmand %vm3352_vm7, %vm9300_vm15  ;;  %vm9302_vm7 = vcmp.gt.f32.partialorder %v9231_v50, %v9031_v56  ;;  %9317 = vst [vmem:[#allocation92_spill] sm:$0xff] %v6574_v12  ;;  %v2320_v22 = vmin.f32 %v6069_v36, %v5826_v6  ;;  %v2434_v37 = vmax.f32 %v2418_v34, 0.0  ;;  %v2404_v30 = vmax.f32 %v2371_v57, %v5801_v9  ;;  %v9334_v12 = vld [vmem:[#allocation32_spill] sm:$0xff] }
 0x2db   : > { %vm3424_vm15 = vmand %vm3388_vm12, %vm9302_vm7  ;;  %vm9308_vm7 = vcmp.lt.f32.partialorder %v9231_v50, %v9032_v47  ;;  %v4211_v50 = vld [vmem:[%s4313_s7 + $0x68] sm:$0xff]  ;;  %v9328_v36 = vmov 0  ;;  %v1010_v34 = vand.u32 2147483647, %v994_v5  ;;  %v998_v57 = vsub.f32 %v9332_v8, %v9226_v19 }
 0x2dc   : > { %vm6546_vm14 = vmand %vm6374_vm1, %vm9305_vm8  ;;  %vm9313_vm1 = vcmp.gt.f32.partialorder %v9227_v3, %v4625_v44  ;;  %1319 = vperm.xlu0 %3995, %v4211_v50   ;;  %v9319_v3 = vld [vmem:[#allocation156_spill] sm:$0xff]  ;;  %v2091_v16 = vmin.f32 %v9338_v51, %v5784_v54  ;;  %v2420_v59 = vsub.f32 %v2320_v22, %v2404_v30  ;;  %v2236_v7 = vmax.f32 %v2220_v18, 0.0 }
 0x2dd   : > { %vm6557_vm11 = vmand %vm3424_vm15, %vm9308_vm7  ;;  %v2089_v55 = vmin.f32 %v9319_v3, %v5784_v54  ;;  %v2234_v3 = vmax.f32 %v2218_v46, 0.0  ;;  %v9331_v46 = vld [vmem:[#allocation97_spill] sm:$0xff]  ;;  %v2322_v22 = vmin.f32 %v6124_v33, %v5826_v6  ;;  %v9352_v18 = vmov 0  ;;  %v9355_v33 = vld [vmem:[#allocation186_spill] sm:$0xff] }
 0x2de   : > { %v9310_v28 = vsel %vm6557_vm11, 4294967295, %v9309_v28  ;;  %vm6567_vm8 = vmand %vm9313_vm1, %vm9312_vm9  ;;  %vm9321_vm1 = vcmp.lt.f32.partialorder %v9267_v14, %v4622_v62  ;;  %v996_v32 = vsub.f32 %v9331_v46, %v9226_v19  ;;  %vm9407_vm13 = vcmp.lt.f32.partialorder %v9304_v23, %v4628_v43 }
 0x2df   : > { %9311 = vst [vmem:[#allocation90_spill] sm:$0xff] %v9310_v28  ;;  %vm6595_vm12 = vmand %vm9322_vm10, %vm9321_vm1  ;;  %v9333_v28 = vld [vmem:[#allocation105_spill] sm:$0xff]  ;;  %v6646_v20 = vmul.f32 %v2434_v37, %v2234_v3  ;;  %vm9340_vm1 = vcmp.gt.f32.partialorder %v9287_v52, %v9010_v21  ;;  %v2222_v39 = vsub.f32 %v2089_v55, %v2206_v40  ;;  %v2436_v37 = vmax.f32 %v2420_v59, 0.0 }
 0x2e0   : > { %vm9326_vm15 = vmand %vm6557_vm11, %vm4698_vm2  ;;  %v1000_v41 = vsub.f32 %v9333_v28, %v9226_v19  ;;  %1327 = vperm.xlu0 %3995, %v4212_v58   ;;  %v9348_v58 = vld [vmem:[#allocation170_spill] sm:$0xff]  ;;  %v6701_v55 = vadd.f32 %v9355_v33, %v1010_v34  ;;  %v1012_v40 = vand.u32 2147483647, %v996_v32  ;;  %v1014_v59 = vand.u32 2147483647, %v998_v57  ;;  %v9365_v57 = vld [vmem:[#allocation117_spill] sm:$0xff] }
 0x2e1   : > { %vm9327_vm9 = vmand %vm6453_vm5, %vm4698_vm2  ;;  %9339 = vst [vmem:[#allocation154_spill] sm:$0xff] %v6646_v20  ;;  %v2208_v3 = vmax.f32 %v9348_v58, %v5733_v17  ;;  %vm3338_vm5 = vcmp.gt.f32.partialorder %v9318_v26, %v9020_v45  ;;  %v9361_v34 = vmov 0  ;;  %v2394_v51 = vmax.f32 %v6232_v61, %v5801_v9  ;;  %v9469_v19 = vld [vmem:[#allocation166_spill] sm:$0xff]  ;;  %v9497_v61 = vld [vmem:[#allocation152_spill] sm:$0xff] }
 0x2e2   : > { %vm6622_vm7 = vmand %vm9327_vm9, %vm9326_vm15  ;;  %vm9335_vm15 = vcmp.gt.f32.partialorder %v9318_v26, %v9010_v21  ;;  %9356 = vst [vmem:[#allocation94_spill] sm:$0xff] %v6701_v55  ;;  %v1016_v58 = vand.u32 2147483647, %v1000_v41  ;;  %v9363_v41 = vld [vmem:[#allocation131_spill] sm:$0xff]  ;;  %v9368_v55 = vld [vmem:[#allocation118_spill] sm:$0xff] }
 0x2e3   : > { %v9329_v36 = vsel %vm6622_vm7, 4294967295, %v9328_v36  ;;  %vm3143_vm9 = vmand %vm6465_vm4, %vm9335_vm15  ;;  %vm9343_vm4 = vcmp.lt.f32.partialorder %v9267_v14, %v4628_v43  ;;  %vm9344_vm15 = vcmp.gt.f32.partialorder %v9267_v14, %v4625_v44  ;;  %v2379_v14 = vpop.permute.xlu0 %2378  ;;  %v1567_v32 = vsub.f32 %v9364_v31, %v9363_v41  ;;  %v9369_v31 = vld [vmem:[#allocation119_spill] sm:$0xff] }
 0x2e4   : > { %9330 = vst [vmem:[#allocation162_spill] sm:$0xff] %v9329_v36  ;;  %v9336_v36 = vld [vmem:[#allocation96_spill] sm:$0xff]  ;;  %vm6654_vm10 = vmand %vm6436_vm0, %vm9340_vm1  ;;  %vm9347_vm0 = vcmp.lt.f32.partialorder %v9318_v26, %v9011_v1  ;;  %v2406_v30 = vmax.f32 %v2379_v14, %v5801_v9  ;;  %v1570_v33 = vsub.f32 %v9365_v57, %v9363_v41  ;;  %2689 = vrot.lane.b32.xlu0 %v9367_v25, %s4248_s20  ;;  %v9425_v14 = vld [vmem:[#allocation143_spill] sm:$0xff] }
 0x2e5   : > { %v6642_v5 = vmul.f32 2.0, %v9336_v36  ;;  %vm6664_vm7 = vmand %vm9344_vm15, %vm9343_vm4  ;;  %vm9349_vm4 = vcmp.gt.f32.partialorder %v9297_v10, %v9015_v11  ;;  %v6685_v36 = vpop.permute.xlu1 %2478  ;;  %v1574_v0 = vsub.f32 %v9369_v31, %v9363_v41  ;;  %v9370_v57 = vld [vmem:[#allocation120_spill] sm:$0xff]  ;;  %v2224_v49 = vsub.f32 %v2091_v16, %v2208_v3  ;;  %v9376_v16 = vld [vmem:[#allocation35_spill] sm:$0xff] }
 0x2e6   : > { %vm3179_vm1 = vmand %vm3143_vm9, %vm9347_vm0  ;;  %9350 = vst [vmem:[#allocation165_spill] sm:$0xff] %v6685_v36  ;;  %vm9357_vm9 = vcmp.lt.f32.partialorder %v9099_v4, %v9011_v1  ;;  %v2422_v20 = vsub.f32 %v2322_v22, %v2406_v30  ;;  %v1572_v36 = vsub.f32 %v9368_v55, %v9363_v41  ;;  %v2324_v30 = vmin.f32 %v6170_v24, %v5826_v6  ;;  %v9441_v25 = vld [vmem:[#allocation107_spill] sm:$0xff] }
 0x2e7   : > { %9337 = vst [vmem:[#allocation29_spill] sm:$0xff] %v6642_v5  ;;  %vm3211_vm15 = vmand %vm3179_vm1, %vm9349_vm4  ;;  %vm9351_vm1 = vcmp.lt.f32.partialorder %v9297_v10, %v9019_v38  ;;  %v6729_v5 = vmul.f32 %v2436_v37, %v2236_v7  ;;  %v1576_v7 = vsub.f32 %v9370_v57, %v9363_v41  ;;  %v2238_v37 = vmax.f32 %v2222_v39, 0.0  ;;  %v2387_v22 = vpop.permute.xlu0 %2386 }
 0x2e8   : > { %vm6694_vm4 = vmand %vm3211_vm15, %vm9351_vm1  ;;  %vm9360_vm15 = vcmp.gt.f32.partialorder %v9287_v52, %v9020_v45  ;;  %v2438_v55 = vmax.f32 %v2422_v20, 0.0  ;;  %v9373_v39 = vmov 0  ;;  %v9381_v20 = vld [vmem:[#allocation188_spill] sm:$0xff]  ;;  %v6787_v3 = vadd.f32 %v9382_v27, %v1014_v59 }
 0x2e9   : > { %v9353_v18 = vsel %vm6694_vm4, 4294967295, %v9352_v18  ;;  %vm6708_vm0 = vmand %vm6490_vm3, %vm9357_vm9  ;;  %9366 = vst [vmem:[#allocation185_spill] sm:$0xff] %v6729_v5  ;;  %vm9371_vm9 = vcmp.lt.f32.partialorder %v9318_v26, %v9025_v15  ;;  %v2408_v5 = vmax.f32 %v2387_v22, %v5801_v9  ;;  %v6752_v31 = vpop.permute.xlu1 %2486  ;;  %v6784_v24 = vadd.f32 %v9381_v20, %v1012_v40  ;;  %v9384_v26 = vld [vmem:[#allocation99_spill] sm:$0xff] }
 0x2ea   : > { %9354 = vst [vmem:[#allocation183_spill] sm:$0xff] %v9353_v18  ;;  %vm6717_vm1 = vmand %vm6500_vm6, %vm9360_vm15  ;;  %v6789_v57 = vmul.f32 %v2438_v55, %v2238_v37  ;;  %2693 = vrot.lane.b32.xlu0 %v9384_v26, %s4248_s20  ;;  %v6807_v40 = vadd.f32 %v5974_v13, %v1016_v58  ;;  %v6811_v59 = vand.u32 2147483647, %v1570_v33  ;;  %v6813_v37 = vand.u32 2147483647, %v1572_v36  ;;  %v9399_v36 = vld [vmem:[#allocation121_spill] sm:$0xff] }
 0x2eb   : > { %v9362_v34 = vsel %vm6717_vm1, 4294967295, %v9361_v34  ;;  %vm3354_vm6 = vmand %vm6567_vm8, %vm3338_vm5  ;;  %vm9372_vm5 = vcmp.lt.f32.partialorder %v9099_v4, %v9025_v15  ;;  %v9378_v4 = vmov 0  ;;  %v2424_v22 = vsub.f32 %v2324_v30, %v2408_v5  ;;  %v1156_v33 = vpop.permute.xlu0 %1155  ;;  %v9413_v18 = vld [vmem:[#allocation104_spill] sm:$0xff] }
 0x2ec   : > { %vm3390_vm15 = vmand %vm3354_vm6, %vm9371_vm9  ;;  %vm9375_vm6 = vcmp.gt.f32.partialorder %v9297_v10, %v9031_v56  ;;  %9383 = vst [vmem:[#allocation168_spill] sm:$0xff] %v6789_v57  ;;  %v6809_v5 = vand.u32 2147483647, %v1567_v32  ;;  %v6825_v30 = vand.u32 2147483647, %v1574_v0  ;;  %v2240_v58 = vmax.f32 %v2224_v49, 0.0 }
 0x2ed   : > { %vm6759_vm8 = vmand %vm6546_vm14, %vm9372_vm5  ;;  %vm9377_vm5 = vcmp.lt.f32.partialorder %v9297_v10, %v9032_v47  ;;  %9388 = vst [vmem:[#allocation97_spill] sm:$0xff] %v6807_v40  ;;  %v6827_v13 = vand.u32 2147483647, %v1576_v7  ;;  %v2440_v32 = vmax.f32 %v2424_v22, 0.0  ;;  %v6829_v55 = vpop.permute.xlu1 %2494  ;;  %v9396_v0 = vmov 0  ;;  %v9400_v49 = vld [vmem:[#allocation122_spill] sm:$0xff] }
 0x2ee   : > { %v9374_v39 = vsel %vm6759_vm8, 4294967295, %v9373_v39  ;;  %vm3426_vm9 = vmand %vm3390_vm15, %vm9375_vm6  ;;  %vm9385_vm15 = vcmp.gt.f32.partialorder %v9334_v12, %v9010_v21  ;;  %9389 = vst [vmem:[#allocation102_spill] sm:$0xff] %v6809_v5  ;;  %v1578_v7 = vsub.f32 %v9399_v36, %v9363_v41  ;;  %v1580_v20 = vsub.f32 %v9400_v49, %v9363_v41  ;;  %v9411_v36 = vld [vmem:[#allocation158_spill] sm:$0xff]  ;;  %2697 = vrot.lane.b32.xlu0 %v9413_v18, %s4248_s20  ;;  %v9416_v57 = vld [vmem:[#allocation140_spill] sm:$0xff] }
 0x2ef   : > { %vm6779_vm8 = vmand %vm3426_vm9, %vm9377_vm5  ;;  %vm9391_vm5 = vcmp.gt.f32.partialorder %v9304_v23, %v4619_v60  ;;  %9394 = vst [vmem:[#allocation105_spill] sm:$0xff] %v6827_v13  ;;  %vm9401_vm14 = vcmp.lt.f32.partialorder %v9287_v52, %v9011_v1  ;;  %v2194_v49 = vmax.f32 %v9411_v36, %v5733_v17  ;;  %v9417_v17 = vld [vmem:[#allocation141_spill] sm:$0xff]  ;;  %v9418_v9 = vmov 0  ;;  %v6928_v40 = vpop.permute.xlu0 %1167 }
 0x2f0   : > { %v9379_v4 = vsel %vm6779_vm8, 4294967295, %v9378_v4  ;;  %vm6798_vm6 = vmand %vm6595_vm12, %vm9385_vm15  ;;  %vm9390_vm12 = vcmp.lt.f32.partialorder %v9304_v23, %v4622_v62  ;;  %v2512_v27 = vmin.f32 %v6448_v35, %v9019_v38  ;;  %v9534_v35 = vmov 0 }
 0x2f1   : > { %9380 = vst [vmem:[#allocation156_spill] sm:$0xff] %v9379_v4  ;;  %vm8763_vm9 = vmand %vm6779_vm8, %vm4698_vm2  ;;  %v9415_v4 = vld [vmem:[#allocation139_spill] sm:$0xff]  ;;  %v6930_v13 = vpop.permute.xlu1 %2502 }
 0x2f2   : > { %vm6821_vm15 = vmand %vm9391_vm5, %vm9390_vm12  ;;  %vm3181_vm12 = vcmp.gt.f32.partialorder %v1156_v33, %v9015_v11  ;;  %vm3213_vm5 = vcmp.lt.f32.partialorder %v1156_v33, %v9019_v38  ;;  %9429 = vst [vmem:[#allocation170_spill] sm:$0xff] %v6930_v13  ;;  %2701 = vrot.lane.b32.xlu0 %v9441_v25, %s4248_s20  ;;  %v2516_v25 = vmin.f32 %v9497_v61, %v9019_v38 }
 0x2f3   : > { %vm9395_vm3 = vmand %vm6694_vm4, %vm4698_vm2 }
 0x2f4   : > { %vm6849_vm1 = vmand %vm9395_vm3, %vm8763_vm9  ;;  %vm9404_vm3 = vcmp.gt.f32.partialorder %v9334_v12, %v9020_v45 }
 0x2f5   : > { %v9397_v0 = vsel %vm6849_vm1, 4294967295, %v9396_v0  ;;  %vm6864_vm11 = vmand %vm6654_vm10, %vm9401_vm14  ;;  %vm9408_vm1 = vcmp.gt.f32.partialorder %v9304_v23, %v4625_v44  ;;  %vm3396_vm10 = vcmp.gt.f32.partialorder %v1156_v33, %v9031_v56  ;;  %v9414_v23 = vld [vmem:[#allocation137_spill] sm:$0xff]  ;;  %vm9421_vm14 = vcmp.lt.f32.partialorder %v9331_v46, %v4622_v62 }
 0x2f6   : > { %9398 = vst [vmem:[#allocation32_spill] sm:$0xff] %v9397_v0  ;;  %vm6873_vm9 = vmand %vm6664_vm7, %vm9404_vm3  ;;  %v6891_v0 = vmul.f32 %v2440_v32, %v2240_v58  ;;  %v1799_v41 = vsub.f32 %v9415_v4, %v9414_v23  ;;  %v1802_v26 = vsub.f32 %v9416_v57, %v9414_v23  ;;  %v1804_v36 = vsub.f32 %v9417_v17, %v9414_v23  ;;  %v9426_v57 = vld [vmem:[#allocation147_spill] sm:$0xff]  ;;  %v9427_v32 = vld [vmem:[#allocation48_spill] sm:$0xff] }
 0x2f7   : > { %vm6883_vm4 = vmand %vm9408_vm1, %vm9407_vm13  ;;  %v1806_v4 = vsub.f32 %v9425_v14, %v9414_v23  ;;  %v2077_v58 = vmin.f32 %v9426_v57, %v5784_v54  ;;  %v2310_v17 = vmin.f32 %v9427_v32, %v5826_v6  ;;  %v6945_v6 = vand.u32 2147483647, %v1578_v7  ;;  %v9435_v14 = vld [vmem:[#allocation144_spill] sm:$0xff]  ;;  %v9436_v32 = vld [vmem:[#allocation145_spill] sm:$0xff] }
 0x2f8   : > { %9412 = vst [vmem:[#allocation96_spill] sm:$0xff] %v6891_v0  ;;  %vm3197_vm7 = vmand %vm6708_vm0, %vm3181_vm12  ;;  %vm9422_vm12 = vcmp.gt.f32.partialorder %v9331_v46, %v4619_v60  ;;  %v9428_v0 = vld [vmem:[#allocation127_spill] sm:$0xff]  ;;  %v1808_v57 = vsub.f32 %v9435_v14, %v9414_v23  ;;  %v1810_v13 = vsub.f32 %v9436_v32, %v9414_v23  ;;  %vm9437_vm0 = vnez %v9374_v39  ;;  %v9440_v7 = vld [vmem:[#allocation146_spill] sm:$0xff] }
 0x2f9   : > { %vm6904_vm13 = vmand %vm3197_vm7, %vm3213_vm5  ;;  %v1219_v18 = vsub.f32 %v1156_v33, %v9428_v0  ;;  %vm9430_vm7 = vcmp.lt.f32.partialorder %v9287_v52, %v9025_v15  ;;  %9434 = vst [vmem:[#allocation186_spill] sm:$0xff] %v6945_v6  ;;  %v1222_v5 = vsub.f32 %v6928_v40, %v9428_v0  ;;  %v9438_v52 = vld [vmem:[#allocation38_spill] sm:$0xff]  ;;  %v1812_v14 = vsub.f32 %v9440_v7, %v9414_v23  ;;  %v6998_v7 = vpop.permute.xlu0 %1175 }
 0x2fa   : > { %v9419_v9 = vsel %vm6904_vm13, 4294967295, %v9418_v9  ;;  %vm6917_vm3 = vmand %vm9422_vm12, %vm9421_vm14  ;;  %vm9431_vm14 = vnez %v9362_v34  ;;  %v6963_v34 = vand.u32 2147483647, %v1580_v20  ;;  %v2210_v32 = vsub.f32 %v2077_v58, %v2194_v49 }
 0x2fb   : > { %9420 = vst [vmem:[#allocation157_spill] sm:$0xff] %v9419_v9  ;;  %vm6941_vm12 = vmand %vm9431_vm14, %vm9430_vm7  ;;  %v2410_v6 = vsub.f32 %v2310_v17, %v2394_v51  ;;  %v9443_v39 = vmov 0  ;;  %vm9446_vm14 = vcmp.gt.f32.partialorder %v9376_v16, %v9010_v21  ;;  %v6984_v49 = vand.u32 2147483647, %v1799_v41  ;;  %v7000_v41 = vpop.permute.xlu1 %2530  ;;  %v9467_v9 = vld [vmem:[#allocation109_spill] sm:$0xff] }
 0x2fc   : > { %vm3412_vm5 = vmand %vm9437_vm0, %vm3396_vm10  ;;  %9439 = vst [vmem:[#allocation116_spill] sm:$0xff] %v6963_v34  ;;  %vm9442_vm10 = vcmp.lt.f32.partialorder %v1156_v33, %v9032_v47  ;;  %v6986_v51 = vand.u32 2147483647, %v1802_v26  ;;  %v1238_v58 = vand.u32 2147483647, %v1222_v5  ;;  %vm9450_vm7 = vcmp.lt.f32.partialorder %v9331_v46, %v4628_v43  ;;  %2705 = vrot.lane.b32.xlu0 %v9467_v9, %s4248_s20  ;;  %v9479_v9 = vld [vmem:[#allocation47_spill] sm:$0xff] }
 0x2fd   : > { %vm6971_vm0 = vmand %vm3412_vm5, %vm9442_vm10  ;;  %9449 = vst [vmem:[#allocation118_spill] sm:$0xff] %v6984_v49  ;;  %v6994_v33 = vand.u32 2147483647, %v1804_v36  ;;  %v6996_v50 = vand.u32 2147483647, %v1806_v4  ;;  %vm9451_vm10 = vcmp.gt.f32.partialorder %v9331_v46, %v4625_v44  ;;  %v9452_v26 = vmov 0 }
 0x2fe   : > { %v9444_v39 = vsel %vm6971_vm0, 4294967295, %v9443_v39  ;;  %vm6980_vm1 = vmand %vm6821_vm15, %vm9446_vm14  ;;  %v1235_v17 = vand.u32 2147483647, %v1219_v18  ;;  %v7018_v18 = vand.u32 2147483647, %v1808_v57  ;;  %v1254_v36 = vadd.f32 %v1238_v58, %v6537_v53  ;;  %v9498_v34 = vld [vmem:[#allocation165_spill] sm:$0xff] }
 0x2ff   : > { %9445 = vst [vmem:[#allocation117_spill] sm:$0xff] %v9444_v39  ;;  %vm7012_vm5 = vmand %vm9451_vm10, %vm9450_vm7  ;;  %v7020_v5 = vand.u32 2147483647, %v1810_v13  ;;  %v1224_v4 = vsub.f32 %v6998_v7, %v9428_v0  ;;  %v9457_v46 = vmov 0  ;;  %vm9460_vm14 = vcmp.lt.f32.partialorder %v9334_v12, %v9011_v1  ;;  %v9533_v53 = vld [vmem:[#allocation115_spill] sm:$0xff] }
 0x300   : > { %v9453_v26 = vsel %vm7012_vm5, 4294967295, %v9452_v26  ;;  %vm9455_vm7 = vmand %vm6971_vm0, %vm4698_vm2  ;;  %vm9463_vm0 = vcmp.gt.f32.partialorder %v9376_v16, %v9020_v45  ;;  %v7057_v57 = vand.u32 2147483647, %v1812_v14  ;;  %v2226_v58 = vmax.f32 %v2210_v32, 0.0 }
 0x301   : > { %9454 = vst [vmem:[#allocation119_spill] sm:$0xff] %v7020_v5  ;;  %vm9456_vm10 = vmand %vm6904_vm13, %vm4698_vm2  ;;  %v1240_v10 = vand.u32 2147483647, %v1224_v4  ;;  %v7069_v39 = vmul.f32 2.0, %v9469_v19  ;;  %v1370_v14 = vadd.f32 %v6261_v63, %v1254_v36  ;;  %v1251_v32 = vadd.f32 %v1235_v17, %v6472_v48  ;;  %v7096_v36 = vpop.permute.xlu0 %1183  ;;  %v2539_v4 = vpop.permute.xlu1 %2538  ;;  %v9478_v19 = vld [vmem:[#allocation171_spill] sm:$0xff]  ;;  %v9483_v17 = vld [vmem:[#allocation181_spill] sm:$0xff] }
 0x302   : > { %vm7035_vm8 = vmand %vm9456_vm10, %vm9455_vm7  ;;  %9466 = vst [vmem:[#allocation35_spill] sm:$0xff] %v7057_v57  ;;  %vm3435_vm10 = vcmp.lt.f32.partialorder %v6928_v40, %v9032_v47  ;;  %vm9475_vm7 = vcmp.gt.f32.partialorder %v9332_v8, %v4619_v60  ;;  %v7099_v23 = vmul.f32 2.0, %v9478_v19  ;;  %v7102_v49 = vmul.f32 2.0, %v9479_v9 }
 0x303   : > { %v9458_v46 = vsel %vm7035_vm8, 4294967295, %v9457_v46  ;;  %vm7044_vm15 = vmand %vm6798_vm6, %vm9460_vm14  ;;  %vm9468_vm6 = vcmp.gt.f32.partialorder %v6928_v40, %v9015_v11  ;;  %v1226_v48 = vsub.f32 %v7096_v36, %v9428_v0  ;;  %v2596_v9 = vmax.f32 %v2539_v4, %v9015_v11 }
 0x304   : > { %9459 = vst [vmem:[#allocation120_spill] sm:$0xff] %v9458_v46  ;;  %vm7053_vm5 = vmand %vm6883_vm4, %vm9463_vm0  ;;  %v2426_v46 = vmax.f32 %v2410_v6, 0.0  ;;  %vm9470_vm4 = vcmp.lt.f32.partialorder %v6928_v40, %v9019_v38  ;;  %v9471_v6 = vmov 0  ;;  %v1486_v19 = vadd.f32 %v9483_v17, %v1370_v14  ;;  %v9486_v14 = vld [vmem:[#allocation111_spill] sm:$0xff]  ;;  %v9495_v17 = vld [vmem:[#allocation40_spill] sm:$0xff] }
 0x305   : > { %vm3200_vm14 = vmand %vm6864_vm11, %vm9468_vm6  ;;  %vm9474_vm6 = vcmp.lt.f32.partialorder %v9332_v8, %v4622_v62  ;;  %v1256_v57 = vadd.f32 %v1240_v10, %v6572_v29  ;;  %2709 = vrot.lane.b32.xlu0 %v9486_v14, %s4248_s20  ;;  %v9487_v29 = vld [vmem:[#allocation10_spill] sm:$0xff]  ;;  %v7141_v54 = vmul.f32 2.0, %v5953_v2  ;;  %v9489_v4 = vmov 0  ;;  %v9496_v14 = vld [vmem:[#allocation161_spill] sm:$0xff] }
 0x306   : > { %vm7075_vm0 = vmand %vm3200_vm14, %vm9470_vm4  ;;  %v7133_v22 = vmul.f32 %v2426_v46, %v2226_v58  ;;  %v7138_v10 = vmul.f32 2.0, %v9487_v29  ;;  %v1242_v2 = vand.u32 2147483647, %v1226_v48  ;;  %v7161_v58 = vsub.f32 %v2512_v27, %v2596_v9  ;;  %v7175_v27 = vpop.permute.xlu0 %1191  ;;  %v2547_v9 = vpop.permute.xlu1 %2546  ;;  %v9559_v46 = vld [vmem:[#allocation95_spill] sm:$0xff] }
 0x307   : > { %v9472_v6 = vsel %vm7075_vm0, 4294967295, %v9471_v6  ;;  %vm7089_vm8 = vmand %vm9475_vm7, %vm9474_vm6  ;;  %vm9480_vm7 = vcmp.lt.f32.partialorder %v9334_v12, %v9025_v15  ;;  %vm9484_vm6 = vcmp.gt.f32.partialorder %v6928_v40, %v9031_v56  ;;  %v9485_v12 = vld [vmem:[#allocation41_spill] sm:$0xff]  ;;  %9488 = vst [vmem:[#allocation189_spill] sm:$0xff] %v7141_v54  ;;  %v1602_v40 = vadd.f32 %v6811_v59, %v1486_v19 }
 0x308   : > { %9473 = vst [vmem:[#allocation188_spill] sm:$0xff] %v9472_v6  ;;  %vm7113_vm4 = vmand %vm6873_vm9, %vm9480_vm7  ;;  %vm9492_vm7 = vcmp.gt.f32.partialorder %v9438_v52, %v9010_v21  ;;  %v1372_v29 = vadd.f32 %v9495_v17, %v1256_v57  ;;  %v2514_v54 = vmin.f32 %v9496_v14, %v9019_v38  ;;  %vm9500_vm9 = vcmp.gt.f32.partialorder %v9332_v8, %v4625_v44  ;;  %v9503_v57 = vld [vmem:[#allocation164_spill] sm:$0xff]  ;;  %v9504_v14 = vld [vmem:[#allocation94_spill] sm:$0xff] }
 0x309   : > { %vm3415_vm11 = vmand %vm6941_vm12, %vm9484_vm6  ;;  %v9501_v59 = vmov 0  ;;  %v1367_v19 = vadd.f32 %v9503_v57, %v1251_v32  ;;  %v1258_v17 = vadd.f32 %v1242_v2, %v9504_v14  ;;  %v1228_v61 = vsub.f32 %v7175_v27, %v9428_v0  ;;  %v9517_v57 = vld [vmem:[#allocation191_spill] sm:$0xff]  ;;  %v9519_v6 = vld [vmem:[#allocation113_spill] sm:$0xff] }
 0x30a   : > { %vm7146_vm12 = vmand %vm3415_vm11, %vm3435_vm10  ;;  %v2598_v48 = vmax.f32 %v2547_v9, %v9015_v11  ;;  %vm9510_vm11 = vcmp.lt.f32.partialorder %v9376_v16, %v9011_v1  ;;  %vm9514_vm13 = vnez %v9453_v26  ;;  %v1718_v14 = vadd.f32 %v9517_v57, %v1602_v40  ;;  %2713 = vrot.lane.b32.xlu0 %v9519_v6, %s4248_s20  ;;  %v9521_v9 = vld [vmem:[#allocation82_spill] sm:$0xff]  ;;  %v9575_v2 = vld [vmem:[#allocation197_spill] sm:$0xff] }
 0x30b   : > { %v9490_v4 = vsel %vm7146_vm12, 4294967295, %v9489_v4  ;;  %vm7157_vm14 = vmand %vm6917_vm3, %vm9492_vm7  ;;  %vm9499_vm7 = vcmp.lt.f32.partialorder %v9332_v8, %v4628_v43  ;;  %v9507_v8 = vmov 0  ;;  %v1244_v26 = vand.u32 2147483647, %v1228_v61 }
 0x30c   : > { %9491 = vst [vmem:[#allocation121_spill] sm:$0xff] %v9490_v4  ;;  %vm7187_vm6 = vmand %vm9500_vm9, %vm9499_vm7  ;;  %v7243_v4 = vsub.f32 %v2514_v54, %v2598_v48  ;;  %v1374_v5 = vadd.f32 %v9521_v9, %v1258_v17  ;;  %v9523_v40 = vmov 0  ;;  %v2594_v54 = vmax.f32 %v7000_v41, %v9015_v11  ;;  %v2555_v48 = vpop.permute.xlu1 %2554 }
 0x30d   : > { %v9502_v59 = vsel %vm7187_vm6, 4294967295, %v9501_v59  ;;  %vm9505_vm9 = vmand %vm7146_vm12, %vm4698_vm2  ;;  %vm9513_vm12 = vcmp.gt.f32.partialorder %v9438_v52, %v9020_v45  ;;  %v1834_v17 = vadd.f32 %v6986_v51, %v1718_v14  ;;  %v1260_v9 = vadd.f32 %v1244_v26, %v6784_v24  ;;  %v9530_v24 = vld [vmem:[#allocation50_spill] sm:$0xff] }
 0x30e   : > { %vm9506_vm7 = vmand %vm7075_vm0, %vm4698_vm2  ;;  %v1483_v13 = vadd.f32 %v9530_v24, %v1367_v19  ;;  %v9531_v14 = vld [vmem:[#allocation194_spill] sm:$0xff]  ;;  %2717 = vrot.lane.b32.xlu0 %v9533_v53, %s4248_s20 }
 0x30f   : > { %vm7208_vm10 = vmand %vm9506_vm7, %vm9505_vm9  ;;  %vm3437_vm7 = vcmp.lt.f32.partialorder %v6998_v7, %v9032_v47  ;;  %v1850_v57 = vmul.f32 0.25, %v1834_v17  ;;  %v9532_v26 = vld [vmem:[#allocation14_spill] sm:$0xff] }
 0x310   : > { %v9508_v8 = vsel %vm7208_vm10, 4294967295, %v9507_v8  ;;  %vm7217_vm3 = vmand %vm6980_vm1, %vm9510_vm11  ;;  %vm9520_vm1 = vcmp.gt.f32.partialorder %v6998_v7, %v9015_v11 }
 0x311   : > { %9509 = vst [vmem:[#allocation122_spill] sm:$0xff] %v9508_v8  ;;  %vm7226_vm6 = vmand %vm9514_vm13, %vm9513_vm12  ;;  %v9518_v8 = vld [vmem:[#allocation182_spill] sm:$0xff]  ;;  %vm3401_vm13 = vcmp.gt.f32.partialorder %v6998_v7, %v9031_v56  ;;  %vm9522_vm12 = vcmp.lt.f32.partialorder %v6998_v7, %v9019_v38  ;;  %v9540_v7 = vld [vmem:[#allocation89_spill] sm:$0xff]  ;;  %v7326_v24 = vadd.f32 %v1850_v57, %v7069_v39 }
 0x312   : > { %v1488_v20 = vadd.f32 %v9518_v8, %v1372_v29  ;;  %vm3202_vm11 = vmand %vm7044_vm15, %vm9520_vm1  ;;  %v7261_v29 = vpop.permute.xlu0 %1199  ;;  %vm9542_vm1 = vcmp.lt.f32.partialorder %v9333_v28, %v4622_v62  ;;  %v9557_v57 = vld [vmem:[#allocation196_spill] sm:$0xff]  ;;  %2753 = vrot.lane.b32.xlu0 %v9559_v46, %s4249_s21  ;;  %v9588_v39 = vld [vmem:[#allocation91_spill] sm:$0xff] }
 0x313   : > { %vm7249_vm9 = vmand %vm3202_vm11, %vm9522_vm12  ;;  %vm9526_vm11 = vcmp.lt.f32.partialorder %v9376_v16, %v9025_v15  ;;  %v1230_v51 = vsub.f32 %v7261_v29, %v9428_v0  ;;  %v9529_v16 = vld [vmem:[#allocation44_spill] sm:$0xff]  ;;  %9541 = vst [vmem:[#allocation140_spill] sm:$0xff] %v7326_v24 }
 0x314   : > { %v9524_v40 = vsel %vm7249_vm9, 4294967295, %v9523_v40  ;;  %v1604_v61 = vadd.f32 %v6813_v37, %v1488_v20  ;;  %vm7274_vm12 = vmand %vm7053_vm5, %vm9526_vm11  ;;  %v2600_v37 = vmax.f32 %v2555_v48, %v9015_v11  ;;  %v1490_v48 = vadd.f32 %v9532_v26, %v1374_v5  ;;  %v9558_v26 = vld [vmem:[#allocation19_spill] sm:$0xff] }
 0x315   : > { %9525 = vst [vmem:[#allocation158_spill] sm:$0xff] %v9524_v40  ;;  %vm3417_vm15 = vmand %vm7113_vm4, %vm3401_vm13  ;;  %vm9537_vm5 = vcmp.gt.f32.partialorder %v9485_v12, %v9010_v21  ;;  %v1246_v19 = vand.u32 2147483647, %v1230_v51  ;;  %v9604_v5 = vmin.f32 %v6829_v55, %v9019_v38  ;;  %v9724_v40 = vld [vmem:[#allocation46_spill] sm:$0xff] }
 0x316   : > { %v1720_v20 = vadd.f32 %v9531_v14, %v1604_v61  ;;  %vm7301_vm4 = vmand %vm3417_vm15, %vm3437_vm7  ;;  %v7316_v17 = vsub.f32 %v2516_v25, %v2600_v37  ;;  %v1376_v61 = vadd.f32 %v9540_v7, %v1260_v9  ;;  %v7328_v63 = vpop.permute.xlu0 %1207  ;;  %v2563_v14 = vpop.permute.xlu1 %2562  ;;  %v1606_v25 = vadd.f32 %v6825_v30, %v1490_v48 }
 0x317   : > { %v9535_v35 = vsel %vm7301_vm4, 4294967295, %v9534_v35  ;;  %vm7312_vm11 = vmand %vm7089_vm8, %vm9537_vm5  ;;  %vm9543_vm15 = vcmp.gt.f32.partialorder %v9333_v28, %v4619_v60  ;;  %v1232_v30 = vsub.f32 %v7328_v63, %v9428_v0  ;;  %v2602_v9 = vmax.f32 %v2563_v14, %v9015_v11 }
 0x318   : > { %9536 = vst [vmem:[#allocation139_spill] sm:$0xff] %v9535_v35  ;;  %vm8781_vm7 = vmand %vm7301_vm4, %vm4698_vm2  ;;  %v1836_v51 = vadd.f32 %v6994_v33, %v1720_v20  ;;  %v1262_v33 = vadd.f32 %v1246_v19, %v6787_v3  ;;  %v9547_v60 = vmov 0  ;;  %vm9550_vm8 = vcmp.lt.f32.partialorder %v9438_v52, %v9011_v1  ;;  %v9561_v19 = vld [vmem:[#allocation102_spill] sm:$0xff] }
 0x319   : > { %vm7342_vm13 = vmand %vm9543_vm15, %vm9542_vm1  ;;  %vm9553_vm4 = vcmp.gt.f32.partialorder %v9485_v12, %v9020_v45  ;;  %v1722_v20 = vadd.f32 %v9557_v57, %v1606_v25  ;;  %v1492_v48 = vadd.f32 %v9558_v26, %v1376_v61  ;;  %v2628_v7 = vmax.f32 %v7161_v58, 0.0  ;;  %v9563_v61 = vld [vmem:[#allocation88_spill] sm:$0xff] }
 0x31a   : > { %vm9546_vm1 = vmand %vm7249_vm9, %vm4698_vm2  ;;  %v1852_v37 = vmul.f32 0.25, %v1836_v51  ;;  %v1248_v14 = vand.u32 2147483647, %v1232_v30  ;;  %v9562_v51 = vmin.f32 %v9498_v34, %v9019_v38  ;;  %v1378_v57 = vadd.f32 %v9563_v61, %v1262_v33  ;;  %v2447_v32 = vpop.permute.xlu0 %2446  ;;  %v9569_v30 = vld [vmem:[#allocation105_spill] sm:$0xff]  ;;  %v9577_v61 = vld [vmem:[#allocation99_spill] sm:$0xff] }
 0x31b   : > { %vm7360_vm15 = vmand %vm9546_vm1, %vm8781_vm7  ;;  %vm9554_vm1 = vnez %v9502_v59  ;;  %v7394_v59 = vadd.f32 %v9561_v19, %v1483_v13  ;;  %v9565_v26 = vmov 0  ;;  %v2571_v13 = vpop.permute.xlu1 %2570  ;;  %v1838_v34 = vadd.f32 %v6996_v50, %v1722_v20  ;;  %v9576_v19 = vld [vmem:[#allocation97_spill] sm:$0xff]  ;;  %2757 = vrot.lane.b32.xlu0 %v9577_v61, %s4249_s21 }
 0x31c   : > { %v9548_v60 = vsel %vm7360_vm15, 4294967295, %v9547_v60  ;;  %vm7371_vm10 = vmand %vm7157_vm14, %vm9550_vm8  ;;  %vm9560_vm14 = vcmp.gt.f32.partialorder %v7096_v36, %v9015_v11  ;;  %v7400_v25 = vsub.f32 %v9562_v51, %v2602_v9  ;;  %v7413_v58 = vadd.f32 %v1852_v37, %v7099_v23  ;;  %v9573_v37 = vld [vmem:[#allocation24_spill] sm:$0xff]  ;;  %v9633_v23 = vld [vmem:[#allocation190_spill] sm:$0xff] }
 0x31d   : > { %9549 = vst [vmem:[#allocation141_spill] sm:$0xff] %v9548_v60  ;;  %vm7380_vm7 = vmand %vm9554_vm1, %vm9553_vm4  ;;  %vm9564_vm4 = vcmp.lt.f32.partialorder %v7096_v36, %v9019_v38  ;;  %v1608_v9 = vadd.f32 %v9569_v30, %v1492_v48  ;;  %v2510_v50 = vmin.f32 %v2447_v32, %v9019_v38  ;;  %v2604_v33 = vmax.f32 %v2571_v13, %v9015_v11  ;;  %v9696_v60 = vld [vmem:[#allocation68_spill] sm:$0xff] }
 0x31e   : > { %vm3204_vm8 = vmand %vm7217_vm3, %vm9560_vm14  ;;  %9568 = vst [vmem:[#allocation147_spill] sm:$0xff] %v7413_v58  ;;  %v1494_v20 = vadd.f32 %v9573_v37, %v1378_v57  ;;  %vm9574_vm14 = vcmp.gt.f32.partialorder %v7096_v36, %v9031_v56  ;;  %v1264_v51 = vadd.f32 %v1248_v14, %v9576_v19  ;;  %v9579_v57 = vmov 0  ;;  %v7482_v41 = vpop.permute.xlu0 %2458  ;;  %v9694_v58 = vld [vmem:[#allocation15_spill] sm:$0xff] }
 0x31f   : > { %vm7406_vm1 = vmand %vm3204_vm8, %vm9564_vm4  ;;  %vm9570_vm4 = vcmp.lt.f32.partialorder %v9438_v52, %v9025_v15  ;;  %v1854_v52 = vmul.f32 0.25, %v1838_v34  ;;  %v1724_v48 = vadd.f32 %v9575_v2, %v1608_v9  ;;  %v2630_v14 = vmax.f32 %v7243_v4, 0.0  ;;  %v9586_v34 = vld [vmem:[#allocation186_spill] sm:$0xff]  ;;  %v9602_v2 = vld [vmem:[#allocation104_spill] sm:$0xff] }
 0x320   : > { %v9566_v26 = vsel %vm7406_vm1, 4294967295, %v9565_v26  ;;  %vm7428_vm3 = vmand %vm7226_vm6, %vm9570_vm4  ;;  %vm9578_vm6 = vcmp.lt.f32.partialorder %v7096_v36, %v9032_v47  ;;  %v2610_v36 = vsub.f32 %v2510_v50, %v2594_v54  ;;  %v9585_v32 = vmin.f32 %v6752_v31, %v9019_v38  ;;  %v2579_v54 = vpop.permute.xlu1 %2578  ;;  %2761 = vrot.lane.b32.xlu0 %v9602_v2, %s4249_s21 }
 0x321   : > { %9567 = vst [vmem:[#allocation143_spill] sm:$0xff] %v9566_v26  ;;  %vm3419_vm8 = vmand %vm7274_vm12, %vm9574_vm14  ;;  %vm9582_vm14 = vcmp.gt.f32.partialorder %v9529_v16, %v9010_v21  ;;  %v1610_v30 = vadd.f32 %v9586_v34, %v1494_v20  ;;  %v2632_v21 = vmax.f32 %v7316_v17, 0.0  ;;  %v7480_v4 = vadd.f32 %v1854_v52, %v7102_v49  ;;  %v9601_v20 = vld [vmem:[#allocation43_spill] sm:$0xff]  ;;  %v9723_v26 = vld [vmem:[#allocation72_spill] sm:$0xff] }
 0x322   : > { %vm7449_vm4 = vmand %vm3419_vm8, %vm9578_vm6  ;;  %v2620_v13 = vsub.f32 %v9585_v32, %v2604_v33  ;;  %v1840_v31 = vadd.f32 %v7018_v18, %v1724_v48  ;;  %v1380_v9 = vadd.f32 %v9588_v39, %v1264_v51  ;;  %vm9590_vm8 = vcmp.gt.f32.partialorder %v9333_v28, %v4625_v44  ;;  %v9600_v33 = vld [vmem:[#allocation198_spill] sm:$0xff]  ;;  %v7556_v55 = vpop.permute.xlu0 %2466 }
 0x323   : > { %v9580_v57 = vsel %vm7449_vm4, 4294967295, %v9579_v57  ;;  %vm7460_vm5 = vmand %vm7342_vm13, %vm9582_vm14  ;;  %9587 = vst [vmem:[#allocation127_spill] sm:$0xff] %v7480_v4  ;;  %vm9589_vm14 = vcmp.lt.f32.partialorder %v9333_v28, %v4628_v43  ;;  %v2634_v49 = vmax.f32 %v7400_v25, 0.0  ;;  %v2626_v50 = vmax.f32 %v2610_v36, 0.0  ;;  %v9610_v36 = vld [vmem:[#allocation149_spill] sm:$0xff] }
 0x324   : > { %9581 = vst [vmem:[#allocation48_spill] sm:$0xff] %v9580_v57  ;;  %vm8783_vm13 = vmand %vm7449_vm4, %vm4698_vm2  ;;  %v2606_v18 = vmax.f32 %v2579_v54, %v9015_v11  ;;  %v9594_v44 = vmov 0  ;;  %v2636_v28 = vmax.f32 %v2620_v13, 0.0  ;;  %v1856_v25 = vmul.f32 0.25, %v1840_v31  ;;  %v9612_v13 = vld [vmem:[#allocation150_spill] sm:$0xff]  ;;  %v9616_v31 = vld [vmem:[#allocation116_spill] sm:$0xff] }
 0x325   : > { %vm7494_vm12 = vmand %vm9590_vm8, %vm9589_vm14  ;;  %vm3441_vm8 = vcmp.lt.f32.partialorder %v7175_v27, %v9032_v47  ;;  %vm9597_vm14 = vcmp.lt.f32.partialorder %v9485_v12, %v9011_v1  ;;  %v1726_v37 = vadd.f32 %v9600_v33, %v1610_v30  ;;  %v1496_v52 = vadd.f32 %v9601_v20, %v1380_v9  ;;  %v9615_v30 = vld [vmem:[#allocation119_spill] sm:$0xff]  ;;  %v9622_v9 = vld [vmem:[#allocation170_spill] sm:$0xff] }
 0x326   : > { %vm9593_vm6 = vmand %vm7406_vm1, %vm4698_vm2  ;;  %v2622_v48 = vsub.f32 %v9604_v5, %v2606_v18  ;;  %v7538_v19 = vmul.f32 %v7133_v22, %v2626_v50  ;;  %v9607_v51 = vmov 0  ;;  %v7548_v32 = vmul.f32 %v9610_v36, %v2628_v7  ;;  %v2587_v22 = vpop.permute.xlu1 %2586  ;;  %v9620_v7 = vld [vmem:[#allocation92_spill] sm:$0xff]  ;;  %v9631_v5 = vld [vmem:[#allocation185_spill] sm:$0xff] }
 0x327   : > { %vm7510_vm15 = vmand %vm9593_vm6, %vm8783_vm13  ;;  %vm9603_vm6 = vcmp.gt.f32.partialorder %v7175_v27, %v9015_v11  ;;  %v7551_v62 = vmul.f32 %v9612_v13, %v2630_v14  ;;  %v7554_v34 = vadd.f32 %v1856_v25, %v7138_v10  ;;  %v1842_v54 = vadd.f32 %v9615_v30, %v1726_v37  ;;  %v9626_v37 = vld [vmem:[#allocation77_spill] sm:$0xff] }
 0x328   : > { %v9595_v44 = vsel %vm7510_vm15, 4294967295, %v9594_v44  ;;  %vm7521_vm9 = vmand %vm7312_vm11, %vm9597_vm14  ;;  %9605 = vst [vmem:[#allocation145_spill] sm:$0xff] %v7538_v19  ;;  %vm9606_vm11 = vcmp.lt.f32.partialorder %v7175_v27, %v9019_v38  ;;  %v1612_v39 = vadd.f32 %v9616_v31, %v1496_v52  ;;  %v7574_v14 = vmul.f32 %v9620_v7, %v2632_v21  ;;  %v9627_v21 = vld [vmem:[#allocation107_spill] sm:$0xff]  ;;  %v9634_v13 = vld [vmem:[#allocation65_spill] sm:$0xff]  ;;  %v7615_v31 = vpop.permute.xlu0 %2474 }
 0x329   : > { %9596 = vst [vmem:[#allocation144_spill] sm:$0xff] %v9595_v44  ;;  %vm3206_vm13 = vmand %vm7371_vm10, %vm9603_vm6  ;;  %v2524_v50 = vmin.f32 %v9622_v9, %v9019_v38  ;;  %v2638_v18 = vmax.f32 %v2622_v48, 0.0  ;;  %v2608_v25 = vmax.f32 %v2587_v22, %v9015_v11  ;;  %v1858_v33 = vmul.f32 0.25, %v1842_v54  ;;  %2765 = vrot.lane.b32.xlu0 %v9627_v21, %s4249_s21  ;;  %v9637_v54 = vld [vmem:[#allocation189_spill] sm:$0xff]  ;;  %v9686_v44 = vld [vmem:[#allocation7_spill] sm:$0xff] }
 0x32a   : > { %vm7543_vm14 = vmand %vm3206_vm13, %vm9606_vm11  ;;  %9611 = vst [vmem:[#allocation146_spill] sm:$0xff] %v7548_v32  ;;  %vm9617_vm13 = vcmp.lt.f32.partialorder %v9485_v12, %v9025_v15  ;;  %vm9623_vm11 = vcmp.gt.f32.partialorder %v7175_v27, %v9031_v56  ;;  %v9624_v12 = vld [vmem:[#allocation154_spill] sm:$0xff]  ;;  %v1728_v20 = vadd.f32 %v9626_v37, %v1612_v39  ;;  %v9628_v52 = vmov 0  ;;  %v9635_v27 = vld [vmem:[#allocation168_spill] sm:$0xff] }
 0x32b   : > { %v9608_v51 = vsel %vm7543_vm14, 4294967295, %v9607_v51  ;;  %9613 = vst [vmem:[#allocation166_spill] sm:$0xff] %v7551_v62  ;;  %9614 = vst [vmem:[#allocation171_spill] sm:$0xff] %v7554_v34  ;;  %v7585_v3 = vmul.f32 %v9624_v12, %v2634_v49  ;;  %v7598_v48 = vmul.f32 %v9631_v5, %v2636_v28  ;;  %v1715_v49 = vadd.f32 %v9633_v23, %v7394_v59  ;;  %v7617_v59 = vpop.permute.xlu1 %2691  ;;  %v9639_v39 = vld [vmem:[#allocation35_spill] sm:$0xff]  ;;  %v9685_v34 = vld [vmem:[#allocation125_spill] sm:$0xff] }
 0x32c   : > { %9609 = vst [vmem:[#allocation38_spill] sm:$0xff] %v9608_v51  ;;  %vm7569_vm6 = vmand %vm7380_vm7, %vm9617_vm13  ;;  %v2624_v36 = vsub.f32 %v2524_v50, %v2608_v25  ;;  %v900_v22 = vmul.f32 2.0, %v9634_v13  ;;  %v7610_v30 = vmul.f32 %v9635_v27, %v2638_v18  ;;  %v7613_v28 = vadd.f32 %v1858_v33, %v9637_v54  ;;  %v9643_v50 = vld [vmem:[#allocation118_spill] sm:$0xff]  ;;  %v9651_v33 = vld [vmem:[#allocation109_spill] sm:$0xff]  ;;  %v7672_v23 = vpop.permute.xlu0 %2482 }
 0x32d   : > { %9621 = vst [vmem:[#allocation47_spill] sm:$0xff] %v7574_v14  ;;  %vm3421_vm10 = vmand %vm7428_vm3, %vm9623_vm11  ;;  %v1844_v7 = vadd.f32 %v9639_v39, %v1728_v20  ;;  %vm9640_vm13 = vcmp.gt.f32.partialorder %v9529_v16, %v9020_v45  ;;  %v1831_v18 = vadd.f32 %v9643_v50, %v1715_v49  ;;  %v9645_v45 = vmov 0  ;;  %2769 = vrot.lane.b32.xlu0 %v9651_v33, %s4249_s21  ;;  %v9658_v49 = vld [vmem:[#allocation29_spill] sm:$0xff]  ;;  %v9676_v39 = vld [vmem:[#allocation155_spill] sm:$0xff] }
 0x32e   : > { %9625 = vst [vmem:[#allocation181_spill] sm:$0xff] %v7585_v3  ;;  %vm7593_vm7 = vmand %vm3421_vm10, %vm3441_vm8  ;;  %vm3192_vm8 = vcmp.gt.f32.partialorder %v7261_v29, %v9015_v11  ;;  %vm3224_vm10 = vcmp.lt.f32.partialorder %v7261_v29, %v9019_v38  ;;  %v2640_v25 = vmax.f32 %v2624_v36, 0.0  ;;  %v9652_v20 = vmov 0  ;;  %v9744_v33 = vld [vmem:[#allocation100_spill] sm:$0xff] }
 0x32f   : > { %v9629_v52 = vsel %vm7593_vm7, 4294967295, %v9628_v52  ;;  %9632 = vst [vmem:[#allocation10_spill] sm:$0xff] %v7598_v48  ;;  %vm8786_vm3 = vmand %vm7593_vm7, %vm4698_vm2  ;;  %v1860_v12 = vmul.f32 0.25, %v1844_v7  ;;  %v1847_v37 = vmul.f32 0.25, %v1831_v18  ;;  %v7674_v43 = vpop.permute.xlu1 %2695  ;;  %v9661_v13 = vmov 0 }
 0x330   : > { %9630 = vst [vmem:[#allocation41_spill] sm:$0xff] %v9629_v52  ;;  %9636 = vst [vmem:[#allocation40_spill] sm:$0xff] %v7610_v30  ;;  %v7699_v10 = vpop.permute.xlu0 %2490  ;;  %v2509_v7 = vmin.f32 %v9676_v39, %v9019_v38  ;;  %v9677_v50 = vmov 0  ;;  %v9682_v39 = vld [vmem:[#allocation52_spill] sm:$0xff]  ;;  %v997_v24 = vsub.f32 %v9694_v58, %v9685_v34  ;;  %v9701_v58 = vld [vmem:[#allocation21_spill] sm:$0xff] }
 0x331   : > { %9638 = vst [vmem:[#allocation161_spill] sm:$0xff] %v7613_v28  ;;  %vm7627_vm11 = vmand %vm7494_vm12, %vm9640_vm13  ;;  %vm9648_vm12 = vcmp.lt.f32.partialorder %v9529_v16, %v9011_v1  ;;  %v9655_v1 = vld [vmem:[#allocation96_spill] sm:$0xff]  ;;  %v7670_v5 = vadd.f32 %v1860_v12, %v900_v22  ;;  %v7681_v36 = vadd.f32 %v1847_v37, %v9658_v49 }
 0x332   : > { %vm9644_vm15 = vmand %vm7543_vm14, %vm4698_vm2  ;;  %v7668_v8 = vmul.f32 %v9655_v1, %v2640_v25  ;;  %v9681_v12 = vld [vmem:[#allocation16_spill] sm:$0xff]  ;;  %v7827_v62 = vand.u32 2147483647, %v997_v24 }
 0x333   : > { %vm7642_vm1 = vmand %vm9644_vm15, %vm8786_vm3  ;;  %vm3407_vm15 = vcmp.gt.f32.partialorder %v7261_v29, %v9031_v56  ;;  %9657 = vst [vmem:[#allocation94_spill] sm:$0xff] %v7670_v5  ;;  %v7701_v22 = vpop.permute.xlu1 %2699  ;;  %v2511_v37 = vmin.f32 %v9681_v12, %v9019_v38  ;;  %v989_v12 = vsub.f32 %v9686_v44, %v9685_v34  ;;  %v9692_v44 = vld [vmem:[#allocation11_spill] sm:$0xff] }
 0x334   : > { %v9646_v45 = vsel %vm7642_vm1, 4294967295, %v9645_v45  ;;  %vm7651_vm13 = vmand %vm7460_vm5, %vm9648_vm12  ;;  %vm3443_vm5 = vcmp.lt.f32.partialorder %v7261_v29, %v9032_v47  ;;  %9656 = vst [vmem:[#allocation164_spill] sm:$0xff] %v7668_v8  ;;  %v9660_v29 = vld [vmem:[#allocation111_spill] sm:$0xff]  ;;  %vm3194_vm12 = vcmp.gt.f32.partialorder %v7328_v63, %v9015_v11  ;;  %v7733_v27 = vpop.permute.xlu0 %2498 }
 0x335   : > { %9647 = vst [vmem:[#allocation152_spill] sm:$0xff] %v9646_v45  ;;  %vm3208_vm14 = vmand %vm7521_vm9, %vm3192_vm8  ;;  %2773 = vrot.lane.b32.xlu0 %v9660_v29, %s4249_s21  ;;  %vm3373_vm9 = vcmp.lt.f32.partialorder %v9529_v16, %v9025_v15  ;;  %v9665_v15 = vmov 0  ;;  %v9668_v16 = vmov 0  ;;  %v9742_v29 = vld [vmem:[#allocation133_spill] sm:$0xff] }
 0x336   : > { %vm7661_vm3 = vmand %vm3208_vm14, %vm3224_vm10  ;;  %9659 = vst [vmem:[#allocation191_spill] sm:$0xff] %v7681_v36 }
 0x337   : > { %v9653_v20 = vsel %vm7661_vm3, 4294967295, %v9652_v20  ;;  %vm3423_vm14 = vmand %vm7569_vm6, %vm3407_vm15  ;;  %vm3226_vm6 = vcmp.lt.f32.partialorder %v7328_v63, %v9019_v38  ;;  %v7735_v54 = vpop.permute.xlu1 %2703 }
 0x338   : > { %9654 = vst [vmem:[#allocation165_spill] sm:$0xff] %v9653_v20  ;;  %vm7687_vm8 = vmand %vm3423_vm14, %vm3443_vm5  ;;  %v9715_v20 = vld [vmem:[#allocation172_spill] sm:$0xff] }
 0x339   : > { %v9662_v13 = vsel %vm7687_vm8, 4294967295, %v9661_v13  ;;  %vm8824_vm10 = vmand %vm7687_vm8, %vm4698_vm2  ;;  %2777 = vrot.lane.b32.xlu0 %v9519_v6, %s4249_s21  ;;  %9671 = vst [vmem:[#allocation50_spill] sm:$0xff] %v7735_v54 }
 0x33a   : > { %9663 = vst [vmem:[#allocation182_spill] sm:$0xff] %v9662_v13  ;;  %vm3389_vm15 = vmand %vm7627_vm11, %vm3373_vm9  ;;  %vm3409_vm9 = vcmp.gt.f32.partialorder %v7328_v63, %v9031_v56  ;;  %v9672_v56 = vmov 0  ;;  %v9716_v13 = vld [vmem:[#allocation67_spill] sm:$0xff] }
 0x33b   : > { %vm9664_vm5 = vmand %vm7661_vm3, %vm4698_vm2  ;;  %vm3445_vm3 = vcmp.lt.f32.partialorder %v7328_v63, %v9032_v47  ;;  %v2527_v47 = vpop.permute.xlu0 %2526  ;;  %v7751_v63 = vpop.permute.xlu1 %2707 }
 0x33c   : > { %vm7717_vm14 = vmand %vm9664_vm5, %vm8824_vm10  ;;  %9675 = vst [vmem:[#allocation14_spill] sm:$0xff] %v7751_v63  ;;  %v2593_v9 = vmax.f32 %v2527_v47, %v9015_v11 }
 0x33d   : > { %v9666_v15 = vsel %vm7717_vm14, 4294967295, %v9665_v15  ;;  %vm3210_vm11 = vmand %vm7651_vm13, %vm3194_vm12  ;;  %2781 = vrot.lane.b32.xlu0 %v9533_v53, %s4249_s21  ;;  %v9739_v53 = vld [vmem:[#allocation159_spill] sm:$0xff] }
 0x33e   : > { %9667 = vst [vmem:[#allocation82_spill] sm:$0xff] %v9666_v15  ;;  %vm7727_vm1 = vmand %vm3210_vm11, %vm3226_vm6  ;;  %v2609_v18 = vsub.f32 %v2509_v7, %v2593_v9 }
 0x33f   : > { %v9669_v16 = vsel %vm7727_vm1, 4294967295, %v9668_v16  ;;  %vm8822_vm5 = vmand %vm7727_vm1, %vm4698_vm2  ;;  %v2535_v25 = vpop.permute.xlu0 %2534  ;;  %v7770_v17 = vpop.permute.xlu1 %2711 }
 0x340   : > { %9670 = vst [vmem:[#allocation44_spill] sm:$0xff] %v9669_v16  ;;  %vm3425_vm13 = vmand %vm3389_vm15, %vm3409_vm9  ;;  %v2625_v1 = vmax.f32 %v2609_v18, 0.0  ;;  %v2595_v49 = vmax.f32 %v2535_v25, %v9015_v11  ;;  %v9687_v18 = vld [vmem:[#allocation192_spill] sm:$0xff] }
 0x341   : > { %vm7743_vm12 = vmand %vm3425_vm13, %vm3445_vm3  ;;  %9680 = vst [vmem:[#allocation196_spill] sm:$0xff] %v7770_v17  ;;  %v9743_v17 = vld [vmem:[#allocation123_spill] sm:$0xff] }
 0x342   : > { %v9673_v56 = vsel %vm7743_vm12, 4294967295, %v9672_v56  ;;  %vm8823_vm6 = vmand %vm7743_vm12, %vm4698_vm2  ;;  %v2611_v47 = vsub.f32 %v2511_v37, %v2595_v49  ;;  %v7776_v5 = vmul.f32 %v9682_v39, %v2625_v1  ;;  %v9690_v1 = vld [vmem:[#allocation9_spill] sm:$0xff]  ;;  %v2515_v39 = vmin.f32 %v7556_v55, %v9019_v38  ;;  %v9695_v55 = vld [vmem:[#allocation18_spill] sm:$0xff] }
 0x343   : > { %9674 = vst [vmem:[#allocation194_spill] sm:$0xff] %v9673_v56  ;;  %vm7766_vm3 = vmand %vm8822_vm5, %vm8823_vm6  ;;  %v2543_v15 = vpop.permute.xlu0 %2542  ;;  %v7778_v28 = vpop.permute.xlu1 %2715  ;;  %v991_v49 = vsub.f32 %v9690_v1, %v9685_v34  ;;  %v7803_v1 = vand.u32 2147483647, %v989_v12  ;;  %v999_v30 = vsub.f32 %v9695_v55, %v9685_v34  ;;  %v1001_v12 = vsub.f32 %v9701_v58, %v9685_v34  ;;  %v9702_v55 = vld [vmem:[#allocation27_spill] sm:$0xff]  ;;  %v9714_v56 = vld [vmem:[#allocation124_spill] sm:$0xff] }
 0x344   : > { %v9678_v50 = vsel %vm7766_vm3, 4294967295, %v9677_v50  ;;  %9683 = vst [vmem:[#allocation19_spill] sm:$0xff] %v7776_v5  ;;  %9684 = vst [vmem:[#allocation95_spill] sm:$0xff] %v7778_v28  ;;  %v2627_v7 = vmax.f32 %v2611_v47, 0.0  ;;  %v2597_v9 = vmax.f32 %v2543_v15, %v9015_v11  ;;  %v1105_v35 = vsub.f32 %v9724_v40, %v9714_v56 }
 0x345   : > { %9679 = vst [vmem:[#allocation89_spill] sm:$0xff] %v9678_v50  ;;  %v2513_v50 = vmin.f32 %v7482_v41, %v9019_v38  ;;  %v9691_v41 = vld [vmem:[#allocation17_spill] sm:$0xff]  ;;  %v7814_v14 = vand.u32 2147483647, %v991_v49  ;;  %v9703_v49 = vld [vmem:[#allocation30_spill] sm:$0xff] }
 0x346   : > { %v7786_v4 = vmul.f32 %v9687_v18, %v2627_v7  ;;  %v2738_v47 = vmul.f32 %v9691_v41, %v7617_v59  ;;  %v9693_v7 = vld [vmem:[#allocation13_spill] sm:$0xff]  ;;  %v7831_v32 = vand.u32 2147483647, %v999_v30  ;;  %v2519_v30 = vmin.f32 %v7672_v23, %v9019_v38 }
 0x347   : > { %v2613_v45 = vsub.f32 %v2513_v50, %v2597_v9  ;;  %v2551_v25 = vpop.permute.xlu0 %2550  ;;  %v7788_v37 = vpop.permute.xlu1 %2719  ;;  %v993_v9 = vsub.f32 %v9692_v44, %v9685_v34  ;;  %v995_v18 = vsub.f32 %v9693_v7, %v9685_v34  ;;  %v9700_v44 = vld [vmem:[#allocation25_spill] sm:$0xff] }
 0x348   : > { %9688 = vst [vmem:[#allocation102_spill] sm:$0xff] %v7786_v4  ;;  %9689 = vst [vmem:[#allocation88_spill] sm:$0xff] %v7788_v37  ;;  %v2599_v50 = vmax.f32 %v2551_v25, %v9015_v11  ;;  %v9699_v25 = vld [vmem:[#allocation22_spill] sm:$0xff] }
 0x349   : > { %v2629_v15 = vmax.f32 %v2613_v45, 0.0  ;;  %v9698_v45 = vld [vmem:[#allocation131_spill] sm:$0xff] }
 0x34a   : > { %v2615_v8 = vsub.f32 %v2515_v39, %v2599_v50  ;;  %v1566_v41 = vsub.f32 %v9699_v25, %v9698_v45  ;;  %v1569_v48 = vsub.f32 %v9700_v44, %v9698_v45  ;;  %v2517_v39 = vmin.f32 %v7615_v31, %v9019_v38  ;;  %v9704_v31 = vld [vmem:[#allocation70_spill] sm:$0xff] }
 0x34b   : > { %v7808_v59 = vmul.f32 %v9696_v60, %v2629_v15  ;;  %v2559_v3 = vpop.permute.xlu0 %2558  ;;  %v2756_v7 = vpop.permute.xlu1 %2755  ;;  %v1571_v25 = vsub.f32 %v9702_v55, %v9698_v45  ;;  %v7825_v44 = vand.u32 2147483647, %v995_v18  ;;  %v1573_v4 = vsub.f32 %v9703_v49, %v9698_v45  ;;  %v9707_v18 = vld [vmem:[#allocation36_spill] sm:$0xff]  ;;  %v9709_v49 = vld [vmem:[#allocation51_spill] sm:$0xff] }
 0x34c   : > { %v2631_v50 = vmax.f32 %v2615_v8, 0.0  ;;  %v2601_v60 = vmax.f32 %v2559_v3, %v9015_v11  ;;  %v2802_v15 = vmul.f32 %v2756_v7, %v2738_v47  ;;  %v7836_v3 = vand.u32 2147483647, %v1566_v41  ;;  %v9706_v47 = vld [vmem:[#allocation33_spill] sm:$0xff]  ;;  %v9708_v41 = vld [vmem:[#allocation39_spill] sm:$0xff] }
 0x34d   : > { %9697 = vst [vmem:[#allocation105_spill] sm:$0xff] %v7808_v59  ;;  %v7823_v59 = vand.u32 2147483647, %v993_v9  ;;  %v1575_v9 = vsub.f32 %v9706_v47, %v9698_v45  ;;  %v1577_v7 = vsub.f32 %v9707_v18, %v9698_v45  ;;  %v7842_v55 = vand.u32 2147483647, %v1001_v12  ;;  %v9710_v47 = vld [vmem:[#allocation61_spill] sm:$0xff] }
 0x34e   : > { %v2617_v58 = vsub.f32 %v2517_v39, %v2601_v60  ;;  %2824 = vperm.xlu1 %3996, %v2802_v15   ;;  %v7834_v8 = vmul.f32 %v9704_v31, %v2631_v50  ;;  %v7844_v5 = vand.u32 2147483647, %v1569_v48  ;;  %v7849_v60 = vand.u32 2147483647, %v1571_v25 }
 0x34f   : > { %v2567_v24 = vpop.permute.xlu0 %2566  ;;  %v1579_v15 = vsub.f32 %v9708_v41, %v9698_v45  ;;  %v1218_v31 = vsub.f32 %v9709_v49, %v9428_v0  ;;  %v1221_v12 = vsub.f32 %v9710_v47, %v9428_v0  ;;  %v7857_v18 = vand.u32 2147483647, %v1573_v4 }
 0x350   : > { %9705 = vst [vmem:[#allocation24_spill] sm:$0xff] %v7834_v8  ;;  %v2633_v39 = vmax.f32 %v2617_v58, 0.0  ;;  %v2603_v50 = vmax.f32 %v2567_v24, %v9015_v11  ;;  %v9711_v8 = vld [vmem:[#allocation64_spill] sm:$0xff]  ;;  %v9712_v58 = vld [vmem:[#allocation179_spill] sm:$0xff]  ;;  %v7864_v25 = vand.u32 2147483647, %v1575_v9  ;;  %v1102_v49 = vsub.f32 %v9715_v20, %v9714_v56 }
 0x351   : > { %v1223_v23 = vsub.f32 %v9711_v8, %v9428_v0  ;;  %v7866_v24 = vand.u32 2147483647, %v1577_v7  ;;  %v1225_v47 = vsub.f32 %v9716_v13, %v9428_v0  ;;  %v2521_v4 = vmin.f32 %v7699_v10, %v9019_v38  ;;  %v9718_v7 = vld [vmem:[#allocation87_spill] sm:$0xff]  ;;  %v9720_v10 = vld [vmem:[#allocation80_spill] sm:$0xff] }
 0x352   : > { %v2619_v48 = vsub.f32 %v2519_v30, %v2603_v50  ;;  %v7862_v16 = vmul.f32 %v9712_v58, %v2633_v39  ;;  %v9717_v39 = vld [vmem:[#allocation69_spill] sm:$0xff]  ;;  %v7877_v9 = vand.u32 2147483647, %v1579_v15  ;;  %v986_v58 = vsub.f32 %v9718_v7, %v9685_v34  ;;  %v9719_v13 = vld [vmem:[#allocation71_spill] sm:$0xff] }
 0x353   : > { %v2575_v41 = vpop.permute.xlu0 %2574  ;;  %v1227_v50 = vsub.f32 %v9717_v39, %v9428_v0  ;;  %v1237_v51 = vand.u32 2147483647, %v1221_v12  ;;  %v7881_v52 = vand.u32 2147483647, %v1223_v23  ;;  %v1229_v36 = vsub.f32 %v9719_v13, %v9428_v0  ;;  %v9727_v13 = vld [vmem:[#allocation75_spill] sm:$0xff] }
 0x354   : > { %9713 = vst [vmem:[#allocation197_spill] sm:$0xff] %v7862_v16  ;;  %v2635_v30 = vmax.f32 %v2619_v48, 0.0  ;;  %v2605_v8 = vmax.f32 %v2575_v41, %v9015_v11  ;;  %v1234_v16 = vand.u32 2147483647, %v1218_v31  ;;  %v9722_v41 = vld [vmem:[#allocation137_spill] sm:$0xff]  ;;  %v2523_v31 = vmin.f32 %v7733_v27, %v9019_v38  ;;  %v9729_v27 = vld [vmem:[#allocation84_spill] sm:$0xff] }
 0x355   : > { %v1798_v57 = vsub.f32 %v9723_v26, %v9722_v41  ;;  %v1118_v15 = vand.u32 2147483647, %v1102_v49  ;;  %v7892_v34 = vand.u32 2147483647, %v1225_v47  ;;  %v1002_v7 = vand.u32 2147483647, %v986_v58 }
 0x356   : > { %v2621_v20 = vsub.f32 %v2521_v4, %v2605_v8  ;;  %v7886_v48 = vmul.f32 %v9720_v10, %v2635_v30  ;;  %v7897_v4 = vand.u32 2147483647, %v1227_v50  ;;  %v9725_v30 = vld [vmem:[#allocation74_spill] sm:$0xff]  ;;  %v9726_v26 = vld [vmem:[#allocation73_spill] sm:$0xff]  ;;  %v1233_v40 = vsub.f32 %v9727_v13, %v9428_v0  ;;  %v9728_v47 = vld [vmem:[#allocation76_spill] sm:$0xff] }
 0x357   : > { %v2583_v39 = vpop.permute.xlu0 %2582  ;;  %v1801_v8 = vsub.f32 %v9725_v30, %v9722_v41  ;;  %v1231_v49 = vsub.f32 %v9726_v26, %v9428_v0  ;;  %v1803_v10 = vsub.f32 %v9728_v47, %v9722_v41  ;;  %v7907_v38 = vand.u32 2147483647, %v1229_v36  ;;  %v9731_v58 = vld [vmem:[#allocation53_spill] sm:$0xff]  ;;  %v9732_v26 = vld [vmem:[#allocation78_spill] sm:$0xff]  ;;  %v9733_v0 = vld [vmem:[#allocation79_spill] sm:$0xff] }
 0x358   : > { %9721 = vst [vmem:[#allocation97_spill] sm:$0xff] %v7886_v48  ;;  %v2637_v12 = vmax.f32 %v2621_v20, 0.0  ;;  %v2607_v23 = vmax.f32 %v2583_v39, %v9015_v11  ;;  %v7912_v50 = vand.u32 2147483647, %v1798_v57  ;;  %v1134_v20 = vadd.f32 %v1118_v15, %v1002_v7  ;;  %v9734_v47 = vld [vmem:[#allocation129_spill] sm:$0xff]  ;;  %v9736_v57 = vld [vmem:[#allocation130_spill] sm:$0xff] }
 0x359   : > { %v1121_v39 = vand.u32 2147483647, %v1105_v35  ;;  %v1107_v30 = vsub.f32 %v9731_v58, %v9714_v56  ;;  %v1805_v42 = vsub.f32 %v9732_v26, %v9722_v41  ;;  %v1807_v13 = vsub.f32 %v9733_v0, %v9722_v41  ;;  %v9737_v58 = vld [vmem:[#allocation98_spill] sm:$0xff]  ;;  %v9738_v0 = vld [vmem:[#allocation59_spill] sm:$0xff] }
 0x35a   : > { %v2623_v48 = vsub.f32 %v2523_v31, %v2607_v23  ;;  %v7910_v11 = vmul.f32 %v9729_v27, %v2637_v12  ;;  %v9735_v31 = vld [vmem:[#allocation93_spill] sm:$0xff]  ;;  %v7922_v12 = vand.u32 2147483647, %v1801_v8  ;;  %v7925_v15 = vand.u32 2147483647, %v1231_v49 }
 0x35b   : > { %v1450_v36 = vsub.f32 %v9735_v31, %v9734_v47  ;;  %v1268_v19 = vpop.permute.xlu0 %1267  ;;  %v7927_v35 = vand.u32 2147483647, %v1233_v40  ;;  %v7929_v7 = vand.u32 2147483647, %v1803_v10  ;;  %v1453_v26 = vsub.f32 %v9737_v58, %v9734_v47  ;;  %v9741_v10 = vld [vmem:[#allocation81_spill] sm:$0xff] }
 0x35c   : > { %9730 = vst [vmem:[#allocation99_spill] sm:$0xff] %v7910_v11  ;;  %v2639_v23 = vmax.f32 %v2623_v48, 0.0  ;;  %v1334_v27 = vsub.f32 %v1268_v19, %v9736_v57  ;;  %v1109_v11 = vsub.f32 %v9738_v0, %v9714_v56  ;;  %v1250_v48 = vadd.f32 %v1234_v16, %v1134_v20 }
 0x35d   : > { %v1137_v37 = vadd.f32 %v1121_v39, %v7803_v1  ;;  %v1123_v19 = vand.u32 2147483647, %v1107_v30  ;;  %v7939_v49 = vand.u32 2147483647, %v1805_v42  ;;  %v7941_v40 = vand.u32 2147483647, %v1807_v13 }
 0x35e   : > { %v7936_v31 = vmul.f32 %v9739_v53, %v2639_v23  ;;  %v1350_v8 = vand.u32 2147483647, %v1334_v27  ;;  %v1466_v28 = vand.u32 2147483647, %v1450_v36  ;;  %v1682_v0 = vsub.f32 %v9743_v17, %v9742_v29  ;;  %v9745_v1 = vld [vmem:[#allocation103_spill] sm:$0xff]  ;;  %v9746_v30 = vld [vmem:[#allocation174_spill] sm:$0xff] }
 0x35f   : > { %v1280_v58 = vpop.permute.xlu0 %1279  ;;  %v886_v53 = vmul.f32 2.0, %v9744_v33  ;;  %v1469_v20 = vand.u32 2147483647, %v1453_v26  ;;  %v1455_v42 = vsub.f32 %v9745_v1, %v9734_v47  ;;  %v1125_v39 = vand.u32 2147483647, %v1109_v11  ;;  %v9747_v17 = vld [vmem:[#allocation106_spill] sm:$0xff] }
 0x360   : > { %9740 = vst [vmem:[#allocation186_spill] sm:$0xff] %v7936_v31  ;;  %v1366_v23 = vadd.f32 %v1350_v8, %v1250_v48  ;;  %v1337_v16 = vsub.f32 %v1280_v58, %v9736_v57  ;;  %v1111_v13 = vsub.f32 %v9746_v30, %v9714_v56  ;;  %v1253_v6 = vadd.f32 %v1237_v51, %v1137_v37  ;;  %v9748_v33 = vld [vmem:[#allocation108_spill] sm:$0xff]  ;;  %v9749_v26 = vld [vmem:[#allocation126_spill] sm:$0xff]  ;;  %v9750_v58 = vld [vmem:[#allocation101_spill] sm:$0xff] }
 0x361   : > { %v1139_v31 = vadd.f32 %v1123_v19, %v7814_v14  ;;  %v1457_v63 = vsub.f32 %v9747_v17, %v9734_v47  ;;  %v1459_v48 = vsub.f32 %v9748_v33, %v9734_v47  ;;  %v1685_v8 = vsub.f32 %v9749_v26, %v9742_v29 }
 0x362   : > { %v1482_v27 = vadd.f32 %v1466_v28, %v1366_v23  ;;  %v1353_v36 = vand.u32 2147483647, %v1337_v16  ;;  %v889_v1 = vmul.f32 2.0, %v9750_v58  ;;  %v1698_v21 = vand.u32 2147483647, %v1682_v0  ;;  %v9751_v23 = vld [vmem:[#allocation176_spill] sm:$0xff] }
 0x363   : > { %v1288_v11 = vpop.permute.xlu0 %1287  ;;  %v1471_v37 = vand.u32 2147483647, %v1455_v42  ;;  %v1141_v14 = vadd.f32 %v1125_v39, %v7823_v59  ;;  %v1127_v19 = vand.u32 2147483647, %v1111_v13  ;;  %v1113_v16 = vsub.f32 %v9751_v23, %v9714_v56 }
 0x364   : > { %v1598_v30 = vadd.f32 %v7836_v3, %v1482_v27  ;;  %v1369_v28 = vadd.f32 %v1353_v36, %v1253_v6  ;;  %v1339_v51 = vsub.f32 %v1288_v11, %v9736_v57  ;;  %v1255_v26 = vadd.f32 %v7881_v52, %v1139_v31  ;;  %v9752_v3 = vld [vmem:[#allocation128_spill] sm:$0xff] }
 0x365   : > { %v1473_v58 = vand.u32 2147483647, %v1457_v63  ;;  %v1475_v2 = vand.u32 2147483647, %v1459_v48  ;;  %v1701_v0 = vand.u32 2147483647, %v1685_v8  ;;  %v1687_v6 = vsub.f32 %v9752_v3, %v9742_v29 }
 0x366   : > { %v1714_v17 = vadd.f32 %v1698_v21, %v1598_v30  ;;  %v1485_v33 = vadd.f32 %v1469_v20, %v1369_v28  ;;  %v1355_v54 = vand.u32 2147483647, %v1339_v51  ;;  %v1257_v21 = vadd.f32 %v7892_v34, %v1141_v14  ;;  %v9753_v63 = vld [vmem:[#allocation178_spill] sm:$0xff] }
 0x367   : > { %v1296_v27 = vpop.permute.xlu0 %1295  ;;  %v1143_v20 = vadd.f32 %v1127_v19, %v7825_v44  ;;  %v1129_v52 = vand.u32 2147483647, %v1113_v16  ;;  %v1115_v31 = vsub.f32 %v9753_v63, %v9714_v56  ;;  %v9754_v30 = vld [vmem:[#allocation110_spill] sm:$0xff]  ;;  %v1703_v51 = vand.u32 2147483647, %v1687_v6 }
 0x368   : > { %v1601_v42 = vadd.f32 %v7844_v5, %v1485_v33  ;;  %v1371_v36 = vadd.f32 %v1355_v54, %v1255_v26  ;;  %v1341_v59 = vsub.f32 %v1296_v27, %v9736_v57  ;;  %v1830_v39 = vadd.f32 %v7912_v50, %v1714_v17  ;;  %v9755_v54 = vld [vmem:[#allocation112_spill] sm:$0xff] }
 0x369   : > { %v1461_v5 = vsub.f32 %v9754_v30, %v9734_v47  ;;  %v1463_v28 = vsub.f32 %v9755_v54, %v9734_v47  ;;  %v9756_v50 = vld [vmem:[#allocation132_spill] sm:$0xff]  ;;  %v1131_v17 = vand.u32 2147483647, %v1115_v31  ;;  %v1259_v27 = vadd.f32 %v7897_v4, %v1143_v20 }
 0x36a   : > { %v1717_v13 = vadd.f32 %v1701_v0, %v1601_v42  ;;  %v1487_v48 = vadd.f32 %v1471_v37, %v1371_v36  ;;  %v1357_v8 = vand.u32 2147483647, %v1341_v59  ;;  %v1846_v11 = vmul.f32 0.25, %v1830_v39  ;;  %v9757_v33 = vld [vmem:[#allocation12_spill] sm:$0xff]  ;;  %v9759_v39 = vld [vmem:[#allocation163_spill] sm:$0xff] }
 0x36b   : > { %v1689_v34 = vsub.f32 %v9756_v50, %v9742_v29  ;;  %v1304_v14 = vpop.permute.xlu0 %1303  ;;  %v1145_v37 = vadd.f32 %v1129_v52, %v7827_v62  ;;  %v1117_v26 = vsub.f32 %v9757_v33, %v9714_v56  ;;  %v1147_v4 = vadd.f32 %v1131_v17, %v7831_v32 }
 0x36c   : > { %v1603_v44 = vadd.f32 %v7849_v60, %v1487_v48  ;;  %v1373_v19 = vadd.f32 %v1357_v8, %v1257_v21  ;;  %v1343_v23 = vsub.f32 %v1304_v14, %v9736_v57  ;;  %v7984_v16 = vadd.f32 %v1846_v11, %v886_v53  ;;  %v9758_v60 = vld [vmem:[#allocation134_spill] sm:$0xff] }
 0x36d   : > { %v1833_v0 = vadd.f32 %v7922_v12, %v1717_v13  ;;  %v1705_v36 = vand.u32 2147483647, %v1689_v34  ;;  %v1691_v59 = vsub.f32 %v9758_v60, %v9742_v29  ;;  %v891_v53 = vmul.f32 2.0, %v9759_v39  ;;  %v9765_v60 = vld [vmem:[#allocation42_spill] sm:$0xff] }
 0x36e   : > { %v1719_v3 = vadd.f32 %v1703_v51, %v1603_v44  ;;  %v1489_v6 = vadd.f32 %v1473_v58, %v1373_v19  ;;  %v1359_v42 = vand.u32 2147483647, %v1343_v23  ;;  %v1261_v58 = vadd.f32 %v7907_v38, %v1145_v37 }
 0x36f   : > { %v1312_v21 = vpop.permute.xlu0 %1311  ;;  %v1849_v63 = vmul.f32 0.25, %v1833_v0  ;;  %v1133_v20 = vand.u32 2147483647, %v1117_v26  ;;  %v1477_v30 = vand.u32 2147483647, %v1461_v5  ;;  %v1263_v17 = vadd.f32 %v7925_v15, %v1147_v4  ;;  %v9763_v26 = vld [vmem:[#allocation136_spill] sm:$0xff] }
 0x370   : > { %v1605_v62 = vadd.f32 %v7857_v18, %v1489_v6  ;;  %v1375_v52 = vadd.f32 %v1359_v42, %v1259_v27  ;;  %v1345_v56 = vsub.f32 %v1312_v21, %v9736_v57  ;;  %v1835_v12 = vadd.f32 %v7929_v7, %v1719_v3  ;;  %v9760_v18 = vld [vmem:[#allocation135_spill] sm:$0xff] }
 0x371   : > { %v7999_v31 = vadd.f32 %v1849_v63, %v889_v1  ;;  %v1479_v54 = vand.u32 2147483647, %v1463_v28  ;;  %v1707_v51 = vand.u32 2147483647, %v1691_v59  ;;  %v1693_v50 = vsub.f32 %v9760_v18, %v9742_v29  ;;  %v9761_v1 = vld [vmem:[#allocation114_spill] sm:$0xff]  ;;  %v9764_v3 = vld [vmem:[#allocation55_spill] sm:$0xff] }
 0x372   : > { %v1721_v13 = vadd.f32 %v1705_v36, %v1605_v62  ;;  %v1491_v48 = vadd.f32 %v1475_v2, %v1375_v52  ;;  %v1361_v8 = vand.u32 2147483647, %v1345_v56  ;;  %v1851_v11 = vmul.f32 0.25, %v1835_v12  ;;  %v9762_v2 = vld [vmem:[#allocation169_spill] sm:$0xff]  ;;  %v9766_v15 = vld [vmem:[#allocation83_spill] sm:$0xff] }
 0x373   : > { %v1320_v34 = vpop.permute.xlu0 %1319  ;;  %v1465_v44 = vsub.f32 %v9761_v1, %v9734_v47  ;;  %v893_v19 = vmul.f32 2.0, %v9762_v2  ;;  %v1149_v5 = vadd.f32 %v1133_v20, %v7842_v55  ;;  %v1695_v0 = vsub.f32 %v9763_v26, %v9742_v29 }
 0x374   : > { %v1607_v7 = vadd.f32 %v7864_v25, %v1491_v48  ;;  %v1377_v14 = vadd.f32 %v1361_v8, %v1261_v58  ;;  %v1347_v38 = vsub.f32 %v1320_v34, %v9736_v57  ;;  %v8005_v32 = vadd.f32 %v1851_v11, %v891_v53  ;;  %v9769_v8 = vld [vmem:[#allocation6_spill] sm:$0xff] }
 0x375   : > { %v1837_v28 = vadd.f32 %v7939_v49, %v1721_v13  ;;  %v1709_v25 = vand.u32 2147483647, %v1693_v50  ;;  %v895_v6 = vmul.f32 2.0, %v9764_v3  ;;  %v1581_v59 = vsub.f32 %v9765_v60, %v9698_v45  ;;  %v9768_v45 = vld [vmem:[#allocation138_spill] sm:$0xff] }
 0x376   : > { %v1723_v23 = vadd.f32 %v1707_v51, %v1607_v7  ;;  %v1493_v37 = vadd.f32 %v1477_v30, %v1377_v14  ;;  %v1363_v33 = vand.u32 2147483647, %v1347_v38  ;;  %v1811_v39 = vsub.f32 %v9766_v15, %v9722_v41  ;;  %v9770_v51 = vld [vmem:[#allocation85_spill] sm:$0xff] }
 0x377   : > { %v1328_v27 = vpop.permute.xlu0 %1327  ;;  %v1853_v42 = vmul.f32 0.25, %v1837_v28  ;;  %v1265_v53 = vadd.f32 %v7927_v35, %v1149_v5  ;;  %v1481_v12 = vand.u32 2147483647, %v1465_v44  ;;  %v1697_v4 = vsub.f32 %v9768_v45, %v9742_v29  ;;  %v9771_v38 = vld [vmem:[#allocation45_spill] sm:$0xff] }
 0x378   : > { %v1609_v47 = vadd.f32 %v7866_v24, %v1493_v37  ;;  %v1379_v36 = vadd.f32 %v1363_v33, %v1263_v17  ;;  %v1349_v55 = vsub.f32 %v1328_v27, %v9736_v57  ;;  %v1839_v49 = vadd.f32 %v7941_v40, %v1723_v23  ;;  %v9772_v23 = vld [vmem:[#allocation62_spill] sm:$0xff] }
 0x379   : > { %v8024_v21 = vadd.f32 %v1853_v42, %v893_v19  ;;  %v9767_v24 = vsub.f32 %v9741_v10, %v9722_v41  ;;  %v1711_v40 = vand.u32 2147483647, %v1695_v0  ;;  %v1597_v48 = vand.u32 2147483647, %v1581_v59 }
 0x37a   : > { %v1725_v63 = vadd.f32 %v1709_v25, %v1609_v47  ;;  %v1495_v62 = vadd.f32 %v1479_v54, %v1379_v36  ;;  %v1365_v52 = vand.u32 2147483647, %v1349_v55  ;;  %v1855_v56 = vmul.f32 0.25, %v1839_v49  ;;  %v9773_v49 = vld [vmem:[#allocation20_spill] sm:$0xff] }
 0x37b   : > { %v1825_v57 = vand.u32 2147483647, %v9767_v24  ;;  %v2690_v58 = vpop.permute.xlu0 %2689  ;;  %v897_v11 = vmul.f32 2.0, %v9769_v8  ;;  %v1827_v54 = vand.u32 2147483647, %v1811_v39  ;;  %v1813_v10 = vsub.f32 %v9770_v51, %v9722_v41  ;;  %v9775_v24 = vld [vmem:[#allocation104_spill] sm:$0xff] }
 0x37c   : > { %v1611_v20 = vadd.f32 %v7877_v9, %v1495_v62  ;;  %v1381_v13 = vadd.f32 %v1365_v52, %v1265_v53  ;;  %v8032_v35 = vadd.f32 %v1855_v56, %v895_v6  ;;  %v1713_v14 = vand.u32 2147483647, %v1697_v4  ;;  %v2760_v6 = vpop.permute.xlu1 %2759  ;;  %v9781_v51 = vld [vmem:[#allocation109_spill] sm:$0xff] }
 0x37d   : > { %v1841_v30 = vadd.f32 %v1825_v57, %v1725_v63  ;;  %v899_v29 = vmul.f32 2.0, %v9771_v38  ;;  %v1829_v2 = vand.u32 2147483647, %v1813_v10  ;;  %v901_v37 = vmul.f32 2.0, %v9772_v23  ;;  %v9774_v63 = vld [vmem:[#allocation23_spill] sm:$0xff] }
 0x37e   : > { %v1727_v18 = vadd.f32 %v1711_v40, %v1611_v20  ;;  %v1497_v50 = vadd.f32 %v1481_v12, %v1381_v13  ;;  %v2737_v36 = vmul.f32 %v9559_v46, %v2690_v58  ;;  %v2740_v60 = vmul.f32 %v9773_v49, %v7674_v43  ;;  %v9776_v40 = vld [vmem:[#allocation50_spill] sm:$0xff]  ;;  %v9778_v20 = vld [vmem:[#allocation107_spill] sm:$0xff] }
 0x37f   : > { %v2694_v34 = vpop.permute.xlu0 %2693  ;;  %v1857_v7 = vmul.f32 0.25, %v1841_v30  ;;  %v2742_v62 = vmul.f32 %v9774_v63, %v7701_v22  ;;  %v9777_v58 = vld [vmem:[#allocation26_spill] sm:$0xff]  ;;  %v9780_v22 = vld [vmem:[#allocation28_spill] sm:$0xff]  ;;  %v9790_v49 = vld [vmem:[#allocation115_spill] sm:$0xff] }
 0x380   : > { %v1613_v1 = vadd.f32 %v1597_v48, %v1497_v50  ;;  %v1843_v9 = vadd.f32 %v1827_v54, %v1727_v18  ;;  %v2764_v42 = vpop.permute.xlu1 %2763  ;;  %v2739_v39 = vmul.f32 %v9577_v61, %v2694_v34  ;;  %v2804_v52 = vmul.f32 %v2760_v6, %v2740_v60  ;;  %v9779_v48 = vld [vmem:[#allocation14_spill] sm:$0xff]  ;;  %v9782_v50 = vld [vmem:[#allocation196_spill] sm:$0xff]  ;;  %v9783_v34 = vld [vmem:[#allocation31_spill] sm:$0xff] }
 0x381   : > { %v8038_v44 = vadd.f32 %v1857_v7, %v897_v11  ;;  %v2744_v43 = vmul.f32 %v9777_v58, %v9776_v40  ;;  %v2806_v45 = vmul.f32 %v2764_v42, %v2742_v62  ;;  %v2746_v8 = vmul.f32 %v9780_v22, %v9779_v48  ;;  %v9789_v6 = vld [vmem:[#allocation37_spill] sm:$0xff] }
 0x382   : > { %v1729_v19 = vadd.f32 %v1713_v14, %v1613_v1  ;;  %v1859_v5 = vmul.f32 0.25, %v1843_v9  ;;  %v2748_v7 = vmul.f32 %v9783_v34, %v9782_v50  ;;  %v9798_v40 = vld [vmem:[#allocation157_spill] sm:$0xff]  ;;  %v9801_v58 = vmov 0.0   ;;  %v9825_v34 = vld [vmem:[#allocation139_spill] sm:$0xff] }
 0x383   : > { %v2698_v28 = vpop.permute.xlu0 %2697  ;;  %vm9799_vm9 = vnez %v9798_v40 }
 0x384   : > { %v8041_v17 = vadd.f32 %v1859_v5, %v899_v29  ;;  %v1845_v41 = vadd.f32 %v1829_v2, %v1729_v19  ;;  %v2768_v15 = vpop.permute.xlu1 %2767  ;;  %v2741_v57 = vmul.f32 %v9775_v24, %v2698_v28  ;;  %v9784_v29 = vld [vmem:[#allocation111_spill] sm:$0xff]  ;;  %v9786_v5 = vld [vmem:[#allocation34_spill] sm:$0xff]  ;;  %v9793_v24 = vld [vmem:[#allocation145_spill] sm:$0xff] }
 0x385   : > { %v2808_v11 = vmul.f32 %v2768_v15, %v2744_v43  ;;  %v9785_v19 = vld [vmem:[#allocation95_spill] sm:$0xff]  ;;  %vm9800_vm13 = vmand %vm9799_vm9, %vm4698_vm2 }
 0x386   : > { %v1861_v33 = vmul.f32 0.25, %v1845_v41  ;;  %v2750_v28 = vmul.f32 %v9786_v5, %v9785_v19  ;;  %v9787_v41 = vld [vmem:[#allocation113_spill] sm:$0xff]  ;;  %v9839_v5 = vld [vmem:[#allocation143_spill] sm:$0xff] }
 0x387   : > { %v2702_v25 = vpop.permute.xlu0 %2701  ;;  %v9894_v19 = vld [vmem:[#allocation105_spill] sm:$0xff] }
 0x388   : > { %v8043_v26 = vadd.f32 %v1861_v33, %v901_v37  ;;  %v2772_v46 = vpop.permute.xlu1 %2771  ;;  %v2743_v61 = vmul.f32 %v9778_v20, %v2702_v25  ;;  %v9808_v20 = vld [vmem:[#allocation57_spill] sm:$0xff] }
 0x389   : > { %v2810_v14 = vmul.f32 %v2772_v46, %v2746_v8  ;;  %vm9809_vm1 = vnez %v9808_v20  ;;  %v9814_v8 = vld [vmem:[#allocation121_spill] sm:$0xff] }
 0x38a   : > { %vm9810_vm9 = vmand %vm9809_vm1, %vm4698_vm2 }
 0x38b   : > { %v2706_v0 = vpop.permute.xlu0 %2705  ;;  %vm9818_vm1 = vmand %vm7075_vm0, %vm4698_vm2 }
 0x38c   : > { %v2776_v54 = vpop.permute.xlu1 %2775  ;;  %v2745_v10 = vmul.f32 %v9781_v51, %v2706_v0  ;;  %v9788_v0 = vld [vmem:[#allocation88_spill] sm:$0xff]  ;;  %v9822_v51 = vld [vmem:[#allocation175_spill] sm:$0xff] }
 0x38d   : > { %v2812_v23 = vmul.f32 %v2776_v54, %v2748_v7  ;;  %v2752_v42 = vmul.f32 %v9789_v6, %v9788_v0  ;;  %v9819_v54 = vld [vmem:[#allocation177_spill] sm:$0xff]  ;;  %v9828_v7 = vld [vmem:[#allocation158_spill] sm:$0xff] }
 0x38f   : > { %v2710_v3 = vpop.permute.xlu0 %2709 }
 0x390   : > { %v2747_v1 = vmul.f32 %v9784_v29, %v2710_v3  ;;  %v2780_v9 = vpop.permute.xlu1 %2779  ;;  %v9834_v29 = vld [vmem:[#allocation180_spill] sm:$0xff] }
 0x393   : > { %v2714_v27 = vpop.permute.xlu0 %2713 }
 0x394   : > { %v2749_v33 = vmul.f32 %v9787_v41, %v2714_v27  ;;  %v4213_v27 = vld [vmem:[%s4570_s18 + $0x8] sm:$0xff]  ;;  %v9846_v41 = vld [vmem:[#allocation187_spill] sm:$0xff] }
 0x397   : > { %v2718_v47 = vpop.permute.xlu0 %2717 }
 0x398   : > { %v2751_v60 = vmul.f32 %v9790_v49, %v2718_v47  ;;  %v9794_v47 = vld [vmem:[#allocation117_spill] sm:$0xff]  ;;  %v9856_v49 = vld [vmem:[#allocation151_spill] sm:$0xff] }
 0x399   : > { %vm9795_vm15 = vnez %v9794_v47  ;;  %v9881_v47 = vld [vmem:[#allocation160_spill] sm:$0xff] }
 0x39a   : > { %vm9797_vm11 = vmand %vm9795_vm15, %vm4698_vm2 }
 0x39b   : > { %v2754_v55 = vpop.permute.xlu0 %2753  ;;  %vm3480_vm5 = vmor %vm9800_vm13, %vm9797_vm11 }
 0x39c   : > { %v2801_v59 = vmul.f32 %v2754_v55, %v2737_v36  ;;  %v2814_v36 = vmul.f32 %v2780_v9, %v2750_v28  ;;  %v2784_v55 = vpop.permute.xlu1 %2783  ;;  %v3877_v43 = vsel %vm3480_vm5, 1.0, %v9801_v58  ;;  %v9842_v28 = vld [vmem:[#allocation191_spill] sm:$0xff] }
 0x39d   : > { %v2816_v15 = vmul.f32 %v2784_v55, %v2752_v42  ;;  %v9853_v55 = vld [vmem:[#allocation38_spill] sm:$0xff] }
 0x39e   : > { %2819 = vperm.xlu0 %3995, %v2801_v59  }
 0x39f   : > { %v2758_v53 = vpop.permute.xlu0 %2757 }
 0x3a0   : > { %v2803_v56 = vmul.f32 %v2758_v53, %v2739_v39  ;;  %v9791_v53 = vld [vmem:[#allocation5_spill] sm:$0xff] }
 0x3a1   : > { %v9792_v63 = vsub.s32 5, %v9791_v53  ;;  %v9867_v53 = vld [vmem:[#allocation148_spill] sm:$0xff] }
 0x3a2   : > { %2829 = vperm.xlu1 %3996, %v2803_v56   ;;  %2834 = vperm.xlu0 %3995, %v2804_v52  }
 0x3a3   : > { %v2762_v12 = vpop.permute.xlu0 %2761  ;;  %v8070_v62 = vrot.slane %v4213_v27, %v9792_v63  ;;  %v9864_v27 = vld [vmem:[#allocation165_spill] sm:$0xff]  ;;  %v9870_v63 = vld [vmem:[#allocation167_spill] sm:$0xff] }
 0x3a4   : > { %v2805_v4 = vmul.f32 %v2762_v12, %v2741_v57 }
 0x3a6   : > { %2839 = vperm.xlu1 %3996, %v2805_v4   ;;  %2844 = vperm.xlu0 %3995, %v2806_v45   ;;  %v9802_v45 = vld [vmem:[#allocation63_spill] sm:$0xff]  ;;  %v9805_v4 = vld [vmem:[#allocation60_spill] sm:$0xff] }
 0x3a7   : > { %v2766_v13 = vpop.permute.xlu0 %2765  ;;  %vm9803_vm6 = vnez %v9802_v45  ;;  %vm9806_vm3 = vnez %v9805_v4  ;;  %v9884_v45 = vld [vmem:[#allocation156_spill] sm:$0xff]  ;;  %v9887_v4 = vld [vmem:[#allocation183_spill] sm:$0xff] }
 0x3a8   : > { %v2807_v30 = vmul.f32 %v2766_v13, %v2743_v61  ;;  %vm9804_vm10 = vmand %vm9803_vm6, %vm4698_vm2  ;;  %v9811_v61 = vld [vmem:[#allocation54_spill] sm:$0xff]  ;;  %vm9815_vm6 = vnez %v9814_v8 }
 0x3a9   : > { %vm9807_vm14 = vmand %vm9806_vm3, %vm4698_vm2  ;;  %vm9812_vm11 = vnez %v9811_v61  ;;  %vm9820_vm3 = vnez %v9819_v54 }
 0x3aa   : > { %2849 = vperm.xlu1 %3996, %v2807_v30   ;;  %2854 = vperm.xlu0 %3995, %v2808_v11   ;;  %vm3481_vm15 = vmor %vm9807_vm14, %vm9804_vm10 }
 0x3ab   : > { %v2770_v18 = vpop.permute.xlu0 %2769  ;;  %vm9813_vm5 = vmand %vm9812_vm11, %vm4698_vm2  ;;  %v3878_v13 = vsel %vm3481_vm15, 1.0, %v9801_v58 }
 0x3ac   : > { %v2809_v38 = vmul.f32 %v2770_v18, %v2745_v10  ;;  %vm3479_vm13 = vmor %vm9813_vm5, %vm9810_vm9  ;;  %vm9823_vm9 = vnez %v9822_v51  ;;  %vm9826_vm5 = vnez %v9825_v34 }
 0x3ad   : > { %v3876_v22 = vsel %vm3479_vm13, 1.0, %v9801_v58  ;;  %vm9816_vm10 = vmand %vm9815_vm6, %vm4698_vm2  ;;  %vm9829_vm6 = vnez %v9828_v7 }
 0x3ae   : > { %2859 = vperm.xlu1 %3996, %v2809_v38   ;;  %2864 = vperm.xlu0 %3995, %v2810_v14   ;;  %vm3483_vm14 = vmor %vm9818_vm1, %vm9816_vm10  ;;  %v9831_v38 = vld [vmem:[#allocation49_spill] sm:$0xff] }
 0x3af   : > { %v2774_v2 = vpop.permute.xlu0 %2773  ;;  %vm9821_vm15 = vmand %vm9820_vm3, %vm4698_vm2  ;;  %v3880_v18 = vsel %vm3483_vm14, 1.0, %v9801_v58  ;;  %vm9832_vm3 = vnez %v9831_v38 }
 0x3b0   : > { %v2811_v37 = vmul.f32 %v2774_v2, %v2747_v1  ;;  %vm9824_vm0 = vmand %vm9823_vm9, %vm4698_vm2 }
 0x3b1   : > { %vm3482_vm11 = vmor %vm9824_vm0, %vm9821_vm15  ;;  %vm9835_vm15 = vnez %v9834_v29 }
 0x3b2   : > { %2869 = vperm.xlu1 %3996, %v2811_v37   ;;  %2874 = vperm.xlu0 %3995, %v2812_v23   ;;  %v3879_v50 = vsel %vm3482_vm11, 1.0, %v9801_v58  ;;  %vm9827_vm13 = vmand %vm9826_vm5, %vm4698_vm2  ;;  %vm9840_vm5 = vnez %v9839_v5  ;;  %v9843_v37 = vld [vmem:[#allocation56_spill] sm:$0xff] }
 0x3b3   : > { %v2778_v25 = vpop.permute.xlu0 %2777  ;;  %vm9830_vm10 = vmand %vm9829_vm6, %vm4698_vm2 }
 0x3b4   : > { %v2813_v3 = vmul.f32 %v2778_v25, %v2749_v33  ;;  %vm3485_vm1 = vmor %vm9830_vm10, %vm9827_vm13  ;;  %vm9844_vm10 = vnez %v9843_v37  ;;  %v4250_v33 = vmov 100.0   ;;  %v9849_v25 = vld [vmem:[#allocation120_spill] sm:$0xff] }
 0x3b5   : > { %vm9833_vm14 = vmand %vm9832_vm3, %vm4698_vm2  ;;  %v3882_v9 = vsel %vm3485_vm1, 1.0, %v9801_v58  ;;  %vm9847_vm3 = vnez %v9846_v41 }
 0x3b6   : > { %2879 = vperm.xlu1 %3996, %v2813_v3   ;;  %2884 = vperm.xlu0 %3995, %v2814_v36   ;;  %vm9836_vm9 = vmand %vm9835_vm15, %vm4698_vm2  ;;  %vm9850_vm15 = vnez %v9849_v25  ;;  %v9896_v3 = vld [vmem:[#allocation24_spill] sm:$0xff] }
 0x3b7   : > { %v2782_v59 = vpop.permute.xlu0 %2781  ;;  %vm3484_vm0 = vmor %vm9836_vm9, %vm9833_vm14  ;;  %v3624_v0 = vsel %vm9850_vm15, 0.0, %v4250_v33 }
 0x3b8   : > { %v2815_v39 = vmul.f32 %v2782_v59, %v2751_v60  ;;  %v3881_v2 = vsel %vm3484_vm0, 1.0, %v9801_v58  ;;  %vm9838_vm11 = vmand %vm7449_vm4, %vm4698_vm2  ;;  %vm9854_vm0 = vnez %v9853_v55  ;;  %v9859_v60 = vld [vmem:[#allocation195_spill] sm:$0xff] }
 0x3b9   : > { %vm9841_vm13 = vmand %vm9840_vm5, %vm4698_vm2 }
 0x3ba   : > { %2889 = vperm.xlu1 %3996, %v2815_v39   ;;  %2894 = vperm.xlu0 %3995, %v2816_v15   ;;  %vm3487_vm6 = vmor %vm9841_vm13, %vm9838_vm11  ;;  %vm9857_vm13 = vnez %v9856_v49 }
 0x3bb   : > { %vm9845_vm1 = vmand %vm9844_vm10, %vm4698_vm2  ;;  %v3884_v42 = vsel %vm3487_vm6, 1.0, %v9801_v58  ;;  %vm9860_vm10 = vnez %v9859_v60 }
 0x3bc   : > { %vm9848_vm14 = vmand %vm9847_vm3, %vm4698_vm2 }
 0x3bd   : > { %vm3486_vm4 = vmor %vm9848_vm14, %vm9845_vm1  ;;  %vm9865_vm14 = vnez %v9864_v27 }
 0x3be   : > { %v3883_v36 = vsel %vm3486_vm4, 1.0, %v9801_v58  ;;  %vm9852_vm9 = vmand %vm7593_vm7, %vm4698_vm2 }
 0x3bf   : > { %vm9855_vm11 = vmand %vm9854_vm0, %vm4698_vm2 }
 0x3c0   : > { %vm3489_vm5 = vmor %vm9855_vm11, %vm9852_vm9  ;;  %vm9868_vm9 = vnez %v9867_v53  ;;  %vm9871_vm11 = vnez %v9870_v63 }
 0x3c1   : > { %vm9858_vm6 = vmand %vm9857_vm13, %vm4698_vm2  ;;  %v3886_v59 = vsel %vm3489_vm5, 1.0, %v9801_v58 }
 0x3c2   : > { %vm9861_vm1 = vmand %vm9860_vm10, %vm4698_vm2 }
 0x3c3   : > { %vm3488_vm3 = vmor %vm9861_vm1, %vm9858_vm6 }
 0x3c4   : > { %v3885_v15 = vsel %vm3488_vm3, 1.0, %v9801_v58  ;;  %vm9863_vm7 = vmand %vm7687_vm8, %vm4698_vm2 }
 0x3c5   : > { %vm9866_vm4 = vmand %vm9865_vm14, %vm4698_vm2  ;;  %vm9882_vm14 = vnez %v9881_v47 }
 0x3c6   : > { %vm3491_vm15 = vmor %vm9866_vm4, %vm9863_vm7 }
 0x3c7   : > { %vm9869_vm0 = vmand %vm9868_vm9, %vm4698_vm2 }
 0x3c8   : > { %vm9872_vm5 = vmand %vm9871_vm11, %vm4698_vm2 }
 0x3c9   : > { %vm3490_vm13 = vmor %vm9872_vm5, %vm9869_vm0  ;;  %vm9888_vm0 = vnez %v9887_v4  ;;  %v9901_v4 = vld [vmem:[#allocation173_spill] sm:$0xff] }
 0x3ca   : > { %vm9874_vm8 = vmand %vm7743_vm12, %vm4698_vm2  ;;  %vm9885_vm12 = vnez %v9884_v45 }
 0x3cb   : > { %vm9883_vm4 = vmand %vm9882_vm14, %vm4698_vm2 }
 0x3cc   : > { %vm9886_vm9 = vmand %vm9885_vm12, %vm4698_vm2 }
 0x3cd   : > { %v2825_v52 = vpop.permute.xlu1 %2824  ;;  %vm9889_vm11 = vmand %vm9888_vm0, %vm4698_vm2 }
 0x3ce   : > { %v2902_v56 = vadd.f32 %v8070_v62, %v2825_v52  ;;  %v3888_v52 = vsel %vm3491_vm15, 1.0, %v9801_v58  ;;  %vm3494_vm5 = vmor %vm9889_vm11, %vm9886_vm9 }
 0x3cf   : > { %v3891_v20 = vsel %vm3494_vm5, 1.0, %v9801_v58 }
 0x3d0   : > { %v2918_v57 = vsub.f32 %v2902_v56, %v9793_v24  ;;  %v3887_v56 = vsel %vm3490_vm13, 1.0, %v9801_v58 }
 0x3d2   : > { %v2934_v46 = vmax.f32 %v2918_v57, 1e-08  ;;  %v9875_v57 = vld [vmem:[#allocation44_spill] sm:$0xff] }
 0x3d3   : > { %vm9876_vm6 = vnez %v9875_v57 }
 0x3d4   : > { %4157 = vrcp.f32 %v2934_v46  ;;  %vm9877_vm10 = vmand %vm9876_vm6, %vm4698_vm2  ;;  %v9878_v46 = vld [vmem:[#allocation90_spill] sm:$0xff] }
 0x3d5   : > { %vm3493_vm1 = vmor %vm9877_vm10, %vm9874_vm8  ;;  %vm9879_vm3 = vnez %v9878_v46  ;;  %v9899_v46 = vld [vmem:[#allocation66_spill] sm:$0xff]  ;;  %vm9902_vm8 = vnez %v9901_v4 }
 0x3d6   : > { %vm9880_vm7 = vmand %vm9879_vm3, %vm4698_vm2  ;;  %v3890_v40 = vsel %vm3493_vm1, 1.0, %v9801_v58  ;;  %vm9900_vm13 = vnez %v9899_v46 }
 0x3d7   : > { %vm3492_vm15 = vmor %vm9883_vm4, %vm9880_vm7  ;;  %v8288_v47 = vsel %vm9900_vm13, 0.0, %v4250_v33 }
 0x3d9   : > { %3529 = vmax.xlane.f32.xlu0 %v3877_v43  ;;  %v3889_v43 = vsel %vm3492_vm15, 1.0, %v9801_v58 }
 0x3dd   : > { %3531 = vmax.xlane.f32.xlu0 %v3878_v13 }
 0x3de   : > { %v4158_v48 = vpop.eup %4157  ;;  %3527 = vmax.xlane.f32.xlu1 %v3876_v22 }
 0x3df   : > { %v2966_v30 = vmul.f32 %v4158_v48, %v9793_v24  ;;  %v9890_v48 = vld [vmem:[#allocation19_spill] sm:$0xff]  ;;  %v9898_v24 = vld [vmem:[#allocation197_spill] sm:$0xff] }
 0x3e1   : > { %v2984_v10 = vsel %vm4698_vm2, %v2966_v30, 0.0  ;;  %3535 = vmax.xlane.f32.xlu0 %v3880_v18 }
 0x3e2   : > { %3000 = vst [vmem:[%s8121_s24 + $0x8] sm:$0xff] %v2984_v10  ;;  %v3016_v14 = vsub.f32 0.0, %v2984_v10  ;;  %3533 = vmax.xlane.f32.xlu1 %v3879_v50  ;;  %v9891_v10 = vld [vmem:[#allocation146_spill] sm:$0xff] }
 0x3e3   : > { %v9892_v50 = vld [vmem:[#allocation102_spill] sm:$0xff] }
 0x3e4   : > { %v3032_v1 = vmul.f32 2.0, %v3016_v14 }
 0x3e5   : > { %3539 = vmax.xlane.f32.xlu0 %v3882_v9  ;;  %v9893_v9 = vld [vmem:[#allocation166_spill] sm:$0xff] }
 0x3e6   : > { %v3608_v23 = vadd.f32 %v9842_v28, %v3032_v1  ;;  %3537 = vmax.xlane.f32.xlu1 %v3881_v2 }
 0x3e8   : > { %v8185_v6 = vadd.f32 %v3624_v0, %v3608_v23 }
 0x3e9   : > { %3543 = vmax.xlane.f32.xlu0 %v3884_v42  ;;  %v9895_v42 = vld [vmem:[#allocation47_spill] sm:$0xff] }
 0x3ea   : > { %3541 = vmax.xlane.f32.xlu1 %v3883_v36 }
 0x3ed   : > { %3547 = vmax.xlane.f32.xlu0 %v3886_v59 }
 0x3ee   : > { %3545 = vmax.xlane.f32.xlu1 %v3885_v15 }
 0x3f1   : > { %3551 = vmax.xlane.f32.xlu0 %v3888_v52  ;;  %v9897_v52 = vld [vmem:[#allocation181_spill] sm:$0xff] }
 0x3f2   : > { %3549 = vmax.xlane.f32.xlu1 %v3887_v56 }
 0x3f5   : > { %3555 = vmax.xlane.f32.xlu0 %v3890_v40 }
 0x3f6   : > { %3553 = vmax.xlane.f32.xlu1 %v3889_v43 }
 0x3fa   : > { %3557 = vmax.xlane.f32.xlu1 %v3891_v20  ;;  %v3623_v20 = vsel %vm9902_vm8, 0.0, %v4250_v33 }
 0x41d   : > { %v2820_v61 = vpop.permute.xlu0 %2819 }
 0x41e   : > { %v2901_v13 = vadd.f32 %v8070_v62, %v2820_v61  ;;  %v9903_v61 = vld [vmem:[#allocation8_spill] sm:$0xff] }
 0x41f   : > { %vm9904_vm6 = vnez %v9903_v61 }
 0x420   : > { %v2917_v22 = vsub.f32 %v2901_v13, %v9890_v48  ;;  %v8298_v13 = vsel %vm9904_vm6, 0.0, %v4250_v33 }
 0x421   : > { %v2835_v8 = vpop.permute.xlu0 %2834  ;;  %v2830_v11 = vpop.permute.xlu1 %2829 }
 0x422   : > { %v2933_v30 = vmax.f32 %v2917_v22, 1e-08  ;;  %v2904_v54 = vadd.f32 %v8070_v62, %v2835_v8  ;;  %v2903_v51 = vadd.f32 %v8070_v62, %v2830_v11 }
 0x424   : > { %4159 = vrcp.f32 %v2933_v30  ;;  %v2920_v18 = vsub.f32 %v2904_v54, %v9891_v10  ;;  %v2919_v34 = vsub.f32 %v2903_v51, %v9892_v50 }
 0x425   : > { %v2845_v7 = vpop.permute.xlu0 %2844  ;;  %v2840_v58 = vpop.permute.xlu1 %2839 }
 0x426   : > { %v2936_v14 = vmax.f32 %v2920_v18, 1e-08  ;;  %v2935_v38 = vmax.f32 %v2919_v34, 1e-08  ;;  %v2906_v29 = vadd.f32 %v8070_v62, %v2845_v7  ;;  %v2905_v1 = vadd.f32 %v8070_v62, %v2840_v58  ;;  %v9905_v34 = vld [vmem:[#allocation122_spill] sm:$0xff]  ;;  %v9907_v58 = vld [vmem:[#allocation184_spill] sm:$0xff] }
 0x427   : > { %vm9906_vm10 = vnez %v9905_v34  ;;  %vm9908_vm1 = vnez %v9907_v58  ;;  %v9916_v58 = vld [vmem:[#allocation164_spill] sm:$0xff] }
 0x428   : > { %4161 = vrcp.f32 %v2936_v14  ;;  %v2922_v2 = vsub.f32 %v2906_v29, %v9893_v9  ;;  %v2921_v5 = vsub.f32 %v2905_v1, %v9894_v19  ;;  %v8307_v7 = vsel %vm9906_vm10, 0.0, %v4250_v33  ;;  %v9909_v29 = vld [vmem:[#allocation10_spill] sm:$0xff] }
 0x429   : > { %4163 = vrcp.f32 %v2935_v38  ;;  %v2855_v28 = vpop.permute.xlu0 %2854  ;;  %v2850_v23 = vpop.permute.xlu1 %2849  ;;  %v8312_v14 = vsel %vm9908_vm1, 0.0, %v4250_v33 }
 0x42a   : > { %v2938_v37 = vmax.f32 %v2922_v2, 1e-08  ;;  %v2937_v41 = vmax.f32 %v2921_v5, 1e-08  ;;  %v2908_v25 = vadd.f32 %v8070_v62, %v2855_v28  ;;  %v2907_v0 = vadd.f32 %v8070_v62, %v2850_v23  ;;  %v9910_v2 = vld [vmem:[#allocation97_spill] sm:$0xff] }
 0x42c   : > { %4165 = vrcp.f32 %v2938_v37  ;;  %v2924_v36 = vsub.f32 %v2908_v25, %v9895_v42  ;;  %v2923_v55 = vsub.f32 %v2907_v0, %v9896_v3 }
 0x42d   : > { %4167 = vrcp.f32 %v2937_v41  ;;  %v2865_v49 = vpop.permute.xlu0 %2864  ;;  %v2860_v60 = vpop.permute.xlu1 %2859  ;;  %v9911_v41 = vld [vmem:[#allocation141_spill] sm:$0xff] }
 0x42e   : > { %v4160_v59 = vpop.eup %4159  ;;  %v2940_v15 = vmax.f32 %v2924_v36, 1e-08  ;;  %v2939_v39 = vmax.f32 %v2923_v55, 1e-08  ;;  %v2910_v27 = vadd.f32 %v8070_v62, %v2865_v49  ;;  %v2909_v53 = vadd.f32 %v8070_v62, %v2860_v60 }
 0x42f   : > { %v2965_v63 = vmul.f32 %v4160_v59, %v9890_v48  ;;  %vm9912_vm3 = vnez %v9911_v41 }
 0x430   : > { %4169 = vrcp.f32 %v2940_v15  ;;  %v2926_v56 = vsub.f32 %v2910_v27, %v9897_v52  ;;  %v2925_v57 = vsub.f32 %v2909_v53, %v9898_v24  ;;  %v8322_v25 = vsel %vm9912_vm3, 0.0, %v4250_v33 }
 0x431   : > { %v2983_v40 = vsel %vm4698_vm2, %v2965_v63, 0.0  ;;  %4171 = vrcp.f32 %v2939_v39  ;;  %v2875_v43 = vpop.permute.xlu0 %2874  ;;  %v2870_v45 = vpop.permute.xlu1 %2869  ;;  %v9913_v63 = vld [vmem:[#allocation40_spill] sm:$0xff] }
 0x432   : > { %v4162_v48 = vpop.eup %4161  ;;  %2999 = vst [vmem:[%s8121_s24] sm:$0xff] %v2983_v40  ;;  %v2942_v22 = vmax.f32 %v2926_v56, 1e-08  ;;  %v2941_v8 = vmax.f32 %v2925_v57, 1e-08  ;;  %v2912_v11 = vadd.f32 %v8070_v62, %v2875_v43  ;;  %v2911_v30 = vadd.f32 %v8070_v62, %v2870_v45 }
 0x433   : > { %v4164_v54 = vpop.eup %4163  ;;  %v2968_v51 = vmul.f32 %v4162_v48, %v9891_v10  ;;  %v3015_v18 = vsub.f32 0.0, %v2983_v40  ;;  %v9914_v40 = vld [vmem:[#allocation99_spill] sm:$0xff] }
 0x434   : > { %v2967_v38 = vmul.f32 %v4164_v54, %v9892_v50  ;;  %4173 = vrcp.f32 %v2942_v22  ;;  %v2928_v1 = vsub.f32 %v2912_v11, %v9909_v29  ;;  %v2927_v5 = vsub.f32 %v2911_v30, %v9910_v2  ;;  %v9915_v54 = vld [vmem:[#allocation142_spill] sm:$0xff] }
 0x435   : > { %v2986_v10 = vsel %vm4698_vm2, %v2968_v51, 0.0  ;;  %4175 = vrcp.f32 %v2941_v8  ;;  %v2885_v28 = vpop.permute.xlu0 %2884  ;;  %v2880_v23 = vpop.permute.xlu1 %2879  ;;  %v3031_v37 = vmul.f32 2.0, %v3015_v18 }
 0x436   : > { %v4166_v0 = vpop.eup %4165  ;;  %3002 = vst [vmem:[%s8121_s24 + $0x18] sm:$0xff] %v2986_v10  ;;  %v2985_v50 = vsel %vm4698_vm2, %v2967_v38, 0.0  ;;  %v2944_v36 = vmax.f32 %v2928_v1, 1e-08  ;;  %v2943_v55 = vmax.f32 %v2927_v5, 1e-08  ;;  %v2914_v49 = vadd.f32 %v8070_v62, %v2885_v28 }
 0x437   : > { %v4168_v60 = vpop.eup %4167  ;;  %3001 = vst [vmem:[%s8121_s24 + $0x10] sm:$0xff] %v2985_v50  ;;  %v2970_v59 = vmul.f32 %v4166_v0, %v9893_v9  ;;  %v2913_v15 = vadd.f32 %v8070_v62, %v2880_v23  ;;  %v3017_v39 = vsub.f32 0.0, %v2985_v50  ;;  %v3607_v27 = vadd.f32 %v7984_v16, %v3031_v37  ;;  %v9917_v1 = vld [vmem:[#allocation186_spill] sm:$0xff] }
 0x438   : > { %v2969_v53 = vmul.f32 %v4168_v60, %v9894_v19  ;;  %4177 = vrcp.f32 %v2944_v36  ;;  %v2930_v56 = vsub.f32 %v2914_v49, %v9913_v63  ;;  %v3018_v57 = vsub.f32 0.0, %v2986_v10 }
 0x439   : > { %v2988_v46 = vsel %vm4698_vm2, %v2970_v59, 0.0  ;;  %4179 = vrcp.f32 %v2943_v55  ;;  %v2929_v43 = vsub.f32 %v2913_v15, %v9914_v40  ;;  %v2895_v45 = vpop.permute.xlu0 %2894  ;;  %v2890_v9 = vpop.permute.xlu1 %2889  ;;  %v3033_v4 = vmul.f32 2.0, %v3017_v39  ;;  %v9918_v15 = vld [vmem:[#allocation140_spill] sm:$0xff] }
 0x43a   : > { %v4170_v61 = vpop.eup %4169  ;;  %3004 = vst [vmem:[%s8121_s24 + $0x28] sm:$0xff] %v2988_v46  ;;  %v2987_v16 = vsel %vm4698_vm2, %v2969_v53, 0.0  ;;  %v2946_v19 = vmax.f32 %v2930_v56, 1e-08  ;;  %v2916_v48 = vadd.f32 %v8070_v62, %v2895_v45  ;;  %v2915_v22 = vadd.f32 %v8070_v62, %v2890_v9  ;;  %v9919_v45 = vld [vmem:[#allocation147_spill] sm:$0xff] }
 0x43b   : > { %v4172_v8 = vpop.eup %4171  ;;  %3003 = vst [vmem:[%s8121_s24 + $0x20] sm:$0xff] %v2987_v16  ;;  %v2972_v11 = vmul.f32 %v4170_v61, %v9895_v42  ;;  %v2945_v30 = vmax.f32 %v2929_v43, 1e-08  ;;  %v3609_v51 = vadd.f32 %v9915_v54, %v3033_v4  ;;  %v8345_v18 = vadd.f32 %v3623_v20, %v3607_v27 }
 0x43c   : > { %v2971_v34 = vmul.f32 %v4172_v8, %v9896_v3  ;;  %4181 = vrcp.f32 %v2946_v19  ;;  %v2932_v38 = vsub.f32 %v2916_v48, %v9916_v58  ;;  %v2931_v5 = vsub.f32 %v2915_v22, %v9917_v1 }
 0x43d   : > { %v2990_v62 = vsel %vm4698_vm2, %v2972_v11, 0.0  ;;  %4183 = vrcp.f32 %v2945_v30  ;;  %v8353_v10 = vadd.f32 %v8288_v47, %v3609_v51  ;;  %v3019_v42 = vsub.f32 0.0, %v2987_v16  ;;  %v9922_v51 = vld [vmem:[#allocation127_spill] sm:$0xff] }
 0x43e   : > { %v4174_v28 = vpop.eup %4173  ;;  %3006 = vst [vmem:[%s8121_s24 + $0x38] sm:$0xff] %v2990_v62  ;;  %v2989_v20 = vsel %vm4698_vm2, %v2971_v34, 0.0  ;;  %v2948_v23 = vmax.f32 %v2932_v38, 1e-08  ;;  %v2947_v3 = vmax.f32 %v2931_v5, 1e-08 }
 0x43f   : > { %v3034_v37 = vmul.f32 2.0, %v3018_v57  ;;  %v4176_v41 = vpop.eup %4175  ;;  %3005 = vst [vmem:[%s8121_s24 + $0x30] sm:$0xff] %v2989_v20  ;;  %v2974_v0 = vmul.f32 %v4174_v28, %v9897_v52  ;;  %v3035_v50 = vmul.f32 2.0, %v3019_v42  ;;  %v3021_v36 = vsub.f32 0.0, %v2989_v20  ;;  %v9923_v42 = vld [vmem:[#allocation144_spill] sm:$0xff]  ;;  %v9925_v28 = vld [vmem:[#allocation153_spill] sm:$0xff] }
 0x440   : > { %v3020_v55 = vsub.f32 0.0, %v2988_v46  ;;  %v2973_v47 = vmul.f32 %v4176_v41, %v9898_v24  ;;  %4185 = vrcp.f32 %v2948_v23  ;;  %v3022_v60 = vsub.f32 0.0, %v2990_v62 }
 0x441   : > { %v3610_v49 = vadd.f32 %v7999_v31, %v3034_v37  ;;  %v2992_v59 = vsel %vm4698_vm2, %v2974_v0, 0.0  ;;  %4187 = vrcp.f32 %v2947_v3  ;;  %v3611_v39 = vadd.f32 %v9918_v15, %v3035_v50 }
 0x442   : > { %v3037_v27 = vmul.f32 2.0, %v3021_v36  ;;  %v4178_v53 = vpop.eup %4177  ;;  %3008 = vst [vmem:[%s8121_s24 + $0x48] sm:$0xff] %v2992_v59  ;;  %v2991_v52 = vsel %vm4698_vm2, %v2973_v47, 0.0  ;;  %v3036_v24 = vmul.f32 2.0, %v3020_v55  ;;  %v3038_v57 = vmul.f32 2.0, %v3022_v60  ;;  %v9927_v47 = vld [vmem:[#allocation171_spill] sm:$0xff] }
 0x443   : > { %v8369_v56 = vadd.f32 %v8298_v13, %v3610_v49  ;;  %v4180_v31 = vpop.eup %4179  ;;  %3007 = vst [vmem:[%s8121_s24 + $0x40] sm:$0xff] %v2991_v52  ;;  %v2976_v46 = vmul.f32 %v4178_v53, %v9909_v29  ;;  %v8374_v43 = vadd.f32 %v8307_v7, %v3611_v39  ;;  %v3023_v4 = vsub.f32 0.0, %v2991_v52  ;;  %v9920_v7 = vld [vmem:[#allocation193_spill] sm:$0xff]  ;;  %v9928_v39 = vld [vmem:[#allocation152_spill] sm:$0xff]  ;;  %v9930_v53 = vld [vmem:[#allocation86_spill] sm:$0xff] }
 0x444   : > { %v3613_v9 = vadd.f32 %v9919_v45, %v3037_v27  ;;  %v2975_v61 = vmul.f32 %v4180_v31, %v9910_v2  ;;  %v3612_v16 = vadd.f32 %v8005_v32, %v3036_v24  ;;  %v3614_v13 = vadd.f32 %v8024_v21, %v3038_v57 }
 0x445   : > { %v3024_v19 = vsub.f32 0.0, %v2992_v59  ;;  %v2994_v48 = vsel %vm4698_vm2, %v2976_v46, 0.0  ;;  %v3039_v29 = vmul.f32 2.0, %v3023_v4  ;;  %vm9921_vm7 = vnez %v9920_v7 }
 0x446   : > { %v8383_v22 = vadd.f32 %v8322_v25, %v3613_v9  ;;  %v3630_v8 = vsel %vm9921_vm7, 0.0, %v4250_v33  ;;  %v4182_v11 = vpop.eup %4181  ;;  %3010 = vst [vmem:[%s8121_s24 + $0x58] sm:$0xff] %v2994_v48  ;;  %v2993_v2 = vsel %vm4698_vm2, %v2975_v61, 0.0  ;;  %v8392_v32 = vadd.f32 %v8312_v14, %v3612_v16  ;;  %v9932_v9 = vld [vmem:[#allocation161_spill] sm:$0xff]  ;;  %v9933_v16 = vld [vmem:[#allocation162_spill] sm:$0xff] }
 0x447   : > { %v8394_v21 = vadd.f32 %v3630_v8, %v3614_v13  ;;  %v3040_v30 = vmul.f32 2.0, %v3024_v19  ;;  %v4184_v54 = vpop.eup %4183  ;;  %3009 = vst [vmem:[%s8121_s24 + $0x50] sm:$0xff] %v2993_v2  ;;  %v2978_v25 = vmul.f32 %v4182_v11, %v9913_v63  ;;  %v3615_v34 = vadd.f32 %v9922_v51, %v3039_v29  ;;  %v9935_v19 = vld [vmem:[#allocation82_spill] sm:$0xff]  ;;  %v9940_v51 = vld [vmem:[#allocation89_spill] sm:$0xff] }
 0x448   : > { %v3025_v38 = vsub.f32 0.0, %v2993_v2  ;;  %v3026_v5 = vsub.f32 0.0, %v2994_v48  ;;  %v2977_v62 = vmul.f32 %v4184_v54, %v9914_v40  ;;  %vm9924_vm14 = vnez %v9923_v42  ;;  %v9937_v2 = vld [vmem:[#allocation94_spill] sm:$0xff]  ;;  %v9938_v54 = vld [vmem:[#allocation32_spill] sm:$0xff] }
 0x449   : > { %v3631_v14 = vsel %vm9924_vm14, 0.0, %v4250_v33  ;;  %vm9926_vm4 = vnez %v9925_v28  ;;  %v3616_v23 = vadd.f32 %v8032_v35, %v3040_v30  ;;  %v2996_v63 = vsel %vm4698_vm2, %v2978_v25, 0.0 }
 0x44a   : > { %v3632_v20 = vsel %vm9926_vm4, 0.0, %v4250_v33  ;;  %v8409_v3 = vadd.f32 %v3631_v14, %v3615_v34  ;;  %v3041_v37 = vmul.f32 2.0, %v3025_v38  ;;  %v3042_v41 = vmul.f32 2.0, %v3026_v5  ;;  %v4186_v0 = vpop.eup %4185  ;;  %3012 = vst [vmem:[%s8121_s24 + $0x68] sm:$0xff] %v2996_v63 }
 0x44b   : > { %v2995_v40 = vsel %vm4698_vm2, %v2977_v62, 0.0  ;;  %v8414_v50 = vadd.f32 %v3632_v20, %v3616_v23  ;;  %v3028_v36 = vsub.f32 0.0, %v2996_v63  ;;  %v4188_v55 = vpop.eup %4187  ;;  %v2980_v35 = vmul.f32 %v4186_v0, %v9916_v58 }
 0x44c   : > { %3011 = vst [vmem:[%s8121_s24 + $0x60] sm:$0xff] %v2995_v40  ;;  %v3617_v49 = vadd.f32 %v9927_v47, %v3041_v37  ;;  %v3027_v60 = vsub.f32 0.0, %v2995_v40  ;;  %v3618_v59 = vadd.f32 %v8038_v44, %v3042_v41  ;;  %v2979_v15 = vmul.f32 %v4188_v55, %v9917_v1 }
 0x44d   : > { %vm9929_vm15 = vnez %v9928_v39  ;;  %vm9931_vm12 = vnez %v9930_v53  ;;  %v3044_v24 = vmul.f32 2.0, %v3028_v36  ;;  %v2998_v58 = vsel %vm4698_vm2, %v2980_v35, 0.0 }
 0x44e   : > { %v3633_v27 = vsel %vm9929_vm15, 0.0, %v4250_v33  ;;  %v3634_v52 = vsel %vm9931_vm12, 0.0, %v4250_v33  ;;  %v3043_v31 = vmul.f32 2.0, %v3027_v60  ;;  %3014 = vst [vmem:[%s8121_s24 + $0x78] sm:$0xff] %v2998_v58  ;;  %v2997_v44 = vsel %vm4698_vm2, %v2979_v15, 0.0 }
 0x44f   : > { %v8429_v57 = vadd.f32 %v3633_v27, %v3617_v49  ;;  %v8431_v46 = vadd.f32 %v3634_v52, %v3618_v59  ;;  %v3620_v1 = vadd.f32 %v8041_v17, %v3044_v24  ;;  %v3030_v45 = vsub.f32 0.0, %v2998_v58  ;;  %3013 = vst [vmem:[%s8121_s24 + $0x70] sm:$0xff] %v2997_v44 }
 0x450   : > { %v3619_v4 = vadd.f32 %v9932_v9, %v3043_v31  ;;  %v3029_v61 = vsub.f32 0.0, %v2997_v44  ;;  %vm9934_vm9 = vnez %v9933_v16  ;;  %vm9936_vm0 = vnez %v9935_v19 }
 0x451   : > { %v3636_v13 = vsel %vm9934_vm9, 0.0, %v4250_v33  ;;  %v3635_v48 = vsel %vm9936_vm0, 0.0, %v4250_v33  ;;  %v3046_v7 = vmul.f32 2.0, %v3030_v45  ;;  %vm9939_vm11 = vnez %v9938_v54 }
 0x452   : > { %v8445_v29 = vadd.f32 %v3636_v13, %v3620_v1  ;;  %v8447_v8 = vadd.f32 %v3635_v48, %v3619_v4  ;;  %v3045_v17 = vmul.f32 2.0, %v3029_v61  ;;  %v3638_v25 = vsel %vm9939_vm11, 0.0, %v4250_v33 }
 0x453   : > { %v3622_v11 = vadd.f32 %v8043_v26, %v3046_v7  ;;  %vm9941_vm5 = vnez %v9940_v51  ;;  %v4251_v42 = vmov 10000.0  }
 0x454   : > { %v3621_v30 = vadd.f32 %v9937_v2, %v3045_v17  ;;  %v3637_v34 = vsel %vm9941_vm5, 0.0, %v4250_v33 }
 0x455   : > { %v8457_v38 = vadd.f32 %v3638_v25, %v3622_v11 }
 0x456   : > { %v8459_v5 = vadd.f32 %v3637_v34, %v3621_v30 }
 0x466   : > { %v3530_v62 = vpop.xlane.xlu0 %3529 }
 0x467   : > { %vm3560_vm13 = vcmp.gt.f32.partialorder %v3530_v62, 0.0 }
 0x468   : > { %v3656_v14 = vsel %vm3560_vm13, 0.0, %v4251_v42 }
 0x469   : > { %v3672_v26 = vadd.f32 %v3656_v14, %v8185_v6 }
 0x46a   : > { %v3532_v28 = vpop.xlane.xlu0 %3531 }
 0x46b   : > { %v3688_v33 = vsel %vm4698_vm2, %v3672_v26, 1e+08  ;;  %vm3561_vm8 = vcmp.gt.f32.partialorder %v3532_v28, 0.0  ;;  %v3528_v20 = vpop.xlane.xlu1 %3527 }
 0x46c   : > { %3704 = vst [vmem:[%s8466_s27 + $0x8] sm:$0xff] %v3688_v33  ;;  %v3657_v23 = vsel %vm3561_vm8, 0.0, %v4251_v42  ;;  %vm3559_vm6 = vcmp.gt.f32.partialorder %v3528_v20, 0.0 }
 0x46d   : > { %v3673_v63 = vadd.f32 %v3657_v23, %v8353_v10  ;;  %v3655_v37 = vsel %vm3559_vm6, 0.0, %v4251_v42 }
 0x46e   : > { %v3671_v41 = vadd.f32 %v3655_v37, %v8345_v18  ;;  %v3536_v0 = vpop.xlane.xlu0 %3535 }
 0x46f   : > { %v3689_v6 = vsel %vm4698_vm2, %v3673_v63, 1e+08  ;;  %vm3563_vm10 = vcmp.gt.f32.partialorder %v3536_v0, 0.0  ;;  %v3534_v40 = vpop.xlane.xlu1 %3533 }
 0x470   : > { %3705 = vst [vmem:[%s8466_s27 + $0x10] sm:$0xff] %v3689_v6  ;;  %v3687_v36 = vsel %vm4698_vm2, %v3671_v41, 1e+08  ;;  %v3659_v55 = vsel %vm3563_vm10, 0.0, %v4251_v42  ;;  %vm3562_vm1 = vcmp.gt.f32.partialorder %v3534_v40, 0.0 }
 0x471   : > { %3703 = vst [vmem:[%s8466_s27] sm:$0xff] %v3687_v36  ;;  %v3675_v10 = vadd.f32 %v3659_v55, %v8374_v43  ;;  %v3658_v18 = vsel %vm3562_vm1, 0.0, %v4251_v42 }
 0x472   : > { %v3674_v35 = vadd.f32 %v3658_v18, %v8369_v56  ;;  %v3540_v47 = vpop.xlane.xlu0 %3539 }
 0x473   : > { %v3691_v49 = vsel %vm4698_vm2, %v3675_v10, 1e+08  ;;  %vm3565_vm3 = vcmp.gt.f32.partialorder %v3540_v47, 0.0  ;;  %v3538_v60 = vpop.xlane.xlu1 %3537 }
 0x474   : > { %3707 = vst [vmem:[%s8466_s27 + $0x20] sm:$0xff] %v3691_v49  ;;  %v3690_v59 = vsel %vm4698_vm2, %v3674_v35, 1e+08  ;;  %v3661_v15 = vsel %vm3565_vm3, 0.0, %v4251_v42  ;;  %vm3564_vm7 = vcmp.gt.f32.partialorder %v3538_v60, 0.0 }
 0x475   : > { %3706 = vst [vmem:[%s8466_s27 + $0x18] sm:$0xff] %v3690_v59  ;;  %v3677_v43 = vadd.f32 %v3661_v15, %v8383_v22  ;;  %v3660_v56 = vsel %vm3564_vm7, 0.0, %v4251_v42 }
 0x476   : > { %v3676_v39 = vadd.f32 %v3660_v56, %v8392_v32  ;;  %v3544_v27 = vpop.xlane.xlu0 %3543 }
 0x477   : > { %v3693_v53 = vsel %vm4698_vm2, %v3677_v43, 1e+08  ;;  %vm3567_vm14 = vcmp.gt.f32.partialorder %v3544_v27, 0.0  ;;  %v3542_v52 = vpop.xlane.xlu1 %3541 }
 0x478   : > { %3709 = vst [vmem:[%s8466_s27 + $0x30] sm:$0xff] %v3693_v53  ;;  %v3692_v24 = vsel %vm4698_vm2, %v3676_v39, 1e+08  ;;  %v3663_v58 = vsel %vm3567_vm14, 0.0, %v4251_v42  ;;  %vm3566_vm4 = vcmp.gt.f32.partialorder %v3542_v52, 0.0 }
 0x479   : > { %3708 = vst [vmem:[%s8466_s27 + $0x28] sm:$0xff] %v3692_v24  ;;  %v3679_v22 = vadd.f32 %v3663_v58, %v8409_v3  ;;  %v3662_v32 = vsel %vm3566_vm4, 0.0, %v4251_v42 }
 0x47a   : > { %v3678_v31 = vadd.f32 %v3662_v32, %v8394_v21  ;;  %v3548_v44 = vpop.xlane.xlu0 %3547 }
 0x47b   : > { %v3695_v1 = vsel %vm4698_vm2, %v3679_v22, 1e+08  ;;  %vm3569_vm15 = vcmp.gt.f32.partialorder %v3548_v44, 0.0  ;;  %v3546_v45 = vpop.xlane.xlu1 %3545 }
 0x47c   : > { %3711 = vst [vmem:[%s8466_s27 + $0x40] sm:$0xff] %v3695_v1  ;;  %v3694_v9 = vsel %vm4698_vm2, %v3678_v31, 1e+08  ;;  %v3665_v4 = vsel %vm3569_vm15, 0.0, %v4251_v42  ;;  %vm3568_vm12 = vcmp.gt.f32.partialorder %v3546_v45, 0.0 }
 0x47d   : > { %3710 = vst [vmem:[%s8466_s27 + $0x38] sm:$0xff] %v3694_v9  ;;  %v3681_v3 = vadd.f32 %v3665_v4, %v8429_v57  ;;  %v3664_v21 = vsel %vm3568_vm12, 0.0, %v4251_v42 }
 0x47e   : > { %v3680_v61 = vadd.f32 %v3664_v21, %v8414_v50  ;;  %v3552_v16 = vpop.xlane.xlu0 %3551 }
 0x47f   : > { %v3697_v13 = vsel %vm4698_vm2, %v3681_v3, 1e+08  ;;  %vm3571_vm9 = vcmp.gt.f32.partialorder %v3552_v16, 0.0  ;;  %v3550_v19 = vpop.xlane.xlu1 %3549 }
 0x480   : > { %3713 = vst [vmem:[%s8466_s27 + $0x50] sm:$0xff] %v3697_v13  ;;  %v3696_v48 = vsel %vm4698_vm2, %v3680_v61, 1e+08  ;;  %v3667_v7 = vsel %vm3571_vm9, 0.0, %v4251_v42  ;;  %vm3570_vm0 = vcmp.gt.f32.partialorder %v3550_v19, 0.0 }
 0x481   : > { %3712 = vst [vmem:[%s8466_s27 + $0x48] sm:$0xff] %v3696_v48  ;;  %v3683_v57 = vadd.f32 %v3667_v7, %v8447_v8  ;;  %v3666_v50 = vsel %vm3570_vm0, 0.0, %v4251_v42 }
 0x482   : > { %v3682_v17 = vadd.f32 %v3666_v50, %v8431_v46  ;;  %v3556_v11 = vpop.xlane.xlu0 %3555 }
 0x483   : > { %v3699_v2 = vsel %vm4698_vm2, %v3683_v57, 1e+08  ;;  %vm3573_vm11 = vcmp.gt.f32.partialorder %v3556_v11, 0.0  ;;  %v3554_v30 = vpop.xlane.xlu1 %3553 }
 0x484   : > { %3715 = vst [vmem:[%s8466_s27 + $0x60] sm:$0xff] %v3699_v2  ;;  %v3698_v54 = vsel %vm4698_vm2, %v3682_v17, 1e+08  ;;  %v3669_v25 = vsel %vm3573_vm11, 0.0, %v4251_v42  ;;  %vm3572_vm5 = vcmp.gt.f32.partialorder %v3554_v30, 0.0 }
 0x485   : > { %3714 = vst [vmem:[%s8466_s27 + $0x58] sm:$0xff] %v3698_v54  ;;  %v3685_v8 = vadd.f32 %v3669_v25, %v8459_v5  ;;  %v3668_v46 = vsel %vm3572_vm5, 0.0, %v4251_v42 }
 0x486   : > { %v3684_v51 = vadd.f32 %v3668_v46, %v8445_v29 }
 0x487   : > { %v3701_v34 = vsel %vm4698_vm2, %v3685_v8, 1e+08  ;;  %v3558_v62 = vpop.xlane.xlu1 %3557 }
 0x488   : > { %3717 = vst [vmem:[%s8466_s27 + $0x70] sm:$0xff] %v3701_v34  ;;  %v3700_v14 = vsel %vm4698_vm2, %v3684_v51, 1e+08  ;;  %vm3574_vm13 = vcmp.gt.f32.partialorder %v3558_v62, 0.0 }
 0x489   : > { %3716 = vst [vmem:[%s8466_s27 + $0x68] sm:$0xff] %v3700_v14  ;;  %v3670_v26 = vsel %vm3574_vm13, 0.0, %v4251_v42 }
 0x48a   : > { %v3686_v28 = vadd.f32 %v3670_v26, %v8457_v38 }
 0x48c   : > { %v3702_v5 = vsel %vm4698_vm2, %v3686_v28, 1e+08 }
 0x48d   : > { %3718 = vst [vmem:[%s8466_s27 + $0x78] sm:$0xff] %v3702_v5 }
 0x48e PF: > { %s23_s26 = sadd.s32 1, %s4234_s26  }
 0x48f   : > { %p20_p9 = scmp.ge.s32.totalorder %s23_s26, 4  }
 0x491   :  { %22 = sbr.rel (!%p20_p9) target bundleno = 16 (0x10), region = 87 }

</bundles_post_ra>
